<compile_context>
chip_gen: v6e
topology: v6e:2x2x1
jax: 0.10.0
libtpu: 0.0.40
codegen_flags: <defaults>
</compile_context>

<pallas_src>
import functools

import jax
import jax.numpy as jnp
from jax import lax
from jax.experimental import pallas as pl
from jax.experimental.pallas import tpu as pltpu


# ----------------------------------------------------------------------------
# Glue (plain JAX): furthest point sampling, ball query, channels-first grouping
# ----------------------------------------------------------------------------
def furthest_point_sample(xyz: jnp.ndarray, npoint: int) -> jnp.ndarray:
    """xyz: (B, N, 3) -> (B, npoint) int32 indices. Matches CUDA FPS (starts at 0)."""
    B, N, _ = xyz.shape
    init_idx = jnp.zeros((B,), jnp.int32)
    dist0 = jnp.full((B, N), 1e10, jnp.float32)

    def body(carry, _):
        dist, last_idx = carry
        last = jnp.take_along_axis(xyz, last_idx[:, None, None], axis=1)  # (B,1,3)
        d = jnp.sum((xyz - last) ** 2, axis=-1)                           # (B,N)
        dist = jnp.minimum(dist, d)
        nxt = jnp.argmax(dist, axis=-1).astype(jnp.int32)
        return (dist, nxt), nxt

    (_, _), rest = lax.scan(body, (dist0, init_idx), None, length=npoint - 1)
    return jnp.concatenate([init_idx[:, None], jnp.transpose(rest)], axis=1)


def ball_query(xyz, new_xyz, radius, nsample):
    """xyz: (B,N,3), new_xyz: (B,S,3) -> (B,S,nsample) int32 indices.

    Matches the CUDA ball_query: first `nsample` in-radius points in original
    order, padded with the first in-radius index (0 if none).
    """
    B, N, _ = xyz.shape
    S = new_xyz.shape[1]
    d2 = jnp.sum((new_xyz[:, :, None, :] - xyz[:, None, :, :]) ** 2, axis=-1)  # (B,S,N)
    within = d2 < (radius * radius)
    keys = jnp.where(within, jnp.arange(N, dtype=jnp.int32)[None, None, :], N)
    k = min(nsample, N)
    neg_top, _ = lax.top_k(-keys, k)            # k smallest keys, ascending
    sorted_keys = -neg_top
    if nsample > N:
        pad = jnp.full((B, S, nsample - N), N, jnp.int32)
        sorted_keys = jnp.concatenate([sorted_keys, pad], axis=-1)
    first = sorted_keys[..., :1]
    fill = jnp.where(first < N, first, 0)
    idx = jnp.where(sorted_keys < N, sorted_keys, fill)
    return jnp.minimum(idx, N - 1).astype(jnp.int32)


def query_and_group_cf(xyz, new_xyz, features, radius, nsample, use_xyz=True):
    """Grouped features in TPU-friendly layout: (B, nsample, Cin, npoint).

    Channels on sublanes, query points on lanes, samples as an un-tiled leading
    axis (so the kernel can do a running max over nsample without reshapes).
    """
    idx = ball_query(xyz, new_xyz, radius, nsample)          # (B, S, K)
    idx_t = jnp.transpose(idx, (0, 2, 1))                    # (B, K, S)
    xyz_cf = jnp.transpose(xyz, (0, 2, 1))                   # (B, 3, N)
    new_xyz_cf = jnp.transpose(new_xyz, (0, 2, 1))           # (B, 3, S)

    g_xyz = jnp.take_along_axis(xyz_cf[:, None, :, :], idx_t[:, :, None, :], axis=3)
    g_xyz = g_xyz - new_xyz_cf[:, None, :, :]                # (B, K, 3, S)

    if features is not None:
        g_feat = jnp.take_along_axis(features[:, None, :, :], idx_t[:, :, None, :],
                                     axis=3)                 # (B, K, C, S)
        if use_xyz:
            return jnp.concatenate([g_xyz, g_feat], axis=2)  # (B, K, 3+C, S)
        return g_feat
    assert use_xyz, "Cannot have both features=None and use_xyz=False"
    return g_xyz


# ----------------------------------------------------------------------------
# Pallas kernel: SharedMLP (BN folded into bf16 weights) + max over nsample
# ----------------------------------------------------------------------------
def _make_mlp_maxpool_kernel(num_layers: int, nsample: int):
    """Kernel args: x_ref (K, Cin, tile_s) bf16, then per layer
    [Wt (C_l, C_{l-1}) bf16, bias (C_l, 1) f32], then o_ref (Cout, tile_s) f32."""

    def kernel(x_ref, *rest):
        o_ref = rest[-1]
        params = rest[:-1]

        # Running-max accumulator lives directly in the output block (f32, VMEM).
        o_ref[...] = jnp.full(o_ref.shape, -jnp.inf, dtype=jnp.float32)

        def body(k, carry):
            h = x_ref[k]                                   # (Cin, tile_s) bf16
            for l in range(num_layers):
                wt = params[2 * l][...]                    # (C_l, C_{l-1}) bf16
                b = params[2 * l + 1][...]                 # (C_l, 1) f32
                z = jnp.dot(wt, h, preferred_element_type=jnp.float32)  # MXU, f32 acc
                z = jnp.maximum(z + b, 0.0)                # folded-BN bias + ReLU (f32)
                h = z.astype(jnp.bfloat16) if l < num_layers - 1 else z
            o_ref[...] = jnp.maximum(o_ref[...], h)        # max-pool over nsample (f32)
            return carry

        unroll = nsample if nsample <= 16 else (4 if nsample % 4 == 0 else 1)
        lax.fori_loop(0, nsample, body, 0, unroll=unroll)

    return kernel


def _choose_tile_s(S, K, cin, cmax):
    """Pick a lane-dense npoint tile that comfortably fits scoped VMEM on all gens."""
    if S % 128 != 0:
        return S                      # small / irregular npoint: take the full extent

    def fits(t):
        cin_pad = -(-cin // 16) * 16
        in_bytes = 2 * K * cin_pad * t * 2      # double-buffered bf16 input block
        act_bytes = 3 * cmax * t * 4            # in-flight per-sample activations
        out_bytes = 2 * cmax * t * 4            # double-buffered f32 output block
        return in_bytes + act_bytes + out_bytes < 12 * 2 ** 20

    for t in (1024, 512, 256, 128):
        if S % t == 0 and fits(t):
            return t
    return 128


def shared_mlp_maxpool(grouped, weights_t, biases):
    """grouped: (B, K, Cin, S) -> (B, Cout, S) f32 (PyTorch NCS layout)."""
    grouped = grouped.astype(jnp.bfloat16)
    B, K, Cin, S = grouped.shape
    num_layers = len(weights_t)
    Cout = weights_t[-1].shape[0]
    Cmax = max(w.shape[0] for w in weights_t)

    tile_s = _choose_tile_s(S, K, Cin, Cmax)
    grid = (B, S // tile_s)

    in_specs = [pl.BlockSpec((None, K, Cin, tile_s), lambda b, s: (b, 0, 0, s))]
    flat_params = []
    for w, bias in zip(weights_t, biases):
        in_specs.append(pl.BlockSpec(w.shape, lambda b, s: (0, 0)))
        in_specs.append(pl.BlockSpec(bias.shape, lambda b, s: (0, 0)))
        flat_params.extend([w, bias])

    kernel = _make_mlp_maxpool_kernel(num_layers, K)
    return pl.pallas_call(
        kernel,
        out_shape=jax.ShapeDtypeStruct((B, Cout, S), jnp.float32),
        grid=grid,
        in_specs=in_specs,
        out_specs=pl.BlockSpec((None, Cout, tile_s), lambda b, s: (b, 0, s)),
        compiler_params=pltpu.CompilerParams(
            dimension_semantics=("parallel", "parallel"),
            vmem_limit_bytes=32 * 1024 * 1024),
    )(grouped, *flat_params)


# ----------------------------------------------------------------------------
# Functional forward + module wrapper
# ----------------------------------------------------------------------------
def _msg_forward(params, xyz, features, inds, *, npoint, radii, nsamples, use_xyz):
    if inds is None:
        inds = furthest_point_sample(xyz, npoint)
    new_xyz = jnp.take_along_axis(xyz, inds[..., None], axis=1)   # (B, npoint, 3)

    outs = []
    for i in range(len(radii)):
        grouped = query_and_group_cf(xyz, new_xyz, features, radii[i], nsamples[i],
                                     use_xyz=use_xyz)             # (B, K, Cin, S)
        weights_t, biases = params[i]
        out = shared_mlp_maxpool(grouped, list(weights_t), list(biases))  # (B,Cout,S)
        outs.append(out)

    new_features = jnp.concatenate(outs, axis=1)                  # (B, sum Cout, npoint)
    return new_xyz, new_features, inds


class PointnetSAModuleMSGVotes:
    def __init__(self, *, mlps, npoint, radii, nsamples, bn=True, use_xyz=True,
                 key=None):
        assert len(mlps) == len(nsamples) == len(radii)
        self.npoint = int(npoint)
        self.radii = tuple(float(r) for r in radii)
        self.nsamples = tuple(int(n) for n in nsamples)
        self.use_xyz = bool(use_xyz)
        if key is None:
            key = jax.random.PRNGKey(0)

        # Deterministic synthetic parameters. Conv2d 1x1 (no bias when bn=True);
        # BatchNorm2d (eval) folded into the conv weight (scale) and a bias (shift).
        eps = 1e-5
        params = []
        for i in range(len(radii)):
            spec = list(mlps[i])
            if use_xyz:
                spec[0] += 3
            wts, bs = [], []
            for l in range(len(spec) - 1):
                cin, cout = spec[l], spec[l + 1]
                key, kw, kg, kb, km, kv = jax.random.split(key, 6)
                w = jax.random.normal(kw, (cin, cout), jnp.float32) * (2.0 / cin) ** 0.5
                if bn:
                    gamma = 1.0 + 0.1 * jax.random.normal(kg, (cout,), jnp.float32)
                    beta = 0.1 * jax.random.normal(kb, (cout,), jnp.float32)
                    rmean = 0.05 * jax.random.normal(km, (cout,), jnp.float32)
                    rvar = 1.0 + 0.1 * jax.random.uniform(kv, (cout,), jnp.float32)
                    scale = gamma / jnp.sqrt(rvar + eps)
                    w = w * scale[None, :]                 # fold BN scale into W
                    bias = beta - rmean * scale            # remaining shift
                else:
                    bias = 0.1 * jax.random.normal(kb, (cout,), jnp.float32)
                wts.append(jnp.transpose(w).astype(jnp.bfloat16))      # (Cout, Cin)
                bs.append(bias.reshape(cout, 1).astype(jnp.float32))   # (Cout, 1)
            params.append((tuple(wts), tuple(bs)))
        self.params = tuple(params)

        self._forward = jax.jit(functools.partial(
            _msg_forward, npoint=self.npoint, radii=self.radii,
            nsamples=self.nsamples, use_xyz=self.use_xyz))

    def __call__(self, xyz, features=None, inds=None):
        """xyz: (B,N,3), features: (B,C,N) or None, inds: (B,npoint) or None.

        Returns (new_xyz (B,npoint,3), new_features (B, sum C_out, npoint), inds).
        """
        return self._forward(self.params, xyz, features, inds)


# ----------------------------------------------------------------------------
if __name__ == "__main__":
    key = jax.random.PRNGKey(0)
    k_xyz, k_feat, k_param = jax.random.split(key, 3)

    B, N, C = 2, 32, 4
    npoint = 8
    radii = [0.2, 0.4]
    nsamples = [8, 16]
    mlps = [[C, 16, 32], [C, 32, 64]]   # use_xyz adds +3 to the first channel count

    xyz = jax.random.uniform(k_xyz, (B, N, 3), jnp.float32)          # (B,N,3)
    features = jax.random.normal(k_feat, (B, C, N), jnp.float32)     # (B,C,N)

    module = PointnetSAModuleMSGVotes(
        mlps=mlps, npoint=npoint, radii=radii, nsamples=nsamples,
        bn=True, use_xyz=True, key=k_param)

    new_xyz, new_features, inds = module(xyz, features, inds=None)
    jax.block_until_ready((new_xyz, new_features, inds))

    assert new_xyz.shape == (B, npoint, 3)
    assert new_features.shape == (B, 32 + 64, npoint)
    assert new_features.dtype == jnp.float32
    assert inds.shape == (B, npoint)
    assert bool(jnp.all(jnp.isfinite(new_features)))
    print("KERNEL_OK")
</pallas_src>

<mosaic_0001>
module attributes {stable_mosaic.version = 11 : i64} {
  func.func @kernel(%arg0: i32, %arg1: i32, %arg2: memref<1x8x7x8xbf16, #tpu.memory_space<vmem>>, %arg3: memref<16x7xbf16, #tpu.memory_space<vmem>>, %arg4: memref<16x1xf32, #tpu.memory_space<vmem>>, %arg5: memref<32x16xbf16, #tpu.memory_space<vmem>>, %arg6: memref<32x1xf32, #tpu.memory_space<vmem>>, %arg7: memref<1x32x8xf32, #tpu.memory_space<vmem>>) attributes {dimension_semantics = [#tpu.dimension_semantics<parallel>, #tpu.dimension_semantics<parallel>], iteration_bounds = array<i64: 2, 1>, scalar_prefetch = 0 : i64, scratch_operands = 0 : i64, tpu.core_type = #tpu.core_type<tc>, window_params = [{transform_indices = @transform_0, window_bounds = array<i64: 1, 8, 7, 8>}, {pipeline_mode = #tpu.pipeline_mode<synchronous>, transform_indices = @transform_1, window_bounds = array<i64: 16, 7>}, {pipeline_mode = #tpu.pipeline_mode<synchronous>, transform_indices = @transform_2, window_bounds = array<i64: 16, 1>}, {pipeline_mode = #tpu.pipeline_mode<synchronous>, transform_indices = @transform_3, window_bounds = array<i64: 32, 16>}, {pipeline_mode = #tpu.pipeline_mode<synchronous>, transform_indices = @transform_4, window_bounds = array<i64: 32, 1>}, {transform_indices = @transform_5, window_bounds = array<i64: 1, 32, 8>}]} {
    %cst = arith.constant 0xFF800000 : f32
    %0 = vector.broadcast %cst : f32 to vector<32x8xf32>
    %c0 = arith.constant 0 : index
    %c0_0 = arith.constant 0 : index
    %c0_1 = arith.constant 0 : index
    %1 = vector.load %arg7[%c0, %c0_0, %c0_1] : memref<1x32x8xf32, #tpu.memory_space<vmem>>, vector<1x32x8xf32>
    %2 = vector.shape_cast %1 : vector<1x32x8xf32> to vector<32x8xf32>
    %3 = vector.shape_cast %0 : vector<32x8xf32> to vector<1x32x8xf32>
    tpu.vector_store %arg7[%c0, %c0_0, %c0_1], %3 {strides = array<i32>} : memref<1x32x8xf32, #tpu.memory_space<vmem>>, vector<1x32x8xf32>,
    %c0_i32 = arith.constant 0 : i32
    %c0_2 = arith.constant 0 : index
    %4 = arith.index_cast %c0_i32 : i32 to index
    %c0_3 = arith.constant 0 : index
    %c0_4 = arith.constant 0 : index
    %5 = vector.load %arg2[%c0_2, %4, %c0_3, %c0_4] : memref<1x8x7x8xbf16, #tpu.memory_space<vmem>>, vector<1x1x7x8xbf16>
    %6 = vector.shape_cast %5 : vector<1x1x7x8xbf16> to vector<7x8xbf16>
    %c0_5 = arith.constant 0 : index
    %c0_6 = arith.constant 0 : index
    %7 = vector.load %arg3[%c0_5, %c0_6] : memref<16x7xbf16, #tpu.memory_space<vmem>>, vector<16x7xbf16>
    %c0_7 = arith.constant 0 : index
    %c0_8 = arith.constant 0 : index
    %8 = vector.load %arg4[%c0_7, %c0_8] : memref<16x1xf32, #tpu.memory_space<vmem>>, vector<16x1xf32>
    %cst_9 = arith.constant dense<0.000000e+00> : vector<16x8xf32>
    %9 = tpu.matmul %7, %6, %cst_9 {dimension_numbers = #tpu.dot_dimension_numbers<[1], [0], [0], [1], [0, 0, 1, 1], [], []>} : vector<16x7xbf16>, vector<7x8xbf16>, vector<16x8xf32> -> vector<16x8xf32>
    %10 = vector.broadcast %8 : vector<16x1xf32> to vector<16x8xf32>
    %11 = arith.addf %9, %10 : vector<16x8xf32>
    %cst_10 = arith.constant 0.000000e+00 : f32
    %12 = vector.broadcast %cst_10 : f32 to vector<16x8xf32>
    %13 = arith.maximumf %11, %12 : vector<16x8xf32>
    %14 = arith.truncf %13 : vector<16x8xf32> to vector<16x8xbf16>
    %c0_11 = arith.constant 0 : index
    %c0_12 = arith.constant 0 : index
    %15 = vector.load %arg5[%c0_11, %c0_12] : memref<32x16xbf16, #tpu.memory_space<vmem>>, vector<32x16xbf16>
    %c0_13 = arith.constant 0 : index
    %c0_14 = arith.constant 0 : index
    %16 = vector.load %arg6[%c0_13, %c0_14] : memref<32x1xf32, #tpu.memory_space<vmem>>, vector<32x1xf32>
    %cst_15 = arith.constant dense<0.000000e+00> : vector<32x8xf32>
    %17 = tpu.matmul %15, %14, %cst_15 {dimension_numbers = #tpu.dot_dimension_numbers<[1], [0], [0], [1], [0, 0, 1, 1], [], []>} : vector<32x16xbf16>, vector<16x8xbf16>, vector<32x8xf32> -> vector<32x8xf32>
    %18 = vector.broadcast %16 : vector<32x1xf32> to vector<32x8xf32>
    %19 = arith.addf %17, %18 : vector<32x8xf32>
    %cst_16 = arith.constant 0.000000e+00 : f32
    %20 = vector.broadcast %cst_16 : f32 to vector<32x8xf32>
    %21 = arith.maximumf %19, %20 : vector<32x8xf32>
    %c0_17 = arith.constant 0 : index
    %c0_18 = arith.constant 0 : index
    %c0_19 = arith.constant 0 : index
    %22 = vector.load %arg7[%c0_17, %c0_18, %c0_19] : memref<1x32x8xf32, #tpu.memory_space<vmem>>, vector<1x32x8xf32>
    %23 = vector.shape_cast %22 : vector<1x32x8xf32> to vector<32x8xf32>
    %24 = arith.maximumf %23, %21 : vector<32x8xf32>
    %c0_20 = arith.constant 0 : index
    %c0_21 = arith.constant 0 : index
    %c0_22 = arith.constant 0 : index
    %25 = vector.load %arg7[%c0_20, %c0_21, %c0_22] : memref<1x32x8xf32, #tpu.memory_space<vmem>>, vector<1x32x8xf32>
    %26 = vector.shape_cast %25 : vector<1x32x8xf32> to vector<32x8xf32>
    %27 = vector.shape_cast %24 : vector<32x8xf32> to vector<1x32x8xf32>
    tpu.vector_store %arg7[%c0_20, %c0_21, %c0_22], %27 {strides = array<i32>} : memref<1x32x8xf32, #tpu.memory_space<vmem>>, vector<1x32x8xf32>,
    %c1_i32 = arith.constant 1 : i32
    %c0_23 = arith.constant 0 : index
    %28 = arith.index_cast %c1_i32 : i32 to index
    %c0_24 = arith.constant 0 : index
    %c0_25 = arith.constant 0 : index
    %29 = vector.load %arg2[%c0_23, %28, %c0_24, %c0_25] : memref<1x8x7x8xbf16, #tpu.memory_space<vmem>>, vector<1x1x7x8xbf16>
    %30 = vector.shape_cast %29 : vector<1x1x7x8xbf16> to vector<7x8xbf16>
    %c0_26 = arith.constant 0 : index
    %c0_27 = arith.constant 0 : index
    %31 = vector.load %arg3[%c0_26, %c0_27] : memref<16x7xbf16, #tpu.memory_space<vmem>>, vector<16x7xbf16>
    %c0_28 = arith.constant 0 : index
    %c0_29 = arith.constant 0 : index
    %32 = vector.load %arg4[%c0_28, %c0_29] : memref<16x1xf32, #tpu.memory_space<vmem>>, vector<16x1xf32>
    %cst_30 = arith.constant dense<0.000000e+00> : vector<16x8xf32>
    %33 = tpu.matmul %31, %30, %cst_30 {dimension_numbers = #tpu.dot_dimension_numbers<[1], [0], [0], [1], [0, 0, 1, 1], [], []>} : vector<16x7xbf16>, vector<7x8xbf16>, vector<16x8xf32> -> vector<16x8xf32>
    %34 = vector.broadcast %32 : vector<16x1xf32> to vector<16x8xf32>
    %35 = arith.addf %33, %34 : vector<16x8xf32>
    %cst_31 = arith.constant 0.000000e+00 : f32
    %36 = vector.broadcast %cst_31 : f32 to vector<16x8xf32>
    %37 = arith.maximumf %35, %36 : vector<16x8xf32>
    %38 = arith.truncf %37 : vector<16x8xf32> to vector<16x8xbf16>
    %c0_32 = arith.constant 0 : index
    %c0_33 = arith.constant 0 : index
    %39 = vector.load %arg5[%c0_32, %c0_33] : memref<32x16xbf16, #tpu.memory_space<vmem>>, vector<32x16xbf16>
    %c0_34 = arith.constant 0 : index
    %c0_35 = arith.constant 0 : index
    %40 = vector.load %arg6[%c0_34, %c0_35] : memref<32x1xf32, #tpu.memory_space<vmem>>, vector<32x1xf32>
    %cst_36 = arith.constant dense<0.000000e+00> : vector<32x8xf32>
    %41 = tpu.matmul %39, %38, %cst_36 {dimension_numbers = #tpu.dot_dimension_numbers<[1], [0], [0], [1], [0, 0, 1, 1], [], []>} : vector<32x16xbf16>, vector<16x8xbf16>, vector<32x8xf32> -> vector<32x8xf32>
    %42 = vector.broadcast %40 : vector<32x1xf32> to vector<32x8xf32>
    %43 = arith.addf %41, %42 : vector<32x8xf32>
    %cst_37 = arith.constant 0.000000e+00 : f32
    %44 = vector.broadcast %cst_37 : f32 to vector<32x8xf32>
    %45 = arith.maximumf %43, %44 : vector<32x8xf32>
    %c0_38 = arith.constant 0 : index
    %c0_39 = arith.constant 0 : index
    %c0_40 = arith.constant 0 : index
    %46 = vector.load %arg7[%c0_38, %c0_39, %c0_40] : memref<1x32x8xf32, #tpu.memory_space<vmem>>, vector<1x32x8xf32>
    %47 = vector.shape_cast %46 : vector<1x32x8xf32> to vector<32x8xf32>
    %48 = arith.maximumf %47, %45 : vector<32x8xf32>
    %c0_41 = arith.constant 0 : index
    %c0_42 = arith.constant 0 : index
    %c0_43 = arith.constant 0 : index
    %49 = vector.load %arg7[%c0_41, %c0_42, %c0_43] : memref<1x32x8xf32, #tpu.memory_space<vmem>>, vector<1x32x8xf32>
    %50 = vector.shape_cast %49 : vector<1x32x8xf32> to vector<32x8xf32>
    %51 = vector.shape_cast %48 : vector<32x8xf32> to vector<1x32x8xf32>
    tpu.vector_store %arg7[%c0_41, %c0_42, %c0_43], %51 {strides = array<i32>} : memref<1x32x8xf32, #tpu.memory_space<vmem>>, vector<1x32x8xf32>,
    %c2_i32 = arith.constant 2 : i32
    %c0_44 = arith.constant 0 : index
    %52 = arith.index_cast %c2_i32 : i32 to index
    %c0_45 = arith.constant 0 : index
    %c0_46 = arith.constant 0 : index
    %53 = vector.load %arg2[%c0_44, %52, %c0_45, %c0_46] : memref<1x8x7x8xbf16, #tpu.memory_space<vmem>>, vector<1x1x7x8xbf16>
    %54 = vector.shape_cast %53 : vector<1x1x7x8xbf16> to vector<7x8xbf16>
    %c0_47 = arith.constant 0 : index
    %c0_48 = arith.constant 0 : index
    %55 = vector.load %arg3[%c0_47, %c0_48] : memref<16x7xbf16, #tpu.memory_space<vmem>>, vector<16x7xbf16>
    %c0_49 = arith.constant 0 : index
    %c0_50 = arith.constant 0 : index
    %56 = vector.load %arg4[%c0_49, %c0_50] : memref<16x1xf32, #tpu.memory_space<vmem>>, vector<16x1xf32>
    %cst_51 = arith.constant dense<0.000000e+00> : vector<16x8xf32>
    %57 = tpu.matmul %55, %54, %cst_51 {dimension_numbers = #tpu.dot_dimension_numbers<[1], [0], [0], [1], [0, 0, 1, 1], [], []>} : vector<16x7xbf16>, vector<7x8xbf16>, vector<16x8xf32> -> vector<16x8xf32>
    %58 = vector.broadcast %56 : vector<16x1xf32> to vector<16x8xf32>
    %59 = arith.addf %57, %58 : vector<16x8xf32>
    %cst_52 = arith.constant 0.000000e+00 : f32
    %60 = vector.broadcast %cst_52 : f32 to vector<16x8xf32>
    %61 = arith.maximumf %59, %60 : vector<16x8xf32>
    %62 = arith.truncf %61 : vector<16x8xf32> to vector<16x8xbf16>
    %c0_53 = arith.constant 0 : index
    %c0_54 = arith.constant 0 : index
    %63 = vector.load %arg5[%c0_53, %c0_54] : memref<32x16xbf16, #tpu.memory_space<vmem>>, vector<32x16xbf16>
    %c0_55 = arith.constant 0 : index
    %c0_56 = arith.constant 0 : index
    %64 = vector.load %arg6[%c0_55, %c0_56] : memref<32x1xf32, #tpu.memory_space<vmem>>, vector<32x1xf32>
    %cst_57 = arith.constant dense<0.000000e+00> : vector<32x8xf32>
    %65 = tpu.matmul %63, %62, %cst_57 {dimension_numbers = #tpu.dot_dimension_numbers<[1], [0], [0], [1], [0, 0, 1, 1], [], []>} : vector<32x16xbf16>, vector<16x8xbf16>, vector<32x8xf32> -> vector<32x8xf32>
    %66 = vector.broadcast %64 : vector<32x1xf32> to vector<32x8xf32>
    %67 = arith.addf %65, %66 : vector<32x8xf32>
    %cst_58 = arith.constant 0.000000e+00 : f32
    %68 = vector.broadcast %cst_58 : f32 to vector<32x8xf32>
    %69 = arith.maximumf %67, %68 : vector<32x8xf32>
    %c0_59 = arith.constant 0 : index
    %c0_60 = arith.constant 0 : index
    %c0_61 = arith.constant 0 : index
    %70 = vector.load %arg7[%c0_59, %c0_60, %c0_61] : memref<1x32x8xf32, #tpu.memory_space<vmem>>, vector<1x32x8xf32>
    %71 = vector.shape_cast %70 : vector<1x32x8xf32> to vector<32x8xf32>
    %72 = arith.maximumf %71, %69 : vector<32x8xf32>
    %c0_62 = arith.constant 0 : index
    %c0_63 = arith.constant 0 : index
    %c0_64 = arith.constant 0 : index
    %73 = vector.load %arg7[%c0_62, %c0_63, %c0_64] : memref<1x32x8xf32, #tpu.memory_space<vmem>>, vector<1x32x8xf32>
    %74 = vector.shape_cast %73 : vector<1x32x8xf32> to vector<32x8xf32>
    %75 = vector.shape_cast %72 : vector<32x8xf32> to vector<1x32x8xf32>
    tpu.vector_store %arg7[%c0_62, %c0_63, %c0_64], %75 {strides = array<i32>} : memref<1x32x8xf32, #tpu.memory_space<vmem>>, vector<1x32x8xf32>,
    %c3_i32 = arith.constant 3 : i32
    %c0_65 = arith.constant 0 : index
    %76 = arith.index_cast %c3_i32 : i32 to index
    %c0_66 = arith.constant 0 : index
    %c0_67 = arith.constant 0 : index
    %77 = vector.load %arg2[%c0_65, %76, %c0_66, %c0_67] : memref<1x8x7x8xbf16, #tpu.memory_space<vmem>>, vector<1x1x7x8xbf16>
    %78 = vector.shape_cast %77 : vector<1x1x7x8xbf16> to vector<7x8xbf16>
    %c0_68 = arith.constant 0 : index
    %c0_69 = arith.constant 0 : index
    %79 = vector.load %arg3[%c0_68, %c0_69] : memref<16x7xbf16, #tpu.memory_space<vmem>>, vector<16x7xbf16>
    %c0_70 = arith.constant 0 : index
    %c0_71 = arith.constant 0 : index
    %80 = vector.load %arg4[%c0_70, %c0_71] : memref<16x1xf32, #tpu.memory_space<vmem>>, vector<16x1xf32>
    %cst_72 = arith.constant dense<0.000000e+00> : vector<16x8xf32>
    %81 = tpu.matmul %79, %78, %cst_72 {dimension_numbers = #tpu.dot_dimension_numbers<[1], [0], [0], [1], [0, 0, 1, 1], [], []>} : vector<16x7xbf16>, vector<7x8xbf16>, vector<16x8xf32> -> vector<16x8xf32>
    %82 = vector.broadcast %80 : vector<16x1xf32> to vector<16x8xf32>
    %83 = arith.addf %81, %82 : vector<16x8xf32>
    %cst_73 = arith.constant 0.000000e+00 : f32
    %84 = vector.broadcast %cst_73 : f32 to vector<16x8xf32>
    %85 = arith.maximumf %83, %84 : vector<16x8xf32>
    %86 = arith.truncf %85 : vector<16x8xf32> to vector<16x8xbf16>
    %c0_74 = arith.constant 0 : index
    %c0_75 = arith.constant 0 : index
    %87 = vector.load %arg5[%c0_74, %c0_75] : memref<32x16xbf16, #tpu.memory_space<vmem>>, vector<32x16xbf16>
    %c0_76 = arith.constant 0 : index
    %c0_77 = arith.constant 0 : index
    %88 = vector.load %arg6[%c0_76, %c0_77] : memref<32x1xf32, #tpu.memory_space<vmem>>, vector<32x1xf32>
    %cst_78 = arith.constant dense<0.000000e+00> : vector<32x8xf32>
    %89 = tpu.matmul %87, %86, %cst_78 {dimension_numbers = #tpu.dot_dimension_numbers<[1], [0], [0], [1], [0, 0, 1, 1], [], []>} : vector<32x16xbf16>, vector<16x8xbf16>, vector<32x8xf32> -> vector<32x8xf32>
    %90 = vector.broadcast %88 : vector<32x1xf32> to vector<32x8xf32>
    %91 = arith.addf %89, %90 : vector<32x8xf32>
    %cst_79 = arith.constant 0.000000e+00 : f32
    %92 = vector.broadcast %cst_79 : f32 to vector<32x8xf32>
    %93 = arith.maximumf %91, %92 : vector<32x8xf32>
    %c0_80 = arith.constant 0 : index
    %c0_81 = arith.constant 0 : index
    %c0_82 = arith.constant 0 : index
    %94 = vector.load %arg7[%c0_80, %c0_81, %c0_82] : memref<1x32x8xf32, #tpu.memory_space<vmem>>, vector<1x32x8xf32>
    %95 = vector.shape_cast %94 : vector<1x32x8xf32> to vector<32x8xf32>
    %96 = arith.maximumf %95, %93 : vector<32x8xf32>
    %c0_83 = arith.constant 0 : index
    %c0_84 = arith.constant 0 : index
    %c0_85 = arith.constant 0 : index
    %97 = vector.load %arg7[%c0_83, %c0_84, %c0_85] : memref<1x32x8xf32, #tpu.memory_space<vmem>>, vector<1x32x8xf32>
    %98 = vector.shape_cast %97 : vector<1x32x8xf32> to vector<32x8xf32>
    %99 = vector.shape_cast %96 : vector<32x8xf32> to vector<1x32x8xf32>
    tpu.vector_store %arg7[%c0_83, %c0_84, %c0_85], %99 {strides = array<i32>} : memref<1x32x8xf32, #tpu.memory_space<vmem>>, vector<1x32x8xf32>,
    %c4_i32 = arith.constant 4 : i32
    %c0_86 = arith.constant 0 : index
    %100 = arith.index_cast %c4_i32 : i32 to index
    %c0_87 = arith.constant 0 : index
    %c0_88 = arith.constant 0 : index
    %101 = vector.load %arg2[%c0_86, %100, %c0_87, %c0_88] : memref<1x8x7x8xbf16, #tpu.memory_space<vmem>>, vector<1x1x7x8xbf16>
    %102 = vector.shape_cast %101 : vector<1x1x7x8xbf16> to vector<7x8xbf16>
    %c0_89 = arith.constant 0 : index
    %c0_90 = arith.constant 0 : index
    %103 = vector.load %arg3[%c0_89, %c0_90] : memref<16x7xbf16, #tpu.memory_space<vmem>>, vector<16x7xbf16>
    %c0_91 = arith.constant 0 : index
    %c0_92 = arith.constant 0 : index
    %104 = vector.load %arg4[%c0_91, %c0_92] : memref<16x1xf32, #tpu.memory_space<vmem>>, vector<16x1xf32>
    %cst_93 = arith.constant dense<0.000000e+00> : vector<16x8xf32>
    %105 = tpu.matmul %103, %102, %cst_93 {dimension_numbers = #tpu.dot_dimension_numbers<[1], [0], [0], [1], [0, 0, 1, 1], [], []>} : vector<16x7xbf16>, vector<7x8xbf16>, vector<16x8xf32> -> vector<16x8xf32>
    %106 = vector.broadcast %104 : vector<16x1xf32> to vector<16x8xf32>
    %107 = arith.addf %105, %106 : vector<16x8xf32>
    %cst_94 = arith.constant 0.000000e+00 : f32
    %108 = vector.broadcast %cst_94 : f32 to vector<16x8xf32>
    %109 = arith.maximumf %107, %108 : vector<16x8xf32>
    %110 = arith.truncf %109 : vector<16x8xf32> to vector<16x8xbf16>
    %c0_95 = arith.constant 0 : index
    %c0_96 = arith.constant 0 : index
    %111 = vector.load %arg5[%c0_95, %c0_96] : memref<32x16xbf16, #tpu.memory_space<vmem>>, vector<32x16xbf16>
    %c0_97 = arith.constant 0 : index
    %c0_98 = arith.constant 0 : index
    %112 = vector.load %arg6[%c0_97, %c0_98] : memref<32x1xf32, #tpu.memory_space<vmem>>, vector<32x1xf32>
    %cst_99 = arith.constant dense<0.000000e+00> : vector<32x8xf32>
    %113 = tpu.matmul %111, %110, %cst_99 {dimension_numbers = #tpu.dot_dimension_numbers<[1], [0], [0], [1], [0, 0, 1, 1], [], []>} : vector<32x16xbf16>, vector<16x8xbf16>, vector<32x8xf32> -> vector<32x8xf32>
    %114 = vector.broadcast %112 : vector<32x1xf32> to vector<32x8xf32>
    %115 = arith.addf %113, %114 : vector<32x8xf32>
    %cst_100 = arith.constant 0.000000e+00 : f32
    %116 = vector.broadcast %cst_100 : f32 to vector<32x8xf32>
    %117 = arith.maximumf %115, %116 : vector<32x8xf32>
    %c0_101 = arith.constant 0 : index
    %c0_102 = arith.constant 0 : index
    %c0_103 = arith.constant 0 : index
    %118 = vector.load %arg7[%c0_101, %c0_102, %c0_103] : memref<1x32x8xf32, #tpu.memory_space<vmem>>, vector<1x32x8xf32>
    %119 = vector.shape_cast %118 : vector<1x32x8xf32> to vector<32x8xf32>
    %120 = arith.maximumf %119, %117 : vector<32x8xf32>
    %c0_104 = arith.constant 0 : index
    %c0_105 = arith.constant 0 : index
    %c0_106 = arith.constant 0 : index
    %121 = vector.load %arg7[%c0_104, %c0_105, %c0_106] : memref<1x32x8xf32, #tpu.memory_space<vmem>>, vector<1x32x8xf32>
    %122 = vector.shape_cast %121 : vector<1x32x8xf32> to vector<32x8xf32>
    %123 = vector.shape_cast %120 : vector<32x8xf32> to vector<1x32x8xf32>
    tpu.vector_store %arg7[%c0_104, %c0_105, %c0_106], %123 {strides = array<i32>} : memref<1x32x8xf32, #tpu.memory_space<vmem>>, vector<1x32x8xf32>,
    %c5_i32 = arith.constant 5 : i32
    %c0_107 = arith.constant 0 : index
    %124 = arith.index_cast %c5_i32 : i32 to index
    %c0_108 = arith.constant 0 : index
    %c0_109 = arith.constant 0 : index
    %125 = vector.load %arg2[%c0_107, %124, %c0_108, %c0_109] : memref<1x8x7x8xbf16, #tpu.memory_space<vmem>>, vector<1x1x7x8xbf16>
    %126 = vector.shape_cast %125 : vector<1x1x7x8xbf16> to vector<7x8xbf16>
    %c0_110 = arith.constant 0 : index
    %c0_111 = arith.constant 0 : index
    %127 = vector.load %arg3[%c0_110, %c0_111] : memref<16x7xbf16, #tpu.memory_space<vmem>>, vector<16x7xbf16>
    %c0_112 = arith.constant 0 : index
    %c0_113 = arith.constant 0 : index
    %128 = vector.load %arg4[%c0_112, %c0_113] : memref<16x1xf32, #tpu.memory_space<vmem>>, vector<16x1xf32>
    %cst_114 = arith.constant dense<0.000000e+00> : vector<16x8xf32>
    %129 = tpu.matmul %127, %126, %cst_114 {dimension_numbers = #tpu.dot_dimension_numbers<[1], [0], [0], [1], [0, 0, 1, 1], [], []>} : vector<16x7xbf16>, vector<7x8xbf16>, vector<16x8xf32> -> vector<16x8xf32>
    %130 = vector.broadcast %128 : vector<16x1xf32> to vector<16x8xf32>
    %131 = arith.addf %129, %130 : vector<16x8xf32>
    %cst_115 = arith.constant 0.000000e+00 : f32
    %132 = vector.broadcast %cst_115 : f32 to vector<16x8xf32>
    %133 = arith.maximumf %131, %132 : vector<16x8xf32>
    %134 = arith.truncf %133 : vector<16x8xf32> to vector<16x8xbf16>
    %c0_116 = arith.constant 0 : index
    %c0_117 = arith.constant 0 : index
    %135 = vector.load %arg5[%c0_116, %c0_117] : memref<32x16xbf16, #tpu.memory_space<vmem>>, vector<32x16xbf16>
    %c0_118 = arith.constant 0 : index
    %c0_119 = arith.constant 0 : index
    %136 = vector.load %arg6[%c0_118, %c0_119] : memref<32x1xf32, #tpu.memory_space<vmem>>, vector<32x1xf32>
    %cst_120 = arith.constant dense<0.000000e+00> : vector<32x8xf32>
    %137 = tpu.matmul %135, %134, %cst_120 {dimension_numbers = #tpu.dot_dimension_numbers<[1], [0], [0], [1], [0, 0, 1, 1], [], []>} : vector<32x16xbf16>, vector<16x8xbf16>, vector<32x8xf32> -> vector<32x8xf32>
    %138 = vector.broadcast %136 : vector<32x1xf32> to vector<32x8xf32>
    %139 = arith.addf %137, %138 : vector<32x8xf32>
    %cst_121 = arith.constant 0.000000e+00 : f32
    %140 = vector.broadcast %cst_121 : f32 to vector<32x8xf32>
    %141 = arith.maximumf %139, %140 : vector<32x8xf32>
    %c0_122 = arith.constant 0 : index
    %c0_123 = arith.constant 0 : index
    %c0_124 = arith.constant 0 : index
    %142 = vector.load %arg7[%c0_122, %c0_123, %c0_124] : memref<1x32x8xf32, #tpu.memory_space<vmem>>, vector<1x32x8xf32>
    %143 = vector.shape_cast %142 : vector<1x32x8xf32> to vector<32x8xf32>
    %144 = arith.maximumf %143, %141 : vector<32x8xf32>
    %c0_125 = arith.constant 0 : index
    %c0_126 = arith.constant 0 : index
    %c0_127 = arith.constant 0 : index
    %145 = vector.load %arg7[%c0_125, %c0_126, %c0_127] : memref<1x32x8xf32, #tpu.memory_space<vmem>>, vector<1x32x8xf32>
    %146 = vector.shape_cast %145 : vector<1x32x8xf32> to vector<32x8xf32>
    %147 = vector.shape_cast %144 : vector<32x8xf32> to vector<1x32x8xf32>
    tpu.vector_store %arg7[%c0_125, %c0_126, %c0_127], %147 {strides = array<i32>} : memref<1x32x8xf32, #tpu.memory_space<vmem>>, vector<1x32x8xf32>,
    %c6_i32 = arith.constant 6 : i32
    %c0_128 = arith.constant 0 : index
    %148 = arith.index_cast %c6_i32 : i32 to index
    %c0_129 = arith.constant 0 : index
    %c0_130 = arith.constant 0 : index
    %149 = vector.load %arg2[%c0_128, %148, %c0_129, %c0_130] : memref<1x8x7x8xbf16, #tpu.memory_space<vmem>>, vector<1x1x7x8xbf16>
    %150 = vector.shape_cast %149 : vector<1x1x7x8xbf16> to vector<7x8xbf16>
    %c0_131 = arith.constant 0 : index
    %c0_132 = arith.constant 0 : index
    %151 = vector.load %arg3[%c0_131, %c0_132] : memref<16x7xbf16, #tpu.memory_space<vmem>>, vector<16x7xbf16>
    %c0_133 = arith.constant 0 : index
    %c0_134 = arith.constant 0 : index
    %152 = vector.load %arg4[%c0_133, %c0_134] : memref<16x1xf32, #tpu.memory_space<vmem>>, vector<16x1xf32>
    %cst_135 = arith.constant dense<0.000000e+00> : vector<16x8xf32>
    %153 = tpu.matmul %151, %150, %cst_135 {dimension_numbers = #tpu.dot_dimension_numbers<[1], [0], [0], [1], [0, 0, 1, 1], [], []>} : vector<16x7xbf16>, vector<7x8xbf16>, vector<16x8xf32> -> vector<16x8xf32>
    %154 = vector.broadcast %152 : vector<16x1xf32> to vector<16x8xf32>
    %155 = arith.addf %153, %154 : vector<16x8xf32>
    %cst_136 = arith.constant 0.000000e+00 : f32
    %156 = vector.broadcast %cst_136 : f32 to vector<16x8xf32>
    %157 = arith.maximumf %155, %156 : vector<16x8xf32>
    %158 = arith.truncf %157 : vector<16x8xf32> to vector<16x8xbf16>
    %c0_137 = arith.constant 0 : index
    %c0_138 = arith.constant 0 : index
    %159 = vector.load %arg5[%c0_137, %c0_138] : memref<32x16xbf16, #tpu.memory_space<vmem>>, vector<32x16xbf16>
    %c0_139 = arith.constant 0 : index
    %c0_140 = arith.constant 0 : index
    %160 = vector.load %arg6[%c0_139, %c0_140] : memref<32x1xf32, #tpu.memory_space<vmem>>, vector<32x1xf32>
    %cst_141 = arith.constant dense<0.000000e+00> : vector<32x8xf32>
    %161 = tpu.matmul %159, %158, %cst_141 {dimension_numbers = #tpu.dot_dimension_numbers<[1], [0], [0], [1], [0, 0, 1, 1], [], []>} : vector<32x16xbf16>, vector<16x8xbf16>, vector<32x8xf32> -> vector<32x8xf32>
    %162 = vector.broadcast %160 : vector<32x1xf32> to vector<32x8xf32>
    %163 = arith.addf %161, %162 : vector<32x8xf32>
    %cst_142 = arith.constant 0.000000e+00 : f32
    %164 = vector.broadcast %cst_142 : f32 to vector<32x8xf32>
    %165 = arith.maximumf %163, %164 : vector<32x8xf32>
    %c0_143 = arith.constant 0 : index
    %c0_144 = arith.constant 0 : index
    %c0_145 = arith.constant 0 : index
    %166 = vector.load %arg7[%c0_143, %c0_144, %c0_145] : memref<1x32x8xf32, #tpu.memory_space<vmem>>, vector<1x32x8xf32>
    %167 = vector.shape_cast %166 : vector<1x32x8xf32> to vector<32x8xf32>
    %168 = arith.maximumf %167, %165 : vector<32x8xf32>
    %c0_146 = arith.constant 0 : index
    %c0_147 = arith.constant 0 : index
    %c0_148 = arith.constant 0 : index
    %169 = vector.load %arg7[%c0_146, %c0_147, %c0_148] : memref<1x32x8xf32, #tpu.memory_space<vmem>>, vector<1x32x8xf32>
    %170 = vector.shape_cast %169 : vector<1x32x8xf32> to vector<32x8xf32>
    %171 = vector.shape_cast %168 : vector<32x8xf32> to vector<1x32x8xf32>
    tpu.vector_store %arg7[%c0_146, %c0_147, %c0_148], %171 {strides = array<i32>} : memref<1x32x8xf32, #tpu.memory_space<vmem>>, vector<1x32x8xf32>,
    %c7_i32 = arith.constant 7 : i32
    %c0_149 = arith.constant 0 : index
    %172 = arith.index_cast %c7_i32 : i32 to index
    %c0_150 = arith.constant 0 : index
    %c0_151 = arith.constant 0 : index
    %173 = vector.load %arg2[%c0_149, %172, %c0_150, %c0_151] : memref<1x8x7x8xbf16, #tpu.memory_space<vmem>>, vector<1x1x7x8xbf16>
    %174 = vector.shape_cast %173 : vector<1x1x7x8xbf16> to vector<7x8xbf16>
    %c0_152 = arith.constant 0 : index
    %c0_153 = arith.constant 0 : index
    %175 = vector.load %arg3[%c0_152, %c0_153] : memref<16x7xbf16, #tpu.memory_space<vmem>>, vector<16x7xbf16>
    %c0_154 = arith.constant 0 : index
    %c0_155 = arith.constant 0 : index
    %176 = vector.load %arg4[%c0_154, %c0_155] : memref<16x1xf32, #tpu.memory_space<vmem>>, vector<16x1xf32>
    %cst_156 = arith.constant dense<0.000000e+00> : vector<16x8xf32>
    %177 = tpu.matmul %175, %174, %cst_156 {dimension_numbers = #tpu.dot_dimension_numbers<[1], [0], [0], [1], [0, 0, 1, 1], [], []>} : vector<16x7xbf16>, vector<7x8xbf16>, vector<16x8xf32> -> vector<16x8xf32>
    %178 = vector.broadcast %176 : vector<16x1xf32> to vector<16x8xf32>
    %179 = arith.addf %177, %178 : vector<16x8xf32>
    %cst_157 = arith.constant 0.000000e+00 : f32
    %180 = vector.broadcast %cst_157 : f32 to vector<16x8xf32>
    %181 = arith.maximumf %179, %180 : vector<16x8xf32>
    %182 = arith.truncf %181 : vector<16x8xf32> to vector<16x8xbf16>
    %c0_158 = arith.constant 0 : index
    %c0_159 = arith.constant 0 : index
    %183 = vector.load %arg5[%c0_158, %c0_159] : memref<32x16xbf16, #tpu.memory_space<vmem>>, vector<32x16xbf16>
    %c0_160 = arith.constant 0 : index
    %c0_161 = arith.constant 0 : index
    %184 = vector.load %arg6[%c0_160, %c0_161] : memref<32x1xf32, #tpu.memory_space<vmem>>, vector<32x1xf32>
    %cst_162 = arith.constant dense<0.000000e+00> : vector<32x8xf32>
    %185 = tpu.matmul %183, %182, %cst_162 {dimension_numbers = #tpu.dot_dimension_numbers<[1], [0], [0], [1], [0, 0, 1, 1], [], []>} : vector<32x16xbf16>, vector<16x8xbf16>, vector<32x8xf32> -> vector<32x8xf32>
    %186 = vector.broadcast %184 : vector<32x1xf32> to vector<32x8xf32>
    %187 = arith.addf %185, %186 : vector<32x8xf32>
    %cst_163 = arith.constant 0.000000e+00 : f32
    %188 = vector.broadcast %cst_163 : f32 to vector<32x8xf32>
    %189 = arith.maximumf %187, %188 : vector<32x8xf32>
    %c0_164 = arith.constant 0 : index
    %c0_165 = arith.constant 0 : index
    %c0_166 = arith.constant 0 : index
    %190 = vector.load %arg7[%c0_164, %c0_165, %c0_166] : memref<1x32x8xf32, #tpu.memory_space<vmem>>, vector<1x32x8xf32>
    %191 = vector.shape_cast %190 : vector<1x32x8xf32> to vector<32x8xf32>
    %192 = arith.maximumf %191, %189 : vector<32x8xf32>
    %c0_167 = arith.constant 0 : index
    %c0_168 = arith.constant 0 : index
    %c0_169 = arith.constant 0 : index
    %193 = vector.load %arg7[%c0_167, %c0_168, %c0_169] : memref<1x32x8xf32, #tpu.memory_space<vmem>>, vector<1x32x8xf32>
    %194 = vector.shape_cast %193 : vector<1x32x8xf32> to vector<32x8xf32>
    %195 = vector.shape_cast %192 : vector<32x8xf32> to vector<1x32x8xf32>
    tpu.vector_store %arg7[%c0_167, %c0_168, %c0_169], %195 {strides = array<i32>} : memref<1x32x8xf32, #tpu.memory_space<vmem>>, vector<1x32x8xf32>,
    %c8_i32 = arith.constant 8 : i32
    return
  }
  func.func @transform_0(%arg0: i32, %arg1: i32) -> (i32, i32, i32, i32) {
    %c0_i32 = arith.constant 0 : i32
    %c0_i32_0 = arith.constant 0 : i32
    %c0_i32_1 = arith.constant 0 : i32
    return %arg0, %c0_i32, %c0_i32_0, %arg1 : i32, i32, i32, i32
  }
  func.func @transform_1(%arg0: i32, %arg1: i32) -> (i32, i32) {
    %c0_i32 = arith.constant 0 : i32
    %c0_i32_0 = arith.constant 0 : i32
    %c0_i32_1 = arith.constant 0 : i32
    return %c0_i32, %c0_i32_0 : i32, i32
  }
  func.func @transform_2(%arg0: i32, %arg1: i32) -> (i32, i32) {
    %c0_i32 = arith.constant 0 : i32
    %c0_i32_0 = arith.constant 0 : i32
    %c0_i32_1 = arith.constant 0 : i32
    return %c0_i32, %c0_i32_0 : i32, i32
  }
  func.func @transform_3(%arg0: i32, %arg1: i32) -> (i32, i32) {
    %c0_i32 = arith.constant 0 : i32
    %c0_i32_0 = arith.constant 0 : i32
    %c0_i32_1 = arith.constant 0 : i32
    return %c0_i32, %c0_i32_0 : i32, i32
  }
  func.func @transform_4(%arg0: i32, %arg1: i32) -> (i32, i32) {
    %c0_i32 = arith.constant 0 : i32
    %c0_i32_0 = arith.constant 0 : i32
    %c0_i32_1 = arith.constant 0 : i32
    return %c0_i32, %c0_i32_0 : i32, i32
  }
  func.func @transform_5(%arg0: i32, %arg1: i32) -> (i32, i32, i32) {
    %c0_i32 = arith.constant 0 : i32
    %c0_i32_0 = arith.constant 0 : i32
    return %arg0, %c0_i32, %arg1 : i32, i32, i32
  }
}

module attributes {stable_mosaic.version = 11 : i64} {
  func.func @kernel(%arg0: i32, %arg1: i32, %arg2: memref<1x16x7x8xbf16, #tpu.memory_space<vmem>>, %arg3: memref<32x7xbf16, #tpu.memory_space<vmem>>, %arg4: memref<32x1xf32, #tpu.memory_space<vmem>>, %arg5: memref<64x32xbf16, #tpu.memory_space<vmem>>, %arg6: memref<64x1xf32, #tpu.memory_space<vmem>>, %arg7: memref<1x64x8xf32, #tpu.memory_space<vmem>>) attributes {dimension_semantics = [#tpu.dimension_semantics<parallel>, #tpu.dimension_semantics<parallel>], iteration_bounds = array<i64: 2, 1>, scalar_prefetch = 0 : i64, scratch_operands = 0 : i64, tpu.core_type = #tpu.core_type<tc>, window_params = [{transform_indices = @transform_0, window_bounds = array<i64: 1, 16, 7, 8>}, {pipeline_mode = #tpu.pipeline_mode<synchronous>, transform_indices = @transform_1, window_bounds = array<i64: 32, 7>}, {pipeline_mode = #tpu.pipeline_mode<synchronous>, transform_indices = @transform_2, window_bounds = array<i64: 32, 1>}, {pipeline_mode = #tpu.pipeline_mode<synchronous>, transform_indices = @transform_3, window_bounds = array<i64: 64, 32>}, {pipeline_mode = #tpu.pipeline_mode<synchronous>, transform_indices = @transform_4, window_bounds = array<i64: 64, 1>}, {transform_indices = @transform_5, window_bounds = array<i64: 1, 64, 8>}]} {
    %cst = arith.constant 0xFF800000 : f32
    %0 = vector.broadcast %cst : f32 to vector<64x8xf32>
    %c0 = arith.constant 0 : index
    %c0_0 = arith.constant 0 : index
    %c0_1 = arith.constant 0 : index
    %1 = vector.load %arg7[%c0, %c0_0, %c0_1] : memref<1x64x8xf32, #tpu.memory_space<vmem>>, vector<1x64x8xf32>
    %2 = vector.shape_cast %1 : vector<1x64x8xf32> to vector<64x8xf32>
    %3 = vector.shape_cast %0 : vector<64x8xf32> to vector<1x64x8xf32>
    tpu.vector_store %arg7[%c0, %c0_0, %c0_1], %3 {strides = array<i32>} : memref<1x64x8xf32, #tpu.memory_space<vmem>>, vector<1x64x8xf32>,
    %c0_i32 = arith.constant 0 : i32
    %c0_2 = arith.constant 0 : index
    %4 = arith.index_cast %c0_i32 : i32 to index
    %c0_3 = arith.constant 0 : index
    %c0_4 = arith.constant 0 : index
    %5 = vector.load %arg2[%c0_2, %4, %c0_3, %c0_4] : memref<1x16x7x8xbf16, #tpu.memory_space<vmem>>, vector<1x1x7x8xbf16>
    %6 = vector.shape_cast %5 : vector<1x1x7x8xbf16> to vector<7x8xbf16>
    %c0_5 = arith.constant 0 : index
    %c0_6 = arith.constant 0 : index
    %7 = vector.load %arg3[%c0_5, %c0_6] : memref<32x7xbf16, #tpu.memory_space<vmem>>, vector<32x7xbf16>
    %c0_7 = arith.constant 0 : index
    %c0_8 = arith.constant 0 : index
    %8 = vector.load %arg4[%c0_7, %c0_8] : memref<32x1xf32, #tpu.memory_space<vmem>>, vector<32x1xf32>
    %cst_9 = arith.constant dense<0.000000e+00> : vector<32x8xf32>
    %9 = tpu.matmul %7, %6, %cst_9 {dimension_numbers = #tpu.dot_dimension_numbers<[1], [0], [0], [1], [0, 0, 1, 1], [], []>} : vector<32x7xbf16>, vector<7x8xbf16>, vector<32x8xf32> -> vector<32x8xf32>
    %10 = vector.broadcast %8 : vector<32x1xf32> to vector<32x8xf32>
    %11 = arith.addf %9, %10 : vector<32x8xf32>
    %cst_10 = arith.constant 0.000000e+00 : f32
    %12 = vector.broadcast %cst_10 : f32 to vector<32x8xf32>
    %13 = arith.maximumf %11, %12 : vector<32x8xf32>
    %14 = arith.truncf %13 : vector<32x8xf32> to vector<32x8xbf16>
    %c0_11 = arith.constant 0 : index
    %c0_12 = arith.constant 0 : index
    %15 = vector.load %arg5[%c0_11, %c0_12] : memref<64x32xbf16, #tpu.memory_space<vmem>>, vector<64x32xbf16>
    %c0_13 = arith.constant 0 : index
    %c0_14 = arith.constant 0 : index
    %16 = vector.load %arg6[%c0_13, %c0_14] : memref<64x1xf32, #tpu.memory_space<vmem>>, vector<64x1xf32>
    %cst_15 = arith.constant dense<0.000000e+00> : vector<64x8xf32>
    %17 = tpu.matmul %15, %14, %cst_15 {dimension_numbers = #tpu.dot_dimension_numbers<[1], [0], [0], [1], [0, 0, 1, 1], [], []>} : vector<64x32xbf16>, vector<32x8xbf16>, vector<64x8xf32> -> vector<64x8xf32>
    %18 = vector.broadcast %16 : vector<64x1xf32> to vector<64x8xf32>
    %19 = arith.addf %17, %18 : vector<64x8xf32>
    %cst_16 = arith.constant 0.000000e+00 : f32
    %20 = vector.broadcast %cst_16 : f32 to vector<64x8xf32>
    %21 = arith.maximumf %19, %20 : vector<64x8xf32>
    %c0_17 = arith.constant 0 : index
    %c0_18 = arith.constant 0 : index
    %c0_19 = arith.constant 0 : index
    %22 = vector.load %arg7[%c0_17, %c0_18, %c0_19] : memref<1x64x8xf32, #tpu.memory_space<vmem>>, vector<1x64x8xf32>
    %23 = vector.shape_cast %22 : vector<1x64x8xf32> to vector<64x8xf32>
    %24 = arith.maximumf %23, %21 : vector<64x8xf32>
    %c0_20 = arith.constant 0 : index
    %c0_21 = arith.constant 0 : index
    %c0_22 = arith.constant 0 : index
    %25 = vector.load %arg7[%c0_20, %c0_21, %c0_22] : memref<1x64x8xf32, #tpu.memory_space<vmem>>, vector<1x64x8xf32>
    %26 = vector.shape_cast %25 : vector<1x64x8xf32> to vector<64x8xf32>
    %27 = vector.shape_cast %24 : vector<64x8xf32> to vector<1x64x8xf32>
    tpu.vector_store %arg7[%c0_20, %c0_21, %c0_22], %27 {strides = array<i32>} : memref<1x64x8xf32, #tpu.memory_space<vmem>>, vector<1x64x8xf32>,
    %c1_i32 = arith.constant 1 : i32
    %c0_23 = arith.constant 0 : index
    %28 = arith.index_cast %c1_i32 : i32 to index
    %c0_24 = arith.constant 0 : index
    %c0_25 = arith.constant 0 : index
    %29 = vector.load %arg2[%c0_23, %28, %c0_24, %c0_25] : memref<1x16x7x8xbf16, #tpu.memory_space<vmem>>, vector<1x1x7x8xbf16>
    %30 = vector.shape_cast %29 : vector<1x1x7x8xbf16> to vector<7x8xbf16>
    %c0_26 = arith.constant 0 : index
    %c0_27 = arith.constant 0 : index
    %31 = vector.load %arg3[%c0_26, %c0_27] : memref<32x7xbf16, #tpu.memory_space<vmem>>, vector<32x7xbf16>
    %c0_28 = arith.constant 0 : index
    %c0_29 = arith.constant 0 : index
    %32 = vector.load %arg4[%c0_28, %c0_29] : memref<32x1xf32, #tpu.memory_space<vmem>>, vector<32x1xf32>
    %cst_30 = arith.constant dense<0.000000e+00> : vector<32x8xf32>
    %33 = tpu.matmul %31, %30, %cst_30 {dimension_numbers = #tpu.dot_dimension_numbers<[1], [0], [0], [1], [0, 0, 1, 1], [], []>} : vector<32x7xbf16>, vector<7x8xbf16>, vector<32x8xf32> -> vector<32x8xf32>
    %34 = vector.broadcast %32 : vector<32x1xf32> to vector<32x8xf32>
    %35 = arith.addf %33, %34 : vector<32x8xf32>
    %cst_31 = arith.constant 0.000000e+00 : f32
    %36 = vector.broadcast %cst_31 : f32 to vector<32x8xf32>
    %37 = arith.maximumf %35, %36 : vector<32x8xf32>
    %38 = arith.truncf %37 : vector<32x8xf32> to vector<32x8xbf16>
    %c0_32 = arith.constant 0 : index
    %c0_33 = arith.constant 0 : index
    %39 = vector.load %arg5[%c0_32, %c0_33] : memref<64x32xbf16, #tpu.memory_space<vmem>>, vector<64x32xbf16>
    %c0_34 = arith.constant 0 : index
    %c0_35 = arith.constant 0 : index
    %40 = vector.load %arg6[%c0_34, %c0_35] : memref<64x1xf32, #tpu.memory_space<vmem>>, vector<64x1xf32>
    %cst_36 = arith.constant dense<0.000000e+00> : vector<64x8xf32>
    %41 = tpu.matmul %39, %38, %cst_36 {dimension_numbers = #tpu.dot_dimension_numbers<[1], [0], [0], [1], [0, 0, 1, 1], [], []>} : vector<64x32xbf16>, vector<32x8xbf16>, vector<64x8xf32> -> vector<64x8xf32>
    %42 = vector.broadcast %40 : vector<64x1xf32> to vector<64x8xf32>
    %43 = arith.addf %41, %42 : vector<64x8xf32>
    %cst_37 = arith.constant 0.000000e+00 : f32
    %44 = vector.broadcast %cst_37 : f32 to vector<64x8xf32>
    %45 = arith.maximumf %43, %44 : vector<64x8xf32>
    %c0_38 = arith.constant 0 : index
    %c0_39 = arith.constant 0 : index
    %c0_40 = arith.constant 0 : index
    %46 = vector.load %arg7[%c0_38, %c0_39, %c0_40] : memref<1x64x8xf32, #tpu.memory_space<vmem>>, vector<1x64x8xf32>
    %47 = vector.shape_cast %46 : vector<1x64x8xf32> to vector<64x8xf32>
    %48 = arith.maximumf %47, %45 : vector<64x8xf32>
    %c0_41 = arith.constant 0 : index
    %c0_42 = arith.constant 0 : index
    %c0_43 = arith.constant 0 : index
    %49 = vector.load %arg7[%c0_41, %c0_42, %c0_43] : memref<1x64x8xf32, #tpu.memory_space<vmem>>, vector<1x64x8xf32>
    %50 = vector.shape_cast %49 : vector<1x64x8xf32> to vector<64x8xf32>
    %51 = vector.shape_cast %48 : vector<64x8xf32> to vector<1x64x8xf32>
    tpu.vector_store %arg7[%c0_41, %c0_42, %c0_43], %51 {strides = array<i32>} : memref<1x64x8xf32, #tpu.memory_space<vmem>>, vector<1x64x8xf32>,
    %c2_i32 = arith.constant 2 : i32
    %c0_44 = arith.constant 0 : index
    %52 = arith.index_cast %c2_i32 : i32 to index
    %c0_45 = arith.constant 0 : index
    %c0_46 = arith.constant 0 : index
    %53 = vector.load %arg2[%c0_44, %52, %c0_45, %c0_46] : memref<1x16x7x8xbf16, #tpu.memory_space<vmem>>, vector<1x1x7x8xbf16>
    %54 = vector.shape_cast %53 : vector<1x1x7x8xbf16> to vector<7x8xbf16>
    %c0_47 = arith.constant 0 : index
    %c0_48 = arith.constant 0 : index
    %55 = vector.load %arg3[%c0_47, %c0_48] : memref<32x7xbf16, #tpu.memory_space<vmem>>, vector<32x7xbf16>
    %c0_49 = arith.constant 0 : index
    %c0_50 = arith.constant 0 : index
    %56 = vector.load %arg4[%c0_49, %c0_50] : memref<32x1xf32, #tpu.memory_space<vmem>>, vector<32x1xf32>
    %cst_51 = arith.constant dense<0.000000e+00> : vector<32x8xf32>
    %57 = tpu.matmul %55, %54, %cst_51 {dimension_numbers = #tpu.dot_dimension_numbers<[1], [0], [0], [1], [0, 0, 1, 1], [], []>} : vector<32x7xbf16>, vector<7x8xbf16>, vector<32x8xf32> -> vector<32x8xf32>
    %58 = vector.broadcast %56 : vector<32x1xf32> to vector<32x8xf32>
    %59 = arith.addf %57, %58 : vector<32x8xf32>
    %cst_52 = arith.constant 0.000000e+00 : f32
    %60 = vector.broadcast %cst_52 : f32 to vector<32x8xf32>
    %61 = arith.maximumf %59, %60 : vector<32x8xf32>
    %62 = arith.truncf %61 : vector<32x8xf32> to vector<32x8xbf16>
    %c0_53 = arith.constant 0 : index
    %c0_54 = arith.constant 0 : index
    %63 = vector.load %arg5[%c0_53, %c0_54] : memref<64x32xbf16, #tpu.memory_space<vmem>>, vector<64x32xbf16>
    %c0_55 = arith.constant 0 : index
    %c0_56 = arith.constant 0 : index
    %64 = vector.load %arg6[%c0_55, %c0_56] : memref<64x1xf32, #tpu.memory_space<vmem>>, vector<64x1xf32>
    %cst_57 = arith.constant dense<0.000000e+00> : vector<64x8xf32>
    %65 = tpu.matmul %63, %62, %cst_57 {dimension_numbers = #tpu.dot_dimension_numbers<[1], [0], [0], [1], [0, 0, 1, 1], [], []>} : vector<64x32xbf16>, vector<32x8xbf16>, vector<64x8xf32> -> vector<64x8xf32>
    %66 = vector.broadcast %64 : vector<64x1xf32> to vector<64x8xf32>
    %67 = arith.addf %65, %66 : vector<64x8xf32>
    %cst_58 = arith.constant 0.000000e+00 : f32
    %68 = vector.broadcast %cst_58 : f32 to vector<64x8xf32>
    %69 = arith.maximumf %67, %68 : vector<64x8xf32>
    %c0_59 = arith.constant 0 : index
    %c0_60 = arith.constant 0 : index
    %c0_61 = arith.constant 0 : index
    %70 = vector.load %arg7[%c0_59, %c0_60, %c0_61] : memref<1x64x8xf32, #tpu.memory_space<vmem>>, vector<1x64x8xf32>
    %71 = vector.shape_cast %70 : vector<1x64x8xf32> to vector<64x8xf32>
    %72 = arith.maximumf %71, %69 : vector<64x8xf32>
    %c0_62 = arith.constant 0 : index
    %c0_63 = arith.constant 0 : index
    %c0_64 = arith.constant 0 : index
    %73 = vector.load %arg7[%c0_62, %c0_63, %c0_64] : memref<1x64x8xf32, #tpu.memory_space<vmem>>, vector<1x64x8xf32>
    %74 = vector.shape_cast %73 : vector<1x64x8xf32> to vector<64x8xf32>
    %75 = vector.shape_cast %72 : vector<64x8xf32> to vector<1x64x8xf32>
    tpu.vector_store %arg7[%c0_62, %c0_63, %c0_64], %75 {strides = array<i32>} : memref<1x64x8xf32, #tpu.memory_space<vmem>>, vector<1x64x8xf32>,
    %c3_i32 = arith.constant 3 : i32
    %c0_65 = arith.constant 0 : index
    %76 = arith.index_cast %c3_i32 : i32 to index
    %c0_66 = arith.constant 0 : index
    %c0_67 = arith.constant 0 : index
    %77 = vector.load %arg2[%c0_65, %76, %c0_66, %c0_67] : memref<1x16x7x8xbf16, #tpu.memory_space<vmem>>, vector<1x1x7x8xbf16>
    %78 = vector.shape_cast %77 : vector<1x1x7x8xbf16> to vector<7x8xbf16>
    %c0_68 = arith.constant 0 : index
    %c0_69 = arith.constant 0 : index
    %79 = vector.load %arg3[%c0_68, %c0_69] : memref<32x7xbf16, #tpu.memory_space<vmem>>, vector<32x7xbf16>
    %c0_70 = arith.constant 0 : index
    %c0_71 = arith.constant 0 : index
    %80 = vector.load %arg4[%c0_70, %c0_71] : memref<32x1xf32, #tpu.memory_space<vmem>>, vector<32x1xf32>
    %cst_72 = arith.constant dense<0.000000e+00> : vector<32x8xf32>
    %81 = tpu.matmul %79, %78, %cst_72 {dimension_numbers = #tpu.dot_dimension_numbers<[1], [0], [0], [1], [0, 0, 1, 1], [], []>} : vector<32x7xbf16>, vector<7x8xbf16>, vector<32x8xf32> -> vector<32x8xf32>
    %82 = vector.broadcast %80 : vector<32x1xf32> to vector<32x8xf32>
    %83 = arith.addf %81, %82 : vector<32x8xf32>
    %cst_73 = arith.constant 0.000000e+00 : f32
    %84 = vector.broadcast %cst_73 : f32 to vector<32x8xf32>
    %85 = arith.maximumf %83, %84 : vector<32x8xf32>
    %86 = arith.truncf %85 : vector<32x8xf32> to vector<32x8xbf16>
    %c0_74 = arith.constant 0 : index
    %c0_75 = arith.constant 0 : index
    %87 = vector.load %arg5[%c0_74, %c0_75] : memref<64x32xbf16, #tpu.memory_space<vmem>>, vector<64x32xbf16>
    %c0_76 = arith.constant 0 : index
    %c0_77 = arith.constant 0 : index
    %88 = vector.load %arg6[%c0_76, %c0_77] : memref<64x1xf32, #tpu.memory_space<vmem>>, vector<64x1xf32>
    %cst_78 = arith.constant dense<0.000000e+00> : vector<64x8xf32>
    %89 = tpu.matmul %87, %86, %cst_78 {dimension_numbers = #tpu.dot_dimension_numbers<[1], [0], [0], [1], [0, 0, 1, 1], [], []>} : vector<64x32xbf16>, vector<32x8xbf16>, vector<64x8xf32> -> vector<64x8xf32>
    %90 = vector.broadcast %88 : vector<64x1xf32> to vector<64x8xf32>
    %91 = arith.addf %89, %90 : vector<64x8xf32>
    %cst_79 = arith.constant 0.000000e+00 : f32
    %92 = vector.broadcast %cst_79 : f32 to vector<64x8xf32>
    %93 = arith.maximumf %91, %92 : vector<64x8xf32>
    %c0_80 = arith.constant 0 : index
    %c0_81 = arith.constant 0 : index
    %c0_82 = arith.constant 0 : index
    %94 = vector.load %arg7[%c0_80, %c0_81, %c0_82] : memref<1x64x8xf32, #tpu.memory_space<vmem>>, vector<1x64x8xf32>
    %95 = vector.shape_cast %94 : vector<1x64x8xf32> to vector<64x8xf32>
    %96 = arith.maximumf %95, %93 : vector<64x8xf32>
    %c0_83 = arith.constant 0 : index
    %c0_84 = arith.constant 0 : index
    %c0_85 = arith.constant 0 : index
    %97 = vector.load %arg7[%c0_83, %c0_84, %c0_85] : memref<1x64x8xf32, #tpu.memory_space<vmem>>, vector<1x64x8xf32>
    %98 = vector.shape_cast %97 : vector<1x64x8xf32> to vector<64x8xf32>
    %99 = vector.shape_cast %96 : vector<64x8xf32> to vector<1x64x8xf32>
    tpu.vector_store %arg7[%c0_83, %c0_84, %c0_85], %99 {strides = array<i32>} : memref<1x64x8xf32, #tpu.memory_space<vmem>>, vector<1x64x8xf32>,
    %c4_i32 = arith.constant 4 : i32
    %c0_86 = arith.constant 0 : index
    %100 = arith.index_cast %c4_i32 : i32 to index
    %c0_87 = arith.constant 0 : index
    %c0_88 = arith.constant 0 : index
    %101 = vector.load %arg2[%c0_86, %100, %c0_87, %c0_88] : memref<1x16x7x8xbf16, #tpu.memory_space<vmem>>, vector<1x1x7x8xbf16>
    %102 = vector.shape_cast %101 : vector<1x1x7x8xbf16> to vector<7x8xbf16>
    %c0_89 = arith.constant 0 : index
    %c0_90 = arith.constant 0 : index
    %103 = vector.load %arg3[%c0_89, %c0_90] : memref<32x7xbf16, #tpu.memory_space<vmem>>, vector<32x7xbf16>
    %c0_91 = arith.constant 0 : index
    %c0_92 = arith.constant 0 : index
    %104 = vector.load %arg4[%c0_91, %c0_92] : memref<32x1xf32, #tpu.memory_space<vmem>>, vector<32x1xf32>
    %cst_93 = arith.constant dense<0.000000e+00> : vector<32x8xf32>
    %105 = tpu.matmul %103, %102, %cst_93 {dimension_numbers = #tpu.dot_dimension_numbers<[1], [0], [0], [1], [0, 0, 1, 1], [], []>} : vector<32x7xbf16>, vector<7x8xbf16>, vector<32x8xf32> -> vector<32x8xf32>
    %106 = vector.broadcast %104 : vector<32x1xf32> to vector<32x8xf32>
    %107 = arith.addf %105, %106 : vector<32x8xf32>
    %cst_94 = arith.constant 0.000000e+00 : f32
    %108 = vector.broadcast %cst_94 : f32 to vector<32x8xf32>
    %109 = arith.maximumf %107, %108 : vector<32x8xf32>
    %110 = arith.truncf %109 : vector<32x8xf32> to vector<32x8xbf16>
    %c0_95 = arith.constant 0 : index
    %c0_96 = arith.constant 0 : index
    %111 = vector.load %arg5[%c0_95, %c0_96] : memref<64x32xbf16, #tpu.memory_space<vmem>>, vector<64x32xbf16>
    %c0_97 = arith.constant 0 : index
    %c0_98 = arith.constant 0 : index
    %112 = vector.load %arg6[%c0_97, %c0_98] : memref<64x1xf32, #tpu.memory_space<vmem>>, vector<64x1xf32>
    %cst_99 = arith.constant dense<0.000000e+00> : vector<64x8xf32>
    %113 = tpu.matmul %111, %110, %cst_99 {dimension_numbers = #tpu.dot_dimension_numbers<[1], [0], [0], [1], [0, 0, 1, 1], [], []>} : vector<64x32xbf16>, vector<32x8xbf16>, vector<64x8xf32> -> vector<64x8xf32>
    %114 = vector.broadcast %112 : vector<64x1xf32> to vector<64x8xf32>
    %115 = arith.addf %113, %114 : vector<64x8xf32>
    %cst_100 = arith.constant 0.000000e+00 : f32
    %116 = vector.broadcast %cst_100 : f32 to vector<64x8xf32>
    %117 = arith.maximumf %115, %116 : vector<64x8xf32>
    %c0_101 = arith.constant 0 : index
    %c0_102 = arith.constant 0 : index
    %c0_103 = arith.constant 0 : index
    %118 = vector.load %arg7[%c0_101, %c0_102, %c0_103] : memref<1x64x8xf32, #tpu.memory_space<vmem>>, vector<1x64x8xf32>
    %119 = vector.shape_cast %118 : vector<1x64x8xf32> to vector<64x8xf32>
    %120 = arith.maximumf %119, %117 : vector<64x8xf32>
    %c0_104 = arith.constant 0 : index
    %c0_105 = arith.constant 0 : index
    %c0_106 = arith.constant 0 : index
    %121 = vector.load %arg7[%c0_104, %c0_105, %c0_106] : memref<1x64x8xf32, #tpu.memory_space<vmem>>, vector<1x64x8xf32>
    %122 = vector.shape_cast %121 : vector<1x64x8xf32> to vector<64x8xf32>
    %123 = vector.shape_cast %120 : vector<64x8xf32> to vector<1x64x8xf32>
    tpu.vector_store %arg7[%c0_104, %c0_105, %c0_106], %123 {strides = array<i32>} : memref<1x64x8xf32, #tpu.memory_space<vmem>>, vector<1x64x8xf32>,
    %c5_i32 = arith.constant 5 : i32
    %c0_107 = arith.constant 0 : index
    %124 = arith.index_cast %c5_i32 : i32 to index
    %c0_108 = arith.constant 0 : index
    %c0_109 = arith.constant 0 : index
    %125 = vector.load %arg2[%c0_107, %124, %c0_108, %c0_109] : memref<1x16x7x8xbf16, #tpu.memory_space<vmem>>, vector<1x1x7x8xbf16>
    %126 = vector.shape_cast %125 : vector<1x1x7x8xbf16> to vector<7x8xbf16>
    %c0_110 = arith.constant 0 : index
    %c0_111 = arith.constant 0 : index
    %127 = vector.load %arg3[%c0_110, %c0_111] : memref<32x7xbf16, #tpu.memory_space<vmem>>, vector<32x7xbf16>
    %c0_112 = arith.constant 0 : index
    %c0_113 = arith.constant 0 : index
    %128 = vector.load %arg4[%c0_112, %c0_113] : memref<32x1xf32, #tpu.memory_space<vmem>>, vector<32x1xf32>
    %cst_114 = arith.constant dense<0.000000e+00> : vector<32x8xf32>
    %129 = tpu.matmul %127, %126, %cst_114 {dimension_numbers = #tpu.dot_dimension_numbers<[1], [0], [0], [1], [0, 0, 1, 1], [], []>} : vector<32x7xbf16>, vector<7x8xbf16>, vector<32x8xf32> -> vector<32x8xf32>
    %130 = vector.broadcast %128 : vector<32x1xf32> to vector<32x8xf32>
    %131 = arith.addf %129, %130 : vector<32x8xf32>
    %cst_115 = arith.constant 0.000000e+00 : f32
    %132 = vector.broadcast %cst_115 : f32 to vector<32x8xf32>
    %133 = arith.maximumf %131, %132 : vector<32x8xf32>
    %134 = arith.truncf %133 : vector<32x8xf32> to vector<32x8xbf16>
    %c0_116 = arith.constant 0 : index
    %c0_117 = arith.constant 0 : index
    %135 = vector.load %arg5[%c0_116, %c0_117] : memref<64x32xbf16, #tpu.memory_space<vmem>>, vector<64x32xbf16>
    %c0_118 = arith.constant 0 : index
    %c0_119 = arith.constant 0 : index
    %136 = vector.load %arg6[%c0_118, %c0_119] : memref<64x1xf32, #tpu.memory_space<vmem>>, vector<64x1xf32>
    %cst_120 = arith.constant dense<0.000000e+00> : vector<64x8xf32>
    %137 = tpu.matmul %135, %134, %cst_120 {dimension_numbers = #tpu.dot_dimension_numbers<[1], [0], [0], [1], [0, 0, 1, 1], [], []>} : vector<64x32xbf16>, vector<32x8xbf16>, vector<64x8xf32> -> vector<64x8xf32>
    %138 = vector.broadcast %136 : vector<64x1xf32> to vector<64x8xf32>
    %139 = arith.addf %137, %138 : vector<64x8xf32>
    %cst_121 = arith.constant 0.000000e+00 : f32
    %140 = vector.broadcast %cst_121 : f32 to vector<64x8xf32>
    %141 = arith.maximumf %139, %140 : vector<64x8xf32>
    %c0_122 = arith.constant 0 : index
    %c0_123 = arith.constant 0 : index
    %c0_124 = arith.constant 0 : index
    %142 = vector.load %arg7[%c0_122, %c0_123, %c0_124] : memref<1x64x8xf32, #tpu.memory_space<vmem>>, vector<1x64x8xf32>
    %143 = vector.shape_cast %142 : vector<1x64x8xf32> to vector<64x8xf32>
    %144 = arith.maximumf %143, %141 : vector<64x8xf32>
    %c0_125 = arith.constant 0 : index
    %c0_126 = arith.constant 0 : index
    %c0_127 = arith.constant 0 : index
    %145 = vector.load %arg7[%c0_125, %c0_126, %c0_127] : memref<1x64x8xf32, #tpu.memory_space<vmem>>, vector<1x64x8xf32>
    %146 = vector.shape_cast %145 : vector<1x64x8xf32> to vector<64x8xf32>
    %147 = vector.shape_cast %144 : vector<64x8xf32> to vector<1x64x8xf32>
    tpu.vector_store %arg7[%c0_125, %c0_126, %c0_127], %147 {strides = array<i32>} : memref<1x64x8xf32, #tpu.memory_space<vmem>>, vector<1x64x8xf32>,
    %c6_i32 = arith.constant 6 : i32
    %c0_128 = arith.constant 0 : index
    %148 = arith.index_cast %c6_i32 : i32 to index
    %c0_129 = arith.constant 0 : index
    %c0_130 = arith.constant 0 : index
    %149 = vector.load %arg2[%c0_128, %148, %c0_129, %c0_130] : memref<1x16x7x8xbf16, #tpu.memory_space<vmem>>, vector<1x1x7x8xbf16>
    %150 = vector.shape_cast %149 : vector<1x1x7x8xbf16> to vector<7x8xbf16>
    %c0_131 = arith.constant 0 : index
    %c0_132 = arith.constant 0 : index
    %151 = vector.load %arg3[%c0_131, %c0_132] : memref<32x7xbf16, #tpu.memory_space<vmem>>, vector<32x7xbf16>
    %c0_133 = arith.constant 0 : index
    %c0_134 = arith.constant 0 : index
    %152 = vector.load %arg4[%c0_133, %c0_134] : memref<32x1xf32, #tpu.memory_space<vmem>>, vector<32x1xf32>
    %cst_135 = arith.constant dense<0.000000e+00> : vector<32x8xf32>
    %153 = tpu.matmul %151, %150, %cst_135 {dimension_numbers = #tpu.dot_dimension_numbers<[1], [0], [0], [1], [0, 0, 1, 1], [], []>} : vector<32x7xbf16>, vector<7x8xbf16>, vector<32x8xf32> -> vector<32x8xf32>
    %154 = vector.broadcast %152 : vector<32x1xf32> to vector<32x8xf32>
    %155 = arith.addf %153, %154 : vector<32x8xf32>
    %cst_136 = arith.constant 0.000000e+00 : f32
    %156 = vector.broadcast %cst_136 : f32 to vector<32x8xf32>
    %157 = arith.maximumf %155, %156 : vector<32x8xf32>
    %158 = arith.truncf %157 : vector<32x8xf32> to vector<32x8xbf16>
    %c0_137 = arith.constant 0 : index
    %c0_138 = arith.constant 0 : index
    %159 = vector.load %arg5[%c0_137, %c0_138] : memref<64x32xbf16, #tpu.memory_space<vmem>>, vector<64x32xbf16>
    %c0_139 = arith.constant 0 : index
    %c0_140 = arith.constant 0 : index
    %160 = vector.load %arg6[%c0_139, %c0_140] : memref<64x1xf32, #tpu.memory_space<vmem>>, vector<64x1xf32>
    %cst_141 = arith.constant dense<0.000000e+00> : vector<64x8xf32>
    %161 = tpu.matmul %159, %158, %cst_141 {dimension_numbers = #tpu.dot_dimension_numbers<[1], [0], [0], [1], [0, 0, 1, 1], [], []>} : vector<64x32xbf16>, vector<32x8xbf16>, vector<64x8xf32> -> vector<64x8xf32>
    %162 = vector.broadcast %160 : vector<64x1xf32> to vector<64x8xf32>
    %163 = arith.addf %161, %162 : vector<64x8xf32>
    %cst_142 = arith.constant 0.000000e+00 : f32
    %164 = vector.broadcast %cst_142 : f32 to vector<64x8xf32>
    %165 = arith.maximumf %163, %164 : vector<64x8xf32>
    %c0_143 = arith.constant 0 : index
    %c0_144 = arith.constant 0 : index
    %c0_145 = arith.constant 0 : index
    %166 = vector.load %arg7[%c0_143, %c0_144, %c0_145] : memref<1x64x8xf32, #tpu.memory_space<vmem>>, vector<1x64x8xf32>
    %167 = vector.shape_cast %166 : vector<1x64x8xf32> to vector<64x8xf32>
    %168 = arith.maximumf %167, %165 : vector<64x8xf32>
    %c0_146 = arith.constant 0 : index
    %c0_147 = arith.constant 0 : index
    %c0_148 = arith.constant 0 : index
    %169 = vector.load %arg7[%c0_146, %c0_147, %c0_148] : memref<1x64x8xf32, #tpu.memory_space<vmem>>, vector<1x64x8xf32>
    %170 = vector.shape_cast %169 : vector<1x64x8xf32> to vector<64x8xf32>
    %171 = vector.shape_cast %168 : vector<64x8xf32> to vector<1x64x8xf32>
    tpu.vector_store %arg7[%c0_146, %c0_147, %c0_148], %171 {strides = array<i32>} : memref<1x64x8xf32, #tpu.memory_space<vmem>>, vector<1x64x8xf32>,
    %c7_i32 = arith.constant 7 : i32
    %c0_149 = arith.constant 0 : index
    %172 = arith.index_cast %c7_i32 : i32 to index
    %c0_150 = arith.constant 0 : index
    %c0_151 = arith.constant 0 : index
    %173 = vector.load %arg2[%c0_149, %172, %c0_150, %c0_151] : memref<1x16x7x8xbf16, #tpu.memory_space<vmem>>, vector<1x1x7x8xbf16>
    %174 = vector.shape_cast %173 : vector<1x1x7x8xbf16> to vector<7x8xbf16>
    %c0_152 = arith.constant 0 : index
    %c0_153 = arith.constant 0 : index
    %175 = vector.load %arg3[%c0_152, %c0_153] : memref<32x7xbf16, #tpu.memory_space<vmem>>, vector<32x7xbf16>
    %c0_154 = arith.constant 0 : index
    %c0_155 = arith.constant 0 : index
    %176 = vector.load %arg4[%c0_154, %c0_155] : memref<32x1xf32, #tpu.memory_space<vmem>>, vector<32x1xf32>
    %cst_156 = arith.constant dense<0.000000e+00> : vector<32x8xf32>
    %177 = tpu.matmul %175, %174, %cst_156 {dimension_numbers = #tpu.dot_dimension_numbers<[1], [0], [0], [1], [0, 0, 1, 1], [], []>} : vector<32x7xbf16>, vector<7x8xbf16>, vector<32x8xf32> -> vector<32x8xf32>
    %178 = vector.broadcast %176 : vector<32x1xf32> to vector<32x8xf32>
    %179 = arith.addf %177, %178 : vector<32x8xf32>
    %cst_157 = arith.constant 0.000000e+00 : f32
    %180 = vector.broadcast %cst_157 : f32 to vector<32x8xf32>
    %181 = arith.maximumf %179, %180 : vector<32x8xf32>
    %182 = arith.truncf %181 : vector<32x8xf32> to vector<32x8xbf16>
    %c0_158 = arith.constant 0 : index
    %c0_159 = arith.constant 0 : index
    %183 = vector.load %arg5[%c0_158, %c0_159] : memref<64x32xbf16, #tpu.memory_space<vmem>>, vector<64x32xbf16>
    %c0_160 = arith.constant 0 : index
    %c0_161 = arith.constant 0 : index
    %184 = vector.load %arg6[%c0_160, %c0_161] : memref<64x1xf32, #tpu.memory_space<vmem>>, vector<64x1xf32>
    %cst_162 = arith.constant dense<0.000000e+00> : vector<64x8xf32>
    %185 = tpu.matmul %183, %182, %cst_162 {dimension_numbers = #tpu.dot_dimension_numbers<[1], [0], [0], [1], [0, 0, 1, 1], [], []>} : vector<64x32xbf16>, vector<32x8xbf16>, vector<64x8xf32> -> vector<64x8xf32>
    %186 = vector.broadcast %184 : vector<64x1xf32> to vector<64x8xf32>
    %187 = arith.addf %185, %186 : vector<64x8xf32>
    %cst_163 = arith.constant 0.000000e+00 : f32
    %188 = vector.broadcast %cst_163 : f32 to vector<64x8xf32>
    %189 = arith.maximumf %187, %188 : vector<64x8xf32>
    %c0_164 = arith.constant 0 : index
    %c0_165 = arith.constant 0 : index
    %c0_166 = arith.constant 0 : index
    %190 = vector.load %arg7[%c0_164, %c0_165, %c0_166] : memref<1x64x8xf32, #tpu.memory_space<vmem>>, vector<1x64x8xf32>
    %191 = vector.shape_cast %190 : vector<1x64x8xf32> to vector<64x8xf32>
    %192 = arith.maximumf %191, %189 : vector<64x8xf32>
    %c0_167 = arith.constant 0 : index
    %c0_168 = arith.constant 0 : index
    %c0_169 = arith.constant 0 : index
    %193 = vector.load %arg7[%c0_167, %c0_168, %c0_169] : memref<1x64x8xf32, #tpu.memory_space<vmem>>, vector<1x64x8xf32>
    %194 = vector.shape_cast %193 : vector<1x64x8xf32> to vector<64x8xf32>
    %195 = vector.shape_cast %192 : vector<64x8xf32> to vector<1x64x8xf32>
    tpu.vector_store %arg7[%c0_167, %c0_168, %c0_169], %195 {strides = array<i32>} : memref<1x64x8xf32, #tpu.memory_space<vmem>>, vector<1x64x8xf32>,
    %c8_i32 = arith.constant 8 : i32
    %c0_170 = arith.constant 0 : index
    %196 = arith.index_cast %c8_i32 : i32 to index
    %c0_171 = arith.constant 0 : index
    %c0_172 = arith.constant 0 : index
    %197 = vector.load %arg2[%c0_170, %196, %c0_171, %c0_172] : memref<1x16x7x8xbf16, #tpu.memory_space<vmem>>, vector<1x1x7x8xbf16>
    %198 = vector.shape_cast %197 : vector<1x1x7x8xbf16> to vector<7x8xbf16>
    %c0_173 = arith.constant 0 : index
    %c0_174 = arith.constant 0 : index
    %199 = vector.load %arg3[%c0_173, %c0_174] : memref<32x7xbf16, #tpu.memory_space<vmem>>, vector<32x7xbf16>
    %c0_175 = arith.constant 0 : index
    %c0_176 = arith.constant 0 : index
    %200 = vector.load %arg4[%c0_175, %c0_176] : memref<32x1xf32, #tpu.memory_space<vmem>>, vector<32x1xf32>
    %cst_177 = arith.constant dense<0.000000e+00> : vector<32x8xf32>
    %201 = tpu.matmul %199, %198, %cst_177 {dimension_numbers = #tpu.dot_dimension_numbers<[1], [0], [0], [1], [0, 0, 1, 1], [], []>} : vector<32x7xbf16>, vector<7x8xbf16>, vector<32x8xf32> -> vector<32x8xf32>
    %202 = vector.broadcast %200 : vector<32x1xf32> to vector<32x8xf32>
    %203 = arith.addf %201, %202 : vector<32x8xf32>
    %cst_178 = arith.constant 0.000000e+00 : f32
    %204 = vector.broadcast %cst_178 : f32 to vector<32x8xf32>
    %205 = arith.maximumf %203, %204 : vector<32x8xf32>
    %206 = arith.truncf %205 : vector<32x8xf32> to vector<32x8xbf16>
    %c0_179 = arith.constant 0 : index
    %c0_180 = arith.constant 0 : index
    %207 = vector.load %arg5[%c0_179, %c0_180] : memref<64x32xbf16, #tpu.memory_space<vmem>>, vector<64x32xbf16>
    %c0_181 = arith.constant 0 : index
    %c0_182 = arith.constant 0 : index
    %208 = vector.load %arg6[%c0_181, %c0_182] : memref<64x1xf32, #tpu.memory_space<vmem>>, vector<64x1xf32>
    %cst_183 = arith.constant dense<0.000000e+00> : vector<64x8xf32>
    %209 = tpu.matmul %207, %206, %cst_183 {dimension_numbers = #tpu.dot_dimension_numbers<[1], [0], [0], [1], [0, 0, 1, 1], [], []>} : vector<64x32xbf16>, vector<32x8xbf16>, vector<64x8xf32> -> vector<64x8xf32>
    %210 = vector.broadcast %208 : vector<64x1xf32> to vector<64x8xf32>
    %211 = arith.addf %209, %210 : vector<64x8xf32>
    %cst_184 = arith.constant 0.000000e+00 : f32
    %212 = vector.broadcast %cst_184 : f32 to vector<64x8xf32>
    %213 = arith.maximumf %211, %212 : vector<64x8xf32>
    %c0_185 = arith.constant 0 : index
    %c0_186 = arith.constant 0 : index
    %c0_187 = arith.constant 0 : index
    %214 = vector.load %arg7[%c0_185, %c0_186, %c0_187] : memref<1x64x8xf32, #tpu.memory_space<vmem>>, vector<1x64x8xf32>
    %215 = vector.shape_cast %214 : vector<1x64x8xf32> to vector<64x8xf32>
    %216 = arith.maximumf %215, %213 : vector<64x8xf32>
    %c0_188 = arith.constant 0 : index
    %c0_189 = arith.constant 0 : index
    %c0_190 = arith.constant 0 : index
    %217 = vector.load %arg7[%c0_188, %c0_189, %c0_190] : memref<1x64x8xf32, #tpu.memory_space<vmem>>, vector<1x64x8xf32>
    %218 = vector.shape_cast %217 : vector<1x64x8xf32> to vector<64x8xf32>
    %219 = vector.shape_cast %216 : vector<64x8xf32> to vector<1x64x8xf32>
    tpu.vector_store %arg7[%c0_188, %c0_189, %c0_190], %219 {strides = array<i32>} : memref<1x64x8xf32, #tpu.memory_space<vmem>>, vector<1x64x8xf32>,
    %c9_i32 = arith.constant 9 : i32
    %c0_191 = arith.constant 0 : index
    %220 = arith.index_cast %c9_i32 : i32 to index
    %c0_192 = arith.constant 0 : index
    %c0_193 = arith.constant 0 : index
    %221 = vector.load %arg2[%c0_191, %220, %c0_192, %c0_193] : memref<1x16x7x8xbf16, #tpu.memory_space<vmem>>, vector<1x1x7x8xbf16>
    %222 = vector.shape_cast %221 : vector<1x1x7x8xbf16> to vector<7x8xbf16>
    %c0_194 = arith.constant 0 : index
    %c0_195 = arith.constant 0 : index
    %223 = vector.load %arg3[%c0_194, %c0_195] : memref<32x7xbf16, #tpu.memory_space<vmem>>, vector<32x7xbf16>
    %c0_196 = arith.constant 0 : index
    %c0_197 = arith.constant 0 : index
    %224 = vector.load %arg4[%c0_196, %c0_197] : memref<32x1xf32, #tpu.memory_space<vmem>>, vector<32x1xf32>
    %cst_198 = arith.constant dense<0.000000e+00> : vector<32x8xf32>
    %225 = tpu.matmul %223, %222, %cst_198 {dimension_numbers = #tpu.dot_dimension_numbers<[1], [0], [0], [1], [0, 0, 1, 1], [], []>} : vector<32x7xbf16>, vector<7x8xbf16>, vector<32x8xf32> -> vector<32x8xf32>
    %226 = vector.broadcast %224 : vector<32x1xf32> to vector<32x8xf32>
    %227 = arith.addf %225, %226 : vector<32x8xf32>
    %cst_199 = arith.constant 0.000000e+00 : f32
    %228 = vector.broadcast %cst_199 : f32 to vector<32x8xf32>
    %229 = arith.maximumf %227, %228 : vector<32x8xf32>
    %230 = arith.truncf %229 : vector<32x8xf32> to vector<32x8xbf16>
    %c0_200 = arith.constant 0 : index
    %c0_201 = arith.constant 0 : index
    %231 = vector.load %arg5[%c0_200, %c0_201] : memref<64x32xbf16, #tpu.memory_space<vmem>>, vector<64x32xbf16>
    %c0_202 = arith.constant 0 : index
    %c0_203 = arith.constant 0 : index
    %232 = vector.load %arg6[%c0_202, %c0_203] : memref<64x1xf32, #tpu.memory_space<vmem>>, vector<64x1xf32>
    %cst_204 = arith.constant dense<0.000000e+00> : vector<64x8xf32>
    %233 = tpu.matmul %231, %230, %cst_204 {dimension_numbers = #tpu.dot_dimension_numbers<[1], [0], [0], [1], [0, 0, 1, 1], [], []>} : vector<64x32xbf16>, vector<32x8xbf16>, vector<64x8xf32> -> vector<64x8xf32>
    %234 = vector.broadcast %232 : vector<64x1xf32> to vector<64x8xf32>
    %235 = arith.addf %233, %234 : vector<64x8xf32>
    %cst_205 = arith.constant 0.000000e+00 : f32
    %236 = vector.broadcast %cst_205 : f32 to vector<64x8xf32>
    %237 = arith.maximumf %235, %236 : vector<64x8xf32>
    %c0_206 = arith.constant 0 : index
    %c0_207 = arith.constant 0 : index
    %c0_208 = arith.constant 0 : index
    %238 = vector.load %arg7[%c0_206, %c0_207, %c0_208] : memref<1x64x8xf32, #tpu.memory_space<vmem>>, vector<1x64x8xf32>
    %239 = vector.shape_cast %238 : vector<1x64x8xf32> to vector<64x8xf32>
    %240 = arith.maximumf %239, %237 : vector<64x8xf32>
    %c0_209 = arith.constant 0 : index
    %c0_210 = arith.constant 0 : index
    %c0_211 = arith.constant 0 : index
    %241 = vector.load %arg7[%c0_209, %c0_210, %c0_211] : memref<1x64x8xf32, #tpu.memory_space<vmem>>, vector<1x64x8xf32>
    %242 = vector.shape_cast %241 : vector<1x64x8xf32> to vector<64x8xf32>
    %243 = vector.shape_cast %240 : vector<64x8xf32> to vector<1x64x8xf32>
    tpu.vector_store %arg7[%c0_209, %c0_210, %c0_211], %243 {strides = array<i32>} : memref<1x64x8xf32, #tpu.memory_space<vmem>>, vector<1x64x8xf32>,
    %c10_i32 = arith.constant 10 : i32
    %c0_212 = arith.constant 0 : index
    %244 = arith.index_cast %c10_i32 : i32 to index
    %c0_213 = arith.constant 0 : index
    %c0_214 = arith.constant 0 : index
    %245 = vector.load %arg2[%c0_212, %244, %c0_213, %c0_214] : memref<1x16x7x8xbf16, #tpu.memory_space<vmem>>, vector<1x1x7x8xbf16>
    %246 = vector.shape_cast %245 : vector<1x1x7x8xbf16> to vector<7x8xbf16>
    %c0_215 = arith.constant 0 : index
    %c0_216 = arith.constant 0 : index
    %247 = vector.load %arg3[%c0_215, %c0_216] : memref<32x7xbf16, #tpu.memory_space<vmem>>, vector<32x7xbf16>
    %c0_217 = arith.constant 0 : index
    %c0_218 = arith.constant 0 : index
    %248 = vector.load %arg4[%c0_217, %c0_218] : memref<32x1xf32, #tpu.memory_space<vmem>>, vector<32x1xf32>
    %cst_219 = arith.constant dense<0.000000e+00> : vector<32x8xf32>
    %249 = tpu.matmul %247, %246, %cst_219 {dimension_numbers = #tpu.dot_dimension_numbers<[1], [0], [0], [1], [0, 0, 1, 1], [], []>} : vector<32x7xbf16>, vector<7x8xbf16>, vector<32x8xf32> -> vector<32x8xf32>
    %250 = vector.broadcast %248 : vector<32x1xf32> to vector<32x8xf32>
    %251 = arith.addf %249, %250 : vector<32x8xf32>
    %cst_220 = arith.constant 0.000000e+00 : f32
    %252 = vector.broadcast %cst_220 : f32 to vector<32x8xf32>
    %253 = arith.maximumf %251, %252 : vector<32x8xf32>
    %254 = arith.truncf %253 : vector<32x8xf32> to vector<32x8xbf16>
    %c0_221 = arith.constant 0 : index
    %c0_222 = arith.constant 0 : index
    %255 = vector.load %arg5[%c0_221, %c0_222] : memref<64x32xbf16, #tpu.memory_space<vmem>>, vector<64x32xbf16>
    %c0_223 = arith.constant 0 : index
    %c0_224 = arith.constant 0 : index
    %256 = vector.load %arg6[%c0_223, %c0_224] : memref<64x1xf32, #tpu.memory_space<vmem>>, vector<64x1xf32>
    %cst_225 = arith.constant dense<0.000000e+00> : vector<64x8xf32>
    %257 = tpu.matmul %255, %254, %cst_225 {dimension_numbers = #tpu.dot_dimension_numbers<[1], [0], [0], [1], [0, 0, 1, 1], [], []>} : vector<64x32xbf16>, vector<32x8xbf16>, vector<64x8xf32> -> vector<64x8xf32>
    %258 = vector.broadcast %256 : vector<64x1xf32> to vector<64x8xf32>
    %259 = arith.addf %257, %258 : vector<64x8xf32>
    %cst_226 = arith.constant 0.000000e+00 : f32
    %260 = vector.broadcast %cst_226 : f32 to vector<64x8xf32>
    %261 = arith.maximumf %259, %260 : vector<64x8xf32>
    %c0_227 = arith.constant 0 : index
    %c0_228 = arith.constant 0 : index
    %c0_229 = arith.constant 0 : index
    %262 = vector.load %arg7[%c0_227, %c0_228, %c0_229] : memref<1x64x8xf32, #tpu.memory_space<vmem>>, vector<1x64x8xf32>
    %263 = vector.shape_cast %262 : vector<1x64x8xf32> to vector<64x8xf32>
    %264 = arith.maximumf %263, %261 : vector<64x8xf32>
    %c0_230 = arith.constant 0 : index
    %c0_231 = arith.constant 0 : index
    %c0_232 = arith.constant 0 : index
    %265 = vector.load %arg7[%c0_230, %c0_231, %c0_232] : memref<1x64x8xf32, #tpu.memory_space<vmem>>, vector<1x64x8xf32>
    %266 = vector.shape_cast %265 : vector<1x64x8xf32> to vector<64x8xf32>
    %267 = vector.shape_cast %264 : vector<64x8xf32> to vector<1x64x8xf32>
    tpu.vector_store %arg7[%c0_230, %c0_231, %c0_232], %267 {strides = array<i32>} : memref<1x64x8xf32, #tpu.memory_space<vmem>>, vector<1x64x8xf32>,
    %c11_i32 = arith.constant 11 : i32
    %c0_233 = arith.constant 0 : index
    %268 = arith.index_cast %c11_i32 : i32 to index
    %c0_234 = arith.constant 0 : index
    %c0_235 = arith.constant 0 : index
    %269 = vector.load %arg2[%c0_233, %268, %c0_234, %c0_235] : memref<1x16x7x8xbf16, #tpu.memory_space<vmem>>, vector<1x1x7x8xbf16>
    %270 = vector.shape_cast %269 : vector<1x1x7x8xbf16> to vector<7x8xbf16>
    %c0_236 = arith.constant 0 : index
    %c0_237 = arith.constant 0 : index
    %271 = vector.load %arg3[%c0_236, %c0_237] : memref<32x7xbf16, #tpu.memory_space<vmem>>, vector<32x7xbf16>
    %c0_238 = arith.constant 0 : index
    %c0_239 = arith.constant 0 : index
    %272 = vector.load %arg4[%c0_238, %c0_239] : memref<32x1xf32, #tpu.memory_space<vmem>>, vector<32x1xf32>
    %cst_240 = arith.constant dense<0.000000e+00> : vector<32x8xf32>
    %273 = tpu.matmul %271, %270, %cst_240 {dimension_numbers = #tpu.dot_dimension_numbers<[1], [0], [0], [1], [0, 0, 1, 1], [], []>} : vector<32x7xbf16>, vector<7x8xbf16>, vector<32x8xf32> -> vector<32x8xf32>
    %274 = vector.broadcast %272 : vector<32x1xf32> to vector<32x8xf32>
    %275 = arith.addf %273, %274 : vector<32x8xf32>
    %cst_241 = arith.constant 0.000000e+00 : f32
    %276 = vector.broadcast %cst_241 : f32 to vector<32x8xf32>
    %277 = arith.maximumf %275, %276 : vector<32x8xf32>
    %278 = arith.truncf %277 : vector<32x8xf32> to vector<32x8xbf16>
    %c0_242 = arith.constant 0 : index
    %c0_243 = arith.constant 0 : index
    %279 = vector.load %arg5[%c0_242, %c0_243] : memref<64x32xbf16, #tpu.memory_space<vmem>>, vector<64x32xbf16>
    %c0_244 = arith.constant 0 : index
    %c0_245 = arith.constant 0 : index
    %280 = vector.load %arg6[%c0_244, %c0_245] : memref<64x1xf32, #tpu.memory_space<vmem>>, vector<64x1xf32>
    %cst_246 = arith.constant dense<0.000000e+00> : vector<64x8xf32>
    %281 = tpu.matmul %279, %278, %cst_246 {dimension_numbers = #tpu.dot_dimension_numbers<[1], [0], [0], [1], [0, 0, 1, 1], [], []>} : vector<64x32xbf16>, vector<32x8xbf16>, vector<64x8xf32> -> vector<64x8xf32>
    %282 = vector.broadcast %280 : vector<64x1xf32> to vector<64x8xf32>
    %283 = arith.addf %281, %282 : vector<64x8xf32>
    %cst_247 = arith.constant 0.000000e+00 : f32
    %284 = vector.broadcast %cst_247 : f32 to vector<64x8xf32>
    %285 = arith.maximumf %283, %284 : vector<64x8xf32>
    %c0_248 = arith.constant 0 : index
    %c0_249 = arith.constant 0 : index
    %c0_250 = arith.constant 0 : index
    %286 = vector.load %arg7[%c0_248, %c0_249, %c0_250] : memref<1x64x8xf32, #tpu.memory_space<vmem>>, vector<1x64x8xf32>
    %287 = vector.shape_cast %286 : vector<1x64x8xf32> to vector<64x8xf32>
    %288 = arith.maximumf %287, %285 : vector<64x8xf32>
    %c0_251 = arith.constant 0 : index
    %c0_252 = arith.constant 0 : index
    %c0_253 = arith.constant 0 : index
    %289 = vector.load %arg7[%c0_251, %c0_252, %c0_253] : memref<1x64x8xf32, #tpu.memory_space<vmem>>, vector<1x64x8xf32>
    %290 = vector.shape_cast %289 : vector<1x64x8xf32> to vector<64x8xf32>
    %291 = vector.shape_cast %288 : vector<64x8xf32> to vector<1x64x8xf32>
    tpu.vector_store %arg7[%c0_251, %c0_252, %c0_253], %291 {strides = array<i32>} : memref<1x64x8xf32, #tpu.memory_space<vmem>>, vector<1x64x8xf32>,
    %c12_i32 = arith.constant 12 : i32
    %c0_254 = arith.constant 0 : index
    %292 = arith.index_cast %c12_i32 : i32 to index
    %c0_255 = arith.constant 0 : index
    %c0_256 = arith.constant 0 : index
    %293 = vector.load %arg2[%c0_254, %292, %c0_255, %c0_256] : memref<1x16x7x8xbf16, #tpu.memory_space<vmem>>, vector<1x1x7x8xbf16>
    %294 = vector.shape_cast %293 : vector<1x1x7x8xbf16> to vector<7x8xbf16>
    %c0_257 = arith.constant 0 : index
    %c0_258 = arith.constant 0 : index
    %295 = vector.load %arg3[%c0_257, %c0_258] : memref<32x7xbf16, #tpu.memory_space<vmem>>, vector<32x7xbf16>
    %c0_259 = arith.constant 0 : index
    %c0_260 = arith.constant 0 : index
    %296 = vector.load %arg4[%c0_259, %c0_260] : memref<32x1xf32, #tpu.memory_space<vmem>>, vector<32x1xf32>
    %cst_261 = arith.constant dense<0.000000e+00> : vector<32x8xf32>
    %297 = tpu.matmul %295, %294, %cst_261 {dimension_numbers = #tpu.dot_dimension_numbers<[1], [0], [0], [1], [0, 0, 1, 1], [], []>} : vector<32x7xbf16>, vector<7x8xbf16>, vector<32x8xf32> -> vector<32x8xf32>
    %298 = vector.broadcast %296 : vector<32x1xf32> to vector<32x8xf32>
    %299 = arith.addf %297, %298 : vector<32x8xf32>
    %cst_262 = arith.constant 0.000000e+00 : f32
    %300 = vector.broadcast %cst_262 : f32 to vector<32x8xf32>
    %301 = arith.maximumf %299, %300 : vector<32x8xf32>
    %302 = arith.truncf %301 : vector<32x8xf32> to vector<32x8xbf16>
    %c0_263 = arith.constant 0 : index
    %c0_264 = arith.constant 0 : index
    %303 = vector.load %arg5[%c0_263, %c0_264] : memref<64x32xbf16, #tpu.memory_space<vmem>>, vector<64x32xbf16>
    %c0_265 = arith.constant 0 : index
    %c0_266 = arith.constant 0 : index
    %304 = vector.load %arg6[%c0_265, %c0_266] : memref<64x1xf32, #tpu.memory_space<vmem>>, vector<64x1xf32>
    %cst_267 = arith.constant dense<0.000000e+00> : vector<64x8xf32>
    %305 = tpu.matmul %303, %302, %cst_267 {dimension_numbers = #tpu.dot_dimension_numbers<[1], [0], [0], [1], [0, 0, 1, 1], [], []>} : vector<64x32xbf16>, vector<32x8xbf16>, vector<64x8xf32> -> vector<64x8xf32>
    %306 = vector.broadcast %304 : vector<64x1xf32> to vector<64x8xf32>
    %307 = arith.addf %305, %306 : vector<64x8xf32>
    %cst_268 = arith.constant 0.000000e+00 : f32
    %308 = vector.broadcast %cst_268 : f32 to vector<64x8xf32>
    %309 = arith.maximumf %307, %308 : vector<64x8xf32>
    %c0_269 = arith.constant 0 : index
    %c0_270 = arith.constant 0 : index
    %c0_271 = arith.constant 0 : index
    %310 = vector.load %arg7[%c0_269, %c0_270, %c0_271] : memref<1x64x8xf32, #tpu.memory_space<vmem>>, vector<1x64x8xf32>
    %311 = vector.shape_cast %310 : vector<1x64x8xf32> to vector<64x8xf32>
    %312 = arith.maximumf %311, %309 : vector<64x8xf32>
    %c0_272 = arith.constant 0 : index
    %c0_273 = arith.constant 0 : index
    %c0_274 = arith.constant 0 : index
    %313 = vector.load %arg7[%c0_272, %c0_273, %c0_274] : memref<1x64x8xf32, #tpu.memory_space<vmem>>, vector<1x64x8xf32>
    %314 = vector.shape_cast %313 : vector<1x64x8xf32> to vector<64x8xf32>
    %315 = vector.shape_cast %312 : vector<64x8xf32> to vector<1x64x8xf32>
    tpu.vector_store %arg7[%c0_272, %c0_273, %c0_274], %315 {strides = array<i32>} : memref<1x64x8xf32, #tpu.memory_space<vmem>>, vector<1x64x8xf32>,
    %c13_i32 = arith.constant 13 : i32
    %c0_275 = arith.constant 0 : index
    %316 = arith.index_cast %c13_i32 : i32 to index
    %c0_276 = arith.constant 0 : index
    %c0_277 = arith.constant 0 : index
    %317 = vector.load %arg2[%c0_275, %316, %c0_276, %c0_277] : memref<1x16x7x8xbf16, #tpu.memory_space<vmem>>, vector<1x1x7x8xbf16>
    %318 = vector.shape_cast %317 : vector<1x1x7x8xbf16> to vector<7x8xbf16>
    %c0_278 = arith.constant 0 : index
    %c0_279 = arith.constant 0 : index
    %319 = vector.load %arg3[%c0_278, %c0_279] : memref<32x7xbf16, #tpu.memory_space<vmem>>, vector<32x7xbf16>
    %c0_280 = arith.constant 0 : index
    %c0_281 = arith.constant 0 : index
    %320 = vector.load %arg4[%c0_280, %c0_281] : memref<32x1xf32, #tpu.memory_space<vmem>>, vector<32x1xf32>
    %cst_282 = arith.constant dense<0.000000e+00> : vector<32x8xf32>
    %321 = tpu.matmul %319, %318, %cst_282 {dimension_numbers = #tpu.dot_dimension_numbers<[1], [0], [0], [1], [0, 0, 1, 1], [], []>} : vector<32x7xbf16>, vector<7x8xbf16>, vector<32x8xf32> -> vector<32x8xf32>
    %322 = vector.broadcast %320 : vector<32x1xf32> to vector<32x8xf32>
    %323 = arith.addf %321, %322 : vector<32x8xf32>
    %cst_283 = arith.constant 0.000000e+00 : f32
    %324 = vector.broadcast %cst_283 : f32 to vector<32x8xf32>
    %325 = arith.maximumf %323, %324 : vector<32x8xf32>
    %326 = arith.truncf %325 : vector<32x8xf32> to vector<32x8xbf16>
    %c0_284 = arith.constant 0 : index
    %c0_285 = arith.constant 0 : index
    %327 = vector.load %arg5[%c0_284, %c0_285] : memref<64x32xbf16, #tpu.memory_space<vmem>>, vector<64x32xbf16>
    %c0_286 = arith.constant 0 : index
    %c0_287 = arith.constant 0 : index
    %328 = vector.load %arg6[%c0_286, %c0_287] : memref<64x1xf32, #tpu.memory_space<vmem>>, vector<64x1xf32>
    %cst_288 = arith.constant dense<0.000000e+00> : vector<64x8xf32>
    %329 = tpu.matmul %327, %326, %cst_288 {dimension_numbers = #tpu.dot_dimension_numbers<[1], [0], [0], [1], [0, 0, 1, 1], [], []>} : vector<64x32xbf16>, vector<32x8xbf16>, vector<64x8xf32> -> vector<64x8xf32>
    %330 = vector.broadcast %328 : vector<64x1xf32> to vector<64x8xf32>
    %331 = arith.addf %329, %330 : vector<64x8xf32>
    %cst_289 = arith.constant 0.000000e+00 : f32
    %332 = vector.broadcast %cst_289 : f32 to vector<64x8xf32>
    %333 = arith.maximumf %331, %332 : vector<64x8xf32>
    %c0_290 = arith.constant 0 : index
    %c0_291 = arith.constant 0 : index
    %c0_292 = arith.constant 0 : index
    %334 = vector.load %arg7[%c0_290, %c0_291, %c0_292] : memref<1x64x8xf32, #tpu.memory_space<vmem>>, vector<1x64x8xf32>
    %335 = vector.shape_cast %334 : vector<1x64x8xf32> to vector<64x8xf32>
    %336 = arith.maximumf %335, %333 : vector<64x8xf32>
    %c0_293 = arith.constant 0 : index
    %c0_294 = arith.constant 0 : index
    %c0_295 = arith.constant 0 : index
    %337 = vector.load %arg7[%c0_293, %c0_294, %c0_295] : memref<1x64x8xf32, #tpu.memory_space<vmem>>, vector<1x64x8xf32>
    %338 = vector.shape_cast %337 : vector<1x64x8xf32> to vector<64x8xf32>
    %339 = vector.shape_cast %336 : vector<64x8xf32> to vector<1x64x8xf32>
    tpu.vector_store %arg7[%c0_293, %c0_294, %c0_295], %339 {strides = array<i32>} : memref<1x64x8xf32, #tpu.memory_space<vmem>>, vector<1x64x8xf32>,
    %c14_i32 = arith.constant 14 : i32
    %c0_296 = arith.constant 0 : index
    %340 = arith.index_cast %c14_i32 : i32 to index
    %c0_297 = arith.constant 0 : index
    %c0_298 = arith.constant 0 : index
    %341 = vector.load %arg2[%c0_296, %340, %c0_297, %c0_298] : memref<1x16x7x8xbf16, #tpu.memory_space<vmem>>, vector<1x1x7x8xbf16>
    %342 = vector.shape_cast %341 : vector<1x1x7x8xbf16> to vector<7x8xbf16>
    %c0_299 = arith.constant 0 : index
    %c0_300 = arith.constant 0 : index
    %343 = vector.load %arg3[%c0_299, %c0_300] : memref<32x7xbf16, #tpu.memory_space<vmem>>, vector<32x7xbf16>
    %c0_301 = arith.constant 0 : index
    %c0_302 = arith.constant 0 : index
    %344 = vector.load %arg4[%c0_301, %c0_302] : memref<32x1xf32, #tpu.memory_space<vmem>>, vector<32x1xf32>
    %cst_303 = arith.constant dense<0.000000e+00> : vector<32x8xf32>
    %345 = tpu.matmul %343, %342, %cst_303 {dimension_numbers = #tpu.dot_dimension_numbers<[1], [0], [0], [1], [0, 0, 1, 1], [], []>} : vector<32x7xbf16>, vector<7x8xbf16>, vector<32x8xf32> -> vector<32x8xf32>
    %346 = vector.broadcast %344 : vector<32x1xf32> to vector<32x8xf32>
    %347 = arith.addf %345, %346 : vector<32x8xf32>
    %cst_304 = arith.constant 0.000000e+00 : f32
    %348 = vector.broadcast %cst_304 : f32 to vector<32x8xf32>
    %349 = arith.maximumf %347, %348 : vector<32x8xf32>
    %350 = arith.truncf %349 : vector<32x8xf32> to vector<32x8xbf16>
    %c0_305 = arith.constant 0 : index
    %c0_306 = arith.constant 0 : index
    %351 = vector.load %arg5[%c0_305, %c0_306] : memref<64x32xbf16, #tpu.memory_space<vmem>>, vector<64x32xbf16>
    %c0_307 = arith.constant 0 : index
    %c0_308 = arith.constant 0 : index
    %352 = vector.load %arg6[%c0_307, %c0_308] : memref<64x1xf32, #tpu.memory_space<vmem>>, vector<64x1xf32>
    %cst_309 = arith.constant dense<0.000000e+00> : vector<64x8xf32>
    %353 = tpu.matmul %351, %350, %cst_309 {dimension_numbers = #tpu.dot_dimension_numbers<[1], [0], [0], [1], [0, 0, 1, 1], [], []>} : vector<64x32xbf16>, vector<32x8xbf16>, vector<64x8xf32> -> vector<64x8xf32>
    %354 = vector.broadcast %352 : vector<64x1xf32> to vector<64x8xf32>
    %355 = arith.addf %353, %354 : vector<64x8xf32>
    %cst_310 = arith.constant 0.000000e+00 : f32
    %356 = vector.broadcast %cst_310 : f32 to vector<64x8xf32>
    %357 = arith.maximumf %355, %356 : vector<64x8xf32>
    %c0_311 = arith.constant 0 : index
    %c0_312 = arith.constant 0 : index
    %c0_313 = arith.constant 0 : index
    %358 = vector.load %arg7[%c0_311, %c0_312, %c0_313] : memref<1x64x8xf32, #tpu.memory_space<vmem>>, vector<1x64x8xf32>
    %359 = vector.shape_cast %358 : vector<1x64x8xf32> to vector<64x8xf32>
    %360 = arith.maximumf %359, %357 : vector<64x8xf32>
    %c0_314 = arith.constant 0 : index
    %c0_315 = arith.constant 0 : index
    %c0_316 = arith.constant 0 : index
    %361 = vector.load %arg7[%c0_314, %c0_315, %c0_316] : memref<1x64x8xf32, #tpu.memory_space<vmem>>, vector<1x64x8xf32>
    %362 = vector.shape_cast %361 : vector<1x64x8xf32> to vector<64x8xf32>
    %363 = vector.shape_cast %360 : vector<64x8xf32> to vector<1x64x8xf32>
    tpu.vector_store %arg7[%c0_314, %c0_315, %c0_316], %363 {strides = array<i32>} : memref<1x64x8xf32, #tpu.memory_space<vmem>>, vector<1x64x8xf32>,
    %c15_i32 = arith.constant 15 : i32
    %c0_317 = arith.constant 0 : index
    %364 = arith.index_cast %c15_i32 : i32 to index
    %c0_318 = arith.constant 0 : index
    %c0_319 = arith.constant 0 : index
    %365 = vector.load %arg2[%c0_317, %364, %c0_318, %c0_319] : memref<1x16x7x8xbf16, #tpu.memory_space<vmem>>, vector<1x1x7x8xbf16>
    %366 = vector.shape_cast %365 : vector<1x1x7x8xbf16> to vector<7x8xbf16>
    %c0_320 = arith.constant 0 : index
    %c0_321 = arith.constant 0 : index
    %367 = vector.load %arg3[%c0_320, %c0_321] : memref<32x7xbf16, #tpu.memory_space<vmem>>, vector<32x7xbf16>
    %c0_322 = arith.constant 0 : index
    %c0_323 = arith.constant 0 : index
    %368 = vector.load %arg4[%c0_322, %c0_323] : memref<32x1xf32, #tpu.memory_space<vmem>>, vector<32x1xf32>
    %cst_324 = arith.constant dense<0.000000e+00> : vector<32x8xf32>
    %369 = tpu.matmul %367, %366, %cst_324 {dimension_numbers = #tpu.dot_dimension_numbers<[1], [0], [0], [1], [0, 0, 1, 1], [], []>} : vector<32x7xbf16>, vector<7x8xbf16>, vector<32x8xf32> -> vector<32x8xf32>
    %370 = vector.broadcast %368 : vector<32x1xf32> to vector<32x8xf32>
    %371 = arith.addf %369, %370 : vector<32x8xf32>
    %cst_325 = arith.constant 0.000000e+00 : f32
    %372 = vector.broadcast %cst_325 : f32 to vector<32x8xf32>
    %373 = arith.maximumf %371, %372 : vector<32x8xf32>
    %374 = arith.truncf %373 : vector<32x8xf32> to vector<32x8xbf16>
    %c0_326 = arith.constant 0 : index
    %c0_327 = arith.constant 0 : index
    %375 = vector.load %arg5[%c0_326, %c0_327] : memref<64x32xbf16, #tpu.memory_space<vmem>>, vector<64x32xbf16>
    %c0_328 = arith.constant 0 : index
    %c0_329 = arith.constant 0 : index
    %376 = vector.load %arg6[%c0_328, %c0_329] : memref<64x1xf32, #tpu.memory_space<vmem>>, vector<64x1xf32>
    %cst_330 = arith.constant dense<0.000000e+00> : vector<64x8xf32>
    %377 = tpu.matmul %375, %374, %cst_330 {dimension_numbers = #tpu.dot_dimension_numbers<[1], [0], [0], [1], [0, 0, 1, 1], [], []>} : vector<64x32xbf16>, vector<32x8xbf16>, vector<64x8xf32> -> vector<64x8xf32>
    %378 = vector.broadcast %376 : vector<64x1xf32> to vector<64x8xf32>
    %379 = arith.addf %377, %378 : vector<64x8xf32>
    %cst_331 = arith.constant 0.000000e+00 : f32
    %380 = vector.broadcast %cst_331 : f32 to vector<64x8xf32>
    %381 = arith.maximumf %379, %380 : vector<64x8xf32>
    %c0_332 = arith.constant 0 : index
    %c0_333 = arith.constant 0 : index
    %c0_334 = arith.constant 0 : index
    %382 = vector.load %arg7[%c0_332, %c0_333, %c0_334] : memref<1x64x8xf32, #tpu.memory_space<vmem>>, vector<1x64x8xf32>
    %383 = vector.shape_cast %382 : vector<1x64x8xf32> to vector<64x8xf32>
    %384 = arith.maximumf %383, %381 : vector<64x8xf32>
    %c0_335 = arith.constant 0 : index
    %c0_336 = arith.constant 0 : index
    %c0_337 = arith.constant 0 : index
    %385 = vector.load %arg7[%c0_335, %c0_336, %c0_337] : memref<1x64x8xf32, #tpu.memory_space<vmem>>, vector<1x64x8xf32>
    %386 = vector.shape_cast %385 : vector<1x64x8xf32> to vector<64x8xf32>
    %387 = vector.shape_cast %384 : vector<64x8xf32> to vector<1x64x8xf32>
    tpu.vector_store %arg7[%c0_335, %c0_336, %c0_337], %387 {strides = array<i32>} : memref<1x64x8xf32, #tpu.memory_space<vmem>>, vector<1x64x8xf32>,
    %c16_i32 = arith.constant 16 : i32
    return
  }
  func.func @transform_0(%arg0: i32, %arg1: i32) -> (i32, i32, i32, i32) {
    %c0_i32 = arith.constant 0 : i32
    %c0_i32_0 = arith.constant 0 : i32
    %c0_i32_1 = arith.constant 0 : i32
    return %arg0, %c0_i32, %c0_i32_0, %arg1 : i32, i32, i32, i32
  }
  func.func @transform_1(%arg0: i32, %arg1: i32) -> (i32, i32) {
    %c0_i32 = arith.constant 0 : i32
    %c0_i32_0 = arith.constant 0 : i32
    %c0_i32_1 = arith.constant 0 : i32
    return %c0_i32, %c0_i32_0 : i32, i32
  }
  func.func @transform_2(%arg0: i32, %arg1: i32) -> (i32, i32) {
    %c0_i32 = arith.constant 0 : i32
    %c0_i32_0 = arith.constant 0 : i32
    %c0_i32_1 = arith.constant 0 : i32
    return %c0_i32, %c0_i32_0 : i32, i32
  }
  func.func @transform_3(%arg0: i32, %arg1: i32) -> (i32, i32) {
    %c0_i32 = arith.constant 0 : i32
    %c0_i32_0 = arith.constant 0 : i32
    %c0_i32_1 = arith.constant 0 : i32
    return %c0_i32, %c0_i32_0 : i32, i32
  }
  func.func @transform_4(%arg0: i32, %arg1: i32) -> (i32, i32) {
    %c0_i32 = arith.constant 0 : i32
    %c0_i32_0 = arith.constant 0 : i32
    %c0_i32_1 = arith.constant 0 : i32
    return %c0_i32, %c0_i32_0 : i32, i32
  }
  func.func @transform_5(%arg0: i32, %arg1: i32) -> (i32, i32, i32) {
    %c0_i32 = arith.constant 0 : i32
    %c0_i32_0 = arith.constant 0 : i32
    return %arg0, %c0_i32, %arg1 : i32, i32, i32
  }
}

</mosaic_0001>

<bundles_post_ra>
// kernel: custom-call.12
= control target key start
LH: loop header
LB: loop body
LE: loop exit
PB: predicated region body
PF: predicated region fallthrough
CT: control target
= control target key end

     0   :  { %s6_s0 = inlined_call_operand.vmem [shape: f32[2,32], index: 0, kind: output, shape index: {}]  }

// kernel: custom-call.14
= control target key start
LH: loop header
LB: loop body
LE: loop exit
PB: predicated region body
PF: predicated region fallthrough
CT: control target
= control target key end

     0   :  { %s6_s0 = inlined_call_operand.vmem [shape: s32[7,2], index: 0, kind: output, shape index: {}]  }

// kernel: _msg_forward.2
= control target key start
LH: loop header
LB: loop body
LE: loop exit
PB: predicated region body
PF: predicated region fallthrough
CT: control target
= control target key end

     0   :  { %s2108_s18 = smov 0   ;;  %s2110_s19 = smov 0   ;;  %s2412_s0 = inlined_call_operand.vmem [shape: bf16[2,8,7,8], index: 0, kind: input, shape index: {}]   ;;  %s2413_s1 = inlined_call_operand.vmem [shape: bf16[16,7], index: 1, kind: input, shape index: {}]   ;;  %s2414_s2 = inlined_call_operand.vmem [shape: f32[16,1], index: 2, kind: input, shape index: {}]   ;;  %s2415_s3 = inlined_call_operand.vmem [shape: bf16[32,16], index: 3, kind: input, shape index: {}]   ;;  %s2416_s4 = inlined_call_operand.vmem [shape: f32[32,1], index: 4, kind: input, shape index: {}]   ;;  %s2417_s5 = inlined_call_operand.vmem [shape: f32[2,32,8], index: 5, kind: output, shape index: {}]  }
   0x1   :  { %s2112_s20 = smov 0  }
   0x2 LB: > { %s27_s21 = sadd.s32 1, %s2067_s19  ;;  %p1794_p0 = scmp.ge.s32.totalorder %s2071_s20, 1  ;;  %s2071_s20 = sphi %s2112_s20, %s15_s20   ;;  %s2067_s19 = sphi %s2110_s19, %s2419_s19   ;;  %s2063_s18 = sphi %s2108_s18, %s2418_s18  }
   0x3   : > { %p29_p1 = scmp.ge.s32.totalorder %s27_s21, 2  ;;  %p206_p2 = scmp.lt.s32.totalorder %s2071_s20, 3 }
   0x5   : > { %s2421_s21 = smov (%p29_p1, %s27_s21), 0  ;;  %p207_p3 = pnand %p1794_p0, %p206_p2 }
   0x6   : > { %p240_p4 = scmp.lt.s32.totalorder (!%p207_p3), %s2063_s18, 1 }
   0x7   : > { %210 = sbr.rel (%p207_p3) target bundleno = 506 (0x1fa), region = 40 }
   0xc   : > { %v451_v0 = vld [vmem:[%s2414_s2] sm:$0xff]  ;;  %vm286_vm0 = vcmask 1042432   ;;  %v2073_v1 = vmov 0   ;;  %vm287_vm1 = vcmask 1043456   ;;  %s2423_s18 = smov (!%p240_p4, %s2063_s18), 1  ;;  %v2074_v2 = vmov 65535  }
   0xd   : > { %2024 = vset.pattern.permute.xlu1 %v2073_v1  ;;  %2023 = vset.pattern.permute.xlu0 %v2073_v1  ;;  %v288_v3 = vsel %vm286_vm0, 4294967295, %v2074_v2  ;;  %v452_v4 = vld [vmem:[%s2414_s2 + $0x8] sm:$0xff]  ;;  %v2075_v5 = vmov 0.0   ;;  %vm2076_vm2 = vmmov 0   ;;  %s1856_s26 = sshll.u32 %s2423_s18, 5  ;;  %v2025_v10 = vld [vmem:[%s2413_s1] sm:$0xff]  }
   0xe   : > { %455 = vperm.xlu1 %2024, %v451_v0   ;;  %269 = vperm.xlu0 %2023, %v451_v0   ;;  %v2138_v6 = vsel %vm287_vm1, %v288_v3, 0  ;;  %s2145_s29 = scalar_lea.vmem %s2412_s0, %s1856_s26  ;;  %vm282_vm3 = vcmask 56320   ;;  %v2026_v13 = vld [vmem:[%s2413_s1] sm:$0xff]   ;;  %v342_v19 = vld [vmem:[%s2416_s4 + $0x8] sm:$0xff]  ;;  %v344_v23 = vld [vmem:[%s2416_s4 + $0x18] sm:$0xff]  ;;  %vm375_vm4 = vcmask 130048   ;;  %s2237_s13 = scalar_lea.vmem %s2417_s5, %s1856_s26 }
   0xf   : > { %1898 = vmatprep.subr.bf16.mxu0 %v2075_v5  ;;  %1900 = vmatprep.mubr.msk.bf16.mxu0 %vm2076_vm2, %v2075_v5  ;;  %v262_v7 = vld [vmem:[%s2145_s29] sm:$0xf]  ;;  %v1805_v8 = vld [vmem:[%s2145_s29 + $0x4] sm:$0xf]  ;;  %v1812_v12 = vld [vmem:[%s2145_s29 + $0x8] sm:$0xf] }
  0x10   : > { %v291_v9 = vand.u32 %v2138_v6, %v262_v7  ;;  %v472_v11 = vand.u32 %v1805_v8, %v2138_v6  ;;  %v652_v14 = vand.u32 %v1812_v12, %v2138_v6  ;;  %v1819_v15 = vld [vmem:[%s2145_s29 + $0xc] sm:$0xf]  ;;  %v2027_v16 = vld [vmem:[%s2413_s1] sm:$0xff]   ;;  %v1826_v18 = vld [vmem:[%s2145_s29 + $0x10] sm:$0xf]  ;;  %vm257_vm5 = vcmask 64512  }
  0x11   : > { %v832_v17 = vand.u32 %v1819_v15, %v2138_v6  ;;  %v341_v20 = vld [vmem:[%s2416_s4] sm:$0xff]  ;;  %v1012_v22 = vand.u32 %v1826_v18, %v2138_v6  ;;  %v343_v24 = vld [vmem:[%s2416_s4 + $0x10] sm:$0xff]  ;;  %v1840_v28 = vld [vmem:[%s2145_s29 + $0x18] sm:$0xf]  ;;  %v2077_v36 = vmov -inf  }
  0x12   : > { %460 = vperm.xlu1 %2024, %v452_v4   ;;  %274 = vperm.xlu0 %2023, %v452_v4   ;;  %v2028_v21 = vld [vmem:[%s2413_s1] sm:$0xff]   ;;  %v1833_v25 = vld [vmem:[%s2145_s29 + $0x14] sm:$0xf]  ;;  %v1372_v30 = vand.u32 %v1840_v28, %v2138_v6  ;;  %v1847_v31 = vld [vmem:[%s2145_s29 + $0x1c] sm:$0xf]  ;;  %260 = vst.msk [vmem:[%s2237_s13 + $0x10] sm:$0xff] %vm257_vm5, %v2077_v36 }
  0x13   : > { %1899 = vmatpush3.bf16.msra.mxu0 %v291_v9  ;;  %v2029_v26 = vld [vmem:[%s2413_s1] sm:$0xff]   ;;  %v1192_v27 = vand.u32 %v1833_v25, %v2138_v6  ;;  %v1552_v33 = vand.u32 %v1847_v31, %v2138_v6  ;;  %258 = vst.msk [vmem:[%s2237_s13] sm:$0xff] %vm257_vm5, %v2077_v36  ;;  %259 = vst.msk [vmem:[%s2237_s13 + $0x8] sm:$0xff] %vm257_vm5, %v2077_v36  ;;  %v2034_v52 = vld [vmem:[%s2415_s3 + $0x8] sm:$0xff]  }
  0x14   : > { %1910 = vmatprep.subr.bf16.mxu0 %v2075_v5  ;;  %v2030_v29 = vld [vmem:[%s2413_s1] sm:$0xff]   ;;  %261 = vst.msk [vmem:[%s2237_s13 + $0x18] sm:$0xff] %vm257_vm5, %v2077_v36  ;;  %v2036_v1 = vld [vmem:[%s2415_s3 + $0x8] sm:$0xff]  }
  0x15   : > { %v2031_v32 = vld [vmem:[%s2413_s1] sm:$0xff]  }
  0x16   : > { %640 = vperm.xlu1 %2024, %v452_v4   ;;  %635 = vperm.xlu0 %2023, %v451_v0   ;;  %v2032_v34 = vld [vmem:[%s2413_s1] sm:$0xff]  }
  0x17   : > { %1901 = vmatmul.mubr.msk.bf16.vlgmr.msra.gmra.mxu0 %vm282_vm3, %v2025_v10  ;;  %v2033_v35 = vld [vmem:[%s2415_s3] sm:$0xff]  }
  0x18   : > { %1911 = vmatpush3.bf16.msra.mxu0 %v472_v11  ;;  %1912 = vmatprep.mubr.msk.bf16.mxu0 %vm2076_vm2, %v2075_v5  ;;  %v2035_v55 = vld [vmem:[%s2415_s3] sm:$0xff]  }
  0x19   : > { %1922 = vmatprep.subr.bf16.mxu0 %v2075_v5  ;;  %1906 = vmatprep.mubr.msk.bf16.mxu1 %vm375_vm4, %v2033_v35 }
  0x1a   : > { %820 = vperm.xlu1 %2024, %v452_v4   ;;  %815 = vperm.xlu0 %2023, %v451_v0  }
  0x1e   : > { %1000 = vperm.xlu1 %2024, %v452_v4   ;;  %995 = vperm.xlu0 %2023, %v451_v0  }
  0x1f   : > { %1913 = vmatmul.mubr.msk.bf16.vlgmr.msra.gmra.mxu0 %vm282_vm3, %v2026_v13 }
  0x20   : > { %1923 = vmatpush3.bf16.msra.mxu0 %v652_v14  ;;  %1924 = vmatprep.mubr.msk.bf16.mxu0 %vm2076_vm2, %v2075_v5  ;;  %v2038_v14 = vld [vmem:[%s2415_s3 + $0x8] sm:$0xff]  }
  0x21   : > { %1934 = vmatprep.subr.bf16.mxu0 %v2075_v5 }
  0x22   : > { %1180 = vperm.xlu1 %2024, %v452_v4   ;;  %1175 = vperm.xlu0 %2023, %v451_v0  }
  0x26   : > { %1360 = vperm.xlu1 %2024, %v452_v4   ;;  %1355 = vperm.xlu0 %2023, %v451_v0  }
  0x27   : > { %1925 = vmatmul.mubr.msk.bf16.vlgmr.msra.gmra.mxu0 %vm282_vm3, %v2027_v16 }
  0x28   : > { %1935 = vmatpush3.bf16.msra.mxu0 %v832_v17  ;;  %1936 = vmatprep.mubr.msk.bf16.mxu0 %vm2076_vm2, %v2075_v5  ;;  %v2039_v17 = vld [vmem:[%s2415_s3] sm:$0xff]  }
  0x29   : > { %1946 = vmatprep.subr.bf16.mxu0 %v2075_v5 }
  0x2a   : > { %1540 = vperm.xlu1 %2024, %v452_v4   ;;  %1535 = vperm.xlu0 %2023, %v451_v0   ;;  %v2037_v4 = vld [vmem:[%s2415_s3] sm:$0xff]  }
  0x2e   : > { %352 = vperm.xlu1 %2024, %v342_v19   ;;  %347 = vperm.xlu0 %2023, %v341_v20  }
  0x2f   : > { %1937 = vmatmul.mubr.msk.bf16.vlgmr.msra.gmra.mxu0 %vm282_vm3, %v2028_v21 }
  0x30   : > { %1947 = vmatpush3.bf16.msra.mxu0 %v1012_v22  ;;  %1948 = vmatprep.mubr.msk.bf16.mxu0 %vm2076_vm2, %v2075_v5 }
  0x31   : > { %1958 = vmatprep.subr.bf16.mxu0 %v2075_v5 }
  0x32   : > { %362 = vperm.xlu1 %2024, %v344_v23   ;;  %357 = vperm.xlu0 %2023, %v343_v24  }
  0x36   : > { %533 = vperm.xlu1 %2024, %v342_v19   ;;  %528 = vperm.xlu0 %2023, %v341_v20  }
  0x37   : > { %1949 = vmatmul.mubr.msk.bf16.vlgmr.msra.gmra.mxu0 %vm282_vm3, %v2029_v26 }
  0x38   : > { %1959 = vmatpush3.bf16.msra.mxu0 %v1192_v27  ;;  %1960 = vmatprep.mubr.msk.bf16.mxu0 %vm2076_vm2, %v2075_v5  ;;  %v2040_v27 = vld [vmem:[%s2415_s3 + $0x8] sm:$0xff]  }
  0x39   : > { %1970 = vmatprep.subr.bf16.mxu0 %v2075_v5 }
  0x3a   : > { %543 = vperm.xlu1 %2024, %v344_v23   ;;  %538 = vperm.xlu0 %2023, %v343_v24  }
  0x3e   : > { %713 = vperm.xlu1 %2024, %v342_v19   ;;  %708 = vperm.xlu0 %2023, %v341_v20  }
  0x3f   : > { %1961 = vmatmul.mubr.msk.bf16.vlgmr.msra.gmra.mxu0 %vm282_vm3, %v2030_v29 }
  0x40   : > { %1971 = vmatpush3.bf16.msra.mxu0 %v1372_v30  ;;  %1972 = vmatprep.mubr.msk.bf16.mxu0 %vm2076_vm2, %v2075_v5  ;;  %v2041_v30 = vld [vmem:[%s2415_s3] sm:$0xff]  }
  0x41   : > { %1982 = vmatprep.subr.bf16.mxu0 %v2075_v5 }
  0x42   : > { %723 = vperm.xlu1 %2024, %v344_v23   ;;  %718 = vperm.xlu0 %2023, %v343_v24  }
  0x46   : > { %893 = vperm.xlu1 %2024, %v342_v19   ;;  %888 = vperm.xlu0 %2023, %v341_v20  }
  0x47   : > { %1973 = vmatmul.mubr.msk.bf16.vlgmr.msra.gmra.mxu0 %vm282_vm3, %v2031_v32 }
  0x48   : > { %1983 = vmatpush3.bf16.msra.mxu0 %v1552_v33  ;;  %1984 = vmatprep.mubr.msk.bf16.mxu0 %vm2076_vm2, %v2075_v5 }
  0x4a   : > { %903 = vperm.xlu1 %2024, %v344_v23   ;;  %898 = vperm.xlu0 %2023, %v343_v24  }
  0x4e   : > { %1073 = vperm.xlu1 %2024, %v342_v19   ;;  %1068 = vperm.xlu0 %2023, %v341_v20  }
  0x4f   : > { %1985 = vmatmul.mubr.msk.bf16.vlgmr.msra.gmra.mxu0 %vm282_vm3, %v2032_v34 }
  0x52   : > { %1083 = vperm.xlu1 %2024, %v344_v23   ;;  %1078 = vperm.xlu0 %2023, %v343_v24  }
  0x56   : > { %1253 = vperm.xlu1 %2024, %v342_v19   ;;  %1248 = vperm.xlu0 %2023, %v341_v20  }
  0x5a   : > { %1263 = vperm.xlu1 %2024, %v344_v23   ;;  %1258 = vperm.xlu0 %2023, %v343_v24  }
  0x5e   : > { %1433 = vperm.xlu1 %2024, %v342_v19   ;;  %1428 = vperm.xlu0 %2023, %v341_v20  }
  0x62   : > { %1443 = vperm.xlu1 %2024, %v344_v23   ;;  %1438 = vperm.xlu0 %2023, %v343_v24  }
  0x66   : > { %1613 = vperm.xlu1 %2024, %v342_v19   ;;  %1608 = vperm.xlu0 %2023, %v341_v20  }
  0x6a   : > { %1623 = vperm.xlu1 %2024, %v344_v23   ;;  %1618 = vperm.xlu0 %2023, %v343_v24  }
  0x89   : > { %v270_v37 = vpop.permute.xlu0 %269  ;;  %v456_v44 = vpop.permute.xlu1 %455 }
  0x8d   : > { %v275_v41 = vpop.permute.xlu0 %274  ;;  %v461_v53 = vpop.permute.xlu1 %460 }
  0x91   : > { %v636_v62 = vpop.permute.xlu0 %635  ;;  %v641_v2 = vpop.permute.xlu1 %640 }
  0x95   : > { %v816_v11 = vpop.permute.xlu0 %815  ;;  %v821_v15 = vpop.permute.xlu1 %820 }
  0x99   : > { %v996_v24 = vpop.permute.xlu0 %995  ;;  %v1001_v28 = vpop.permute.xlu1 %1000 }
  0xd7   : > { %v327_v38 = vpop.f32.mrf.mxu0 }
  0xd8   : > { %v328_v40 = vadd.f32 %v327_v38, %v270_v37  ;;  %v1176_v37 = vpop.permute.xlu0 %1175 }
  0xd9   : > { %v1902_v39 = vpop.f32.mrf.mxu0 }
  0xda   : > { %v334_v46 = vmax.f32 %v328_v40, 0.0  ;;  %v2042_v40 = vld [vmem:[%s2415_s3 + $0x8] sm:$0xff]  }
  0xdb   : > { %v330_v42 = vpop.f32.mrf.mxu0 }
  0xdc   : > { %v331_v43 = vadd.f32 %v330_v42, %v275_v41  ;;  %v1181_v41 = vpop.permute.xlu1 %1180 }
  0xdd   : > { %v1903_v45 = vpop.f32.mrf.mxu0 }
  0xde   : > { %v335_v47 = vmax.f32 %v331_v43, 0.0  ;;  %v2043_v43 = vld [vmem:[%s2415_s3] sm:$0xff]  }
  0xdf   : > { %v508_v48 = vpop.f32.mrf.mxu0 }
  0xe0   : > { %v336_v49 = vpack.c.bf16 %v335_v47, %v334_v46  ;;  %v509_v51 = vadd.f32 %v508_v48, %v456_v44 }
  0xe1   : > { %v1914_v50 = vpop.f32.mrf.mxu0 }
  0xe2   : > { %1904 = vmatprep.subr.bf16.mxu1 %v336_v49  ;;  %v515_v58 = vmax.f32 %v509_v51, 0.0  ;;  %v1356_v50 = vpop.permute.xlu0 %1355 }
  0xe3   : > { %1905 = vmatpush3.bf16.msra.mxu1 %v336_v49  ;;  %v511_v54 = vpop.f32.mrf.mxu0 }
  0xe4   : > { %v512_v56 = vadd.f32 %v511_v54, %v461_v53  ;;  %v2044_v53 = vld [vmem:[%s2415_s3 + $0x8] sm:$0xff]   ;;  %v1361_v54 = vpop.permute.xlu1 %1360 }
  0xe5   : > { %v1915_v57 = vpop.f32.mrf.mxu0 }
  0xe6   : > { %v516_v59 = vmax.f32 %v512_v56, 0.0  ;;  %1907 = vmatmul.mubr.msk.bf16.vlgmr.msra.gmra.mxu1 %vm375_vm4, %v2034_v52  ;;  %v2045_v56 = vld [vmem:[%s2415_s3] sm:$0xff]  }
  0xe7   : > { %v688_v60 = vpop.f32.mrf.mxu0  ;;  %1918 = vmatprep.mubr.msk.bf16.mxu1 %vm375_vm4, %v2035_v55 }
  0xe8   : > { %v517_v61 = vpack.c.bf16 %v516_v59, %v515_v58  ;;  %v689_v0 = vadd.f32 %v688_v60, %v636_v62 }
  0xe9   : > { %v1926_v63 = vpop.f32.mrf.mxu0 }
  0xea   : > { %1916 = vmatprep.subr.bf16.mxu1 %v517_v61  ;;  %v695_v7 = vmax.f32 %v689_v0, 0.0  ;;  %v1536_v63 = vpop.permute.xlu0 %1535 }
  0xeb   : > { %1917 = vmatpush3.bf16.msra.mxu1 %v517_v61  ;;  %v691_v3 = vpop.f32.mrf.mxu0 }
  0xec   : > { %v692_v5 = vadd.f32 %v691_v3, %v641_v2  ;;  %v2046_v2 = vld [vmem:[%s2415_s3 + $0x8] sm:$0xff]   ;;  %v1541_v3 = vpop.permute.xlu1 %1540 }
  0xed   : > { %v1927_v6 = vpop.f32.mrf.mxu0 }
  0xee   : > { %v696_v8 = vmax.f32 %v692_v5, 0.0  ;;  %1919 = vmatmul.mubr.msk.bf16.vlgmr.msra.gmra.mxu1 %vm375_vm4, %v2036_v1  ;;  %v2047_v5 = vld [vmem:[%s2415_s3] sm:$0xff]  }
  0xef   : > { %v868_v9 = vpop.f32.mrf.mxu0  ;;  %1930 = vmatprep.mubr.msk.bf16.mxu1 %vm375_vm4, %v2037_v4 }
  0xf0   : > { %v697_v10 = vpack.c.bf16 %v696_v8, %v695_v7  ;;  %v869_v13 = vadd.f32 %v868_v9, %v816_v11  ;;  %v2048_v11 = vld [vmem:[%s2415_s3 + $0x8] sm:$0xff]  }
  0xf1   : > { %v1938_v12 = vpop.f32.mrf.mxu0 }
  0xf2   : > { %1928 = vmatprep.subr.bf16.mxu1 %v697_v10  ;;  %v875_v20 = vmax.f32 %v869_v13, 0.0  ;;  %v348_v12 = vpop.permute.xlu0 %347  ;;  %v353_v13 = vpop.permute.xlu1 %352 }
  0xf3   : > { %1929 = vmatpush3.bf16.msra.mxu1 %v697_v10  ;;  %v871_v16 = vpop.f32.mrf.mxu0 }
  0xf4   : > { %v872_v18 = vadd.f32 %v871_v16, %v821_v15 }
  0xf5   : > { %v1939_v19 = vpop.f32.mrf.mxu0 }
  0xf6   : > { %v876_v21 = vmax.f32 %v872_v18, 0.0  ;;  %1931 = vmatmul.mubr.msk.bf16.vlgmr.msra.gmra.mxu1 %vm375_vm4, %v2038_v14  ;;  %v358_v14 = vpop.permute.xlu0 %357  ;;  %v363_v15 = vpop.permute.xlu1 %362 }
  0xf7   : > { %v1048_v22 = vpop.f32.mrf.mxu0  ;;  %1942 = vmatprep.mubr.msk.bf16.mxu1 %vm375_vm4, %v2039_v17 }
  0xf8   : > { %v877_v23 = vpack.c.bf16 %v876_v21, %v875_v20  ;;  %v1049_v26 = vadd.f32 %v1048_v22, %v996_v24 }
  0xf9   : > { %v1950_v25 = vpop.f32.mrf.mxu0 }
  0xfa   : > { %1940 = vmatprep.subr.bf16.mxu1 %v877_v23  ;;  %v1055_v33 = vmax.f32 %v1049_v26, 0.0  ;;  %v529_v16 = vpop.permute.xlu0 %528  ;;  %v534_v17 = vpop.permute.xlu1 %533 }
  0xfb   : > { %1941 = vmatpush3.bf16.msra.mxu1 %v877_v23  ;;  %v1051_v29 = vpop.f32.mrf.mxu0  ;;  %v437_v23 = vld [vmem:[%s2237_s13 + $0x10] sm:$0xff] }
  0xfc   : > { %v1052_v31 = vadd.f32 %v1051_v29, %v1001_v28 }
  0xfd   : > { %v1951_v32 = vpop.f32.mrf.mxu0 }
  0xfe   : > { %v1056_v34 = vmax.f32 %v1052_v31, 0.0  ;;  %1943 = vmatmul.mubr.msk.bf16.vlgmr.msra.gmra.mxu1 %vm375_vm4, %v2040_v27  ;;  %v539_v18 = vpop.permute.xlu0 %538  ;;  %v544_v19 = vpop.permute.xlu1 %543  ;;  %v435_v27 = vld [vmem:[%s2237_s13] sm:$0xff] }
  0xff   : > { %v1228_v35 = vpop.f32.mrf.mxu0  ;;  %1954 = vmatprep.mubr.msk.bf16.mxu1 %vm375_vm4, %v2041_v30 }
 0x100   : > { %v1057_v36 = vpack.c.bf16 %v1056_v34, %v1055_v33  ;;  %v1229_v39 = vadd.f32 %v1228_v35, %v1176_v37  ;;  %v438_v33 = vld [vmem:[%s2237_s13 + $0x18] sm:$0xff] }
 0x101   : > { %v1962_v38 = vpop.f32.mrf.mxu0 }
 0x102   : > { %1952 = vmatprep.subr.bf16.mxu1 %v1057_v36  ;;  %v1235_v46 = vmax.f32 %v1229_v39, 0.0  ;;  %v709_v22 = vpop.permute.xlu0 %708  ;;  %v714_v32 = vpop.permute.xlu1 %713  ;;  %v436_v39 = vld [vmem:[%s2237_s13 + $0x8] sm:$0xff] }
 0x103   : > { %1953 = vmatpush3.bf16.msra.mxu1 %v1057_v36  ;;  %v1231_v42 = vpop.f32.mrf.mxu0 }
 0x104   : > { %v1232_v44 = vadd.f32 %v1231_v42, %v1181_v41 }
 0x105   : > { %v1963_v45 = vpop.f32.mrf.mxu0 }
 0x106   : > { %v1236_v47 = vmax.f32 %v1232_v44, 0.0  ;;  %1955 = vmatmul.mubr.msk.bf16.vlgmr.msra.gmra.mxu1 %vm375_vm4, %v2042_v40  ;;  %v719_v38 = vpop.permute.xlu0 %718 }
 0x107   : > { %v1408_v48 = vpop.f32.mrf.mxu0  ;;  %1966 = vmatprep.mubr.msk.bf16.mxu1 %vm375_vm4, %v2043_v43 }
 0x108   : > { %v1237_v49 = vpack.c.bf16 %v1236_v47, %v1235_v46  ;;  %v1409_v52 = vadd.f32 %v1408_v48, %v1356_v50  ;;  %v724_v47 = vpop.permute.xlu1 %723 }
 0x109   : > { %v1974_v51 = vpop.f32.mrf.mxu0 }
 0x10a   : > { %1964 = vmatprep.subr.bf16.mxu1 %v1237_v49  ;;  %v1415_v59 = vmax.f32 %v1409_v52, 0.0  ;;  %v889_v51 = vpop.permute.xlu0 %888 }
 0x10b   : > { %1965 = vmatpush3.bf16.msra.mxu1 %v1237_v49  ;;  %v1411_v55 = vpop.f32.mrf.mxu0 }
 0x10c   : > { %v1412_v57 = vadd.f32 %v1411_v55, %v1361_v54 }
 0x10d   : > { %v1975_v58 = vpop.f32.mrf.mxu0 }
 0x10e   : > { %v1416_v60 = vmax.f32 %v1412_v57, 0.0  ;;  %1967 = vmatmul.mubr.msk.bf16.vlgmr.msra.gmra.mxu1 %vm375_vm4, %v2044_v53 }
 0x10f   : > { %v1588_v61 = vpop.f32.mrf.mxu0  ;;  %1978 = vmatprep.mubr.msk.bf16.mxu1 %vm375_vm4, %v2045_v56 }
 0x110   : > { %v1417_v62 = vpack.c.bf16 %v1416_v60, %v1415_v59  ;;  %v1589_v1 = vadd.f32 %v1588_v61, %v1536_v63  ;;  %v894_v61 = vpop.permute.xlu1 %893 }
 0x111   : > { %v1986_v0 = vpop.f32.mrf.mxu0 }
 0x112   : > { %1976 = vmatprep.subr.bf16.mxu1 %v1417_v62  ;;  %v1595_v8 = vmax.f32 %v1589_v1, 0.0 }
 0x113   : > { %1977 = vmatpush3.bf16.msra.mxu1 %v1417_v62  ;;  %v1591_v4 = vpop.f32.mrf.mxu0 }
 0x114   : > { %v1592_v6 = vadd.f32 %v1591_v4, %v1541_v3  ;;  %v899_v3 = vpop.permute.xlu0 %898 }
 0x115   : > { %v1987_v7 = vpop.f32.mrf.mxu0 }
 0x116   : > { %v1596_v9 = vmax.f32 %v1592_v6, 0.0  ;;  %1979 = vmatmul.mubr.msk.bf16.vlgmr.msra.gmra.mxu1 %vm375_vm4, %v2046_v2 }
 0x117   : > { %1990 = vmatprep.mubr.msk.bf16.mxu1 %vm375_vm4, %v2047_v5 }
 0x118   : > { %v1597_v10 = vpack.c.bf16 %v1596_v9, %v1595_v8 }
 0x11a   : > { %1988 = vmatprep.subr.bf16.mxu1 %v1597_v10 }
 0x11b   : > { %1989 = vmatpush3.bf16.msra.mxu1 %v1597_v10 }
 0x11e   : > { %1991 = vmatmul.mubr.msk.bf16.vlgmr.msra.gmra.mxu1 %vm375_vm4, %v2048_v11  ;;  %v904_v11 = vpop.permute.xlu1 %903 }
 0x1a6   : > { %v1908_v20 = vpop.f32.mrf.mxu1 }
 0x1a7   : > { %v425_v21 = vadd.f32 %v1908_v20, %v358_v14 }
 0x1a8   : > { %v416_v24 = vpop.f32.mrf.mxu1 }
 0x1a9   : > { %v433_v25 = vmax.f32 %v425_v21, 0.0  ;;  %v417_v26 = vadd.f32 %v416_v24, %v348_v12 }
 0x1aa   : > { %v1909_v28 = vpop.f32.mrf.mxu1 }
 0x1ab   : > { %v441_v29 = vmax.f32 %v437_v23, %v433_v25  ;;  %v431_v30 = vmax.f32 %v417_v26, 0.0  ;;  %v428_v31 = vadd.f32 %v1909_v28, %v363_v15 }
 0x1ac   : > { %v419_v34 = vpop.f32.mrf.mxu1 }
 0x1ad   : > { %445 = vst.msk [vmem:[%s2237_s13 + $0x10] sm:$0xff] %vm257_vm5, %v441_v29  ;;  %v439_v35 = vmax.f32 %v435_v27, %v431_v30  ;;  %v434_v36 = vmax.f32 %v428_v31, 0.0  ;;  %v420_v37 = vadd.f32 %v419_v34, %v353_v13  ;;  %v1074_v27 = vpop.permute.xlu1 %1073 }
 0x1ae   : > { %v1920_v40 = vpop.f32.mrf.mxu1 }
 0x1af   : > { %443 = vst.msk [vmem:[%s2237_s13] sm:$0xff] %vm257_vm5, %v439_v35  ;;  %v442_v41 = vmax.f32 %v438_v33, %v434_v36  ;;  %v432_v42 = vmax.f32 %v420_v37, 0.0  ;;  %v605_v43 = vadd.f32 %v1920_v40, %v539_v18 }
 0x1b0   : > { %v596_v44 = vpop.f32.mrf.mxu1 }
 0x1b1   : > { %446 = vst.msk [vmem:[%s2237_s13 + $0x18] sm:$0xff] %vm257_vm5, %v442_v41  ;;  %v440_v45 = vmax.f32 %v436_v39, %v432_v42  ;;  %v597_v46 = vadd.f32 %v596_v44, %v529_v16  ;;  %v613_v49 = vmax.f32 %v605_v43, 0.0  ;;  %v1084_v41 = vpop.permute.xlu1 %1083 }
 0x1b2   : > { %v1921_v48 = vpop.f32.mrf.mxu1 }
 0x1b3   : > { %444 = vst.msk [vmem:[%s2237_s13 + $0x8] sm:$0xff] %vm257_vm5, %v440_v45  ;;  %v608_v50 = vadd.f32 %v1921_v48, %v544_v19  ;;  %v611_v55 = vmax.f32 %v597_v46, 0.0 }
 0x1b4   : > { %v617_v52 = vld [vmem:[%s2237_s13 + $0x10] sm:$0xff]  ;;  %v599_v53 = vpop.f32.mrf.mxu1 }
 0x1b5   : > { %v621_v54 = vmax.f32 %v617_v52, %v613_v49  ;;  %v600_v56 = vadd.f32 %v599_v53, %v534_v17  ;;  %v614_v60 = vmax.f32 %v608_v50, 0.0  ;;  %v1069_v17 = vpop.permute.xlu0 %1068 }
 0x1b6   : > { %v615_v57 = vld [vmem:[%s2237_s13] sm:$0xff]  ;;  %v1932_v58 = vpop.f32.mrf.mxu1 }
 0x1b7   : > { %625 = vst.msk [vmem:[%s2237_s13 + $0x10] sm:$0xff] %vm257_vm5, %v621_v54  ;;  %v619_v59 = vmax.f32 %v615_v57, %v611_v55  ;;  %v612_v1 = vmax.f32 %v600_v56, 0.0  ;;  %v785_v2 = vadd.f32 %v1932_v58, %v719_v38  ;;  %v1254_v56 = vpop.permute.xlu1 %1253 }
 0x1b8   : > { %v618_v62 = vld [vmem:[%s2237_s13 + $0x18] sm:$0xff]  ;;  %v776_v63 = vpop.f32.mrf.mxu1 }
 0x1b9   : > { %623 = vst.msk [vmem:[%s2237_s13] sm:$0xff] %vm257_vm5, %v619_v59  ;;  %v622_v0 = vmax.f32 %v618_v62, %v614_v60  ;;  %v777_v7 = vadd.f32 %v776_v63, %v709_v22  ;;  %v793_v9 = vmax.f32 %v785_v2, 0.0 }
 0x1ba   : > { %v616_v4 = vld [vmem:[%s2237_s13 + $0x8] sm:$0xff]  ;;  %v1933_v5 = vpop.f32.mrf.mxu1 }
 0x1bb   : > { %626 = vst.msk [vmem:[%s2237_s13 + $0x18] sm:$0xff] %vm257_vm5, %v622_v0  ;;  %v620_v6 = vmax.f32 %v616_v4, %v612_v1  ;;  %v788_v10 = vadd.f32 %v1933_v5, %v724_v47  ;;  %v791_v15 = vmax.f32 %v777_v7, 0.0 }
 0x1bc   : > { %v779_v8 = vpop.f32.mrf.mxu1 }
 0x1bd   : > { %624 = vst.msk [vmem:[%s2237_s13 + $0x8] sm:$0xff] %vm257_vm5, %v620_v6  ;;  %v780_v16 = vadd.f32 %v779_v8, %v714_v32  ;;  %v794_v21 = vmax.f32 %v788_v10, 0.0  ;;  %v1079_v32 = vpop.permute.xlu0 %1078  ;;  %v1264_v6 = vpop.permute.xlu1 %1263 }
 0x1be   : > { %v797_v12 = vld [vmem:[%s2237_s13 + $0x10] sm:$0xff]  ;;  %v1944_v13 = vpop.f32.mrf.mxu1 }
 0x1bf   : > { %v801_v14 = vmax.f32 %v797_v12, %v793_v9  ;;  %v792_v25 = vmax.f32 %v780_v16, 0.0  ;;  %v965_v26 = vadd.f32 %v1944_v13, %v899_v3 }
 0x1c0   : > { %v795_v18 = vld [vmem:[%s2237_s13] sm:$0xff]  ;;  %v956_v19 = vpop.f32.mrf.mxu1 }
 0x1c1   : > { %805 = vst.msk [vmem:[%s2237_s13 + $0x10] sm:$0xff] %vm257_vm5, %v801_v14  ;;  %v799_v20 = vmax.f32 %v795_v18, %v791_v15  ;;  %v957_v31 = vadd.f32 %v956_v19, %v889_v51  ;;  %v973_v34 = vmax.f32 %v965_v26, 0.0  ;;  %v1249_v46 = vpop.permute.xlu0 %1248 }
 0x1c2   : > { %v798_v22 = vld [vmem:[%s2237_s13 + $0x18] sm:$0xff]  ;;  %v1945_v23 = vpop.f32.mrf.mxu1 }
 0x1c3   : > { %803 = vst.msk [vmem:[%s2237_s13] sm:$0xff] %vm257_vm5, %v799_v20  ;;  %v802_v24 = vmax.f32 %v798_v22, %v794_v21  ;;  %v968_v35 = vadd.f32 %v1945_v23, %v904_v11  ;;  %v971_v39 = vmax.f32 %v957_v31, 0.0  ;;  %v1434_v20 = vpop.permute.xlu1 %1433 }
 0x1c4   : > { %v796_v28 = vld [vmem:[%s2237_s13 + $0x8] sm:$0xff]  ;;  %v959_v29 = vpop.f32.mrf.mxu1 }
 0x1c5   : > { %806 = vst.msk [vmem:[%s2237_s13 + $0x18] sm:$0xff] %vm257_vm5, %v802_v24  ;;  %v800_v30 = vmax.f32 %v796_v28, %v792_v25  ;;  %v960_v40 = vadd.f32 %v959_v29, %v894_v61  ;;  %v974_v45 = vmax.f32 %v968_v35, 0.0  ;;  %v1259_v60 = vpop.permute.xlu0 %1258 }
 0x1c6   : > { %v1956_v33 = vpop.f32.mrf.mxu1 }
 0x1c7   : > { %804 = vst.msk [vmem:[%s2237_s13 + $0x8] sm:$0xff] %vm257_vm5, %v800_v30  ;;  %v972_v50 = vmax.f32 %v960_v40, 0.0  ;;  %v1145_v51 = vadd.f32 %v1956_v33, %v1079_v32 }
 0x1c8   : > { %v977_v36 = vld [vmem:[%s2237_s13 + $0x10] sm:$0xff]  ;;  %v1136_v37 = vpop.f32.mrf.mxu1 }
 0x1c9   : > { %v981_v38 = vmax.f32 %v977_v36, %v973_v34  ;;  %v1137_v55 = vadd.f32 %v1136_v37, %v1069_v17  ;;  %v1153_v58 = vmax.f32 %v1145_v51, 0.0  ;;  %v1429_v12 = vpop.permute.xlu0 %1428  ;;  %v1444_v34 = vpop.permute.xlu1 %1443 }
 0x1ca   : > { %v975_v42 = vld [vmem:[%s2237_s13] sm:$0xff]  ;;  %v1957_v43 = vpop.f32.mrf.mxu1 }
 0x1cb   : > { %985 = vst.msk [vmem:[%s2237_s13 + $0x10] sm:$0xff] %vm257_vm5, %v981_v38  ;;  %v979_v44 = vmax.f32 %v975_v42, %v971_v39  ;;  %v1148_v59 = vadd.f32 %v1957_v43, %v1084_v41  ;;  %v1151_v0 = vmax.f32 %v1137_v55, 0.0 }
 0x1cc   : > { %v978_v47 = vld [vmem:[%s2237_s13 + $0x18] sm:$0xff]  ;;  %v1139_v48 = vpop.f32.mrf.mxu1 }
 0x1cd   : > { %983 = vst.msk [vmem:[%s2237_s13] sm:$0xff] %vm257_vm5, %v979_v44  ;;  %v982_v49 = vmax.f32 %v978_v47, %v974_v45  ;;  %v1140_v1 = vadd.f32 %v1139_v48, %v1074_v27  ;;  %v1154_v5 = vmax.f32 %v1148_v59, 0.0  ;;  %v1439_v25 = vpop.permute.xlu0 %1438  ;;  %v1614_v47 = vpop.permute.xlu1 %1613 }
 0x1ce   : > { %v976_v52 = vld [vmem:[%s2237_s13 + $0x8] sm:$0xff]  ;;  %v1968_v53 = vpop.f32.mrf.mxu1 }
 0x1cf   : > { %986 = vst.msk [vmem:[%s2237_s13 + $0x18] sm:$0xff] %vm257_vm5, %v982_v49  ;;  %v980_v54 = vmax.f32 %v976_v52, %v972_v50  ;;  %v1152_v10 = vmax.f32 %v1140_v1, 0.0  ;;  %v1325_v11 = vadd.f32 %v1968_v53, %v1259_v60 }
 0x1d0   : > { %v1316_v57 = vpop.f32.mrf.mxu1 }
 0x1d1   : > { %984 = vst.msk [vmem:[%s2237_s13 + $0x8] sm:$0xff] %vm257_vm5, %v980_v54  ;;  %v1317_v16 = vadd.f32 %v1316_v57, %v1249_v46  ;;  %v1333_v18 = vmax.f32 %v1325_v11, 0.0  ;;  %v1609_v39 = vpop.permute.xlu0 %1608  ;;  %v1624_v60 = vpop.permute.xlu1 %1623 }
 0x1d2   : > { %v1157_v61 = vld [vmem:[%s2237_s13 + $0x10] sm:$0xff]  ;;  %v1969_v62 = vpop.f32.mrf.mxu1 }
 0x1d3   : > { %v1161_v63 = vmax.f32 %v1157_v61, %v1153_v58  ;;  %v1328_v19 = vadd.f32 %v1969_v62, %v1264_v6  ;;  %v1331_v23 = vmax.f32 %v1317_v16, 0.0 }
 0x1d4   : > { %v1155_v2 = vld [vmem:[%s2237_s13] sm:$0xff]  ;;  %v1319_v3 = vpop.f32.mrf.mxu1 }
 0x1d5   : > { %1165 = vst.msk [vmem:[%s2237_s13 + $0x10] sm:$0xff] %vm257_vm5, %v1161_v63  ;;  %v1159_v4 = vmax.f32 %v1155_v2, %v1151_v0  ;;  %v1320_v24 = vadd.f32 %v1319_v3, %v1254_v56  ;;  %v1334_v29 = vmax.f32 %v1328_v19, 0.0  ;;  %v1619_v51 = vpop.permute.xlu0 %1618 }
 0x1d6   : > { %v1158_v7 = vld [vmem:[%s2237_s13 + $0x18] sm:$0xff]  ;;  %v1980_v8 = vpop.f32.mrf.mxu1 }
 0x1d7   : > { %1163 = vst.msk [vmem:[%s2237_s13] sm:$0xff] %vm257_vm5, %v1159_v4  ;;  %v1162_v9 = vmax.f32 %v1158_v7, %v1154_v5  ;;  %v1332_v32 = vmax.f32 %v1320_v24, 0.0  ;;  %v1505_v33 = vadd.f32 %v1980_v8, %v1439_v25 }
 0x1d8   : > { %v1156_v13 = vld [vmem:[%s2237_s13 + $0x8] sm:$0xff]  ;;  %v1496_v14 = vpop.f32.mrf.mxu1 }
 0x1d9   : > { %1166 = vst.msk [vmem:[%s2237_s13 + $0x18] sm:$0xff] %vm257_vm5, %v1162_v9  ;;  %v1160_v15 = vmax.f32 %v1156_v13, %v1152_v10  ;;  %v1497_v38 = vadd.f32 %v1496_v14, %v1429_v12  ;;  %v1513_v40 = vmax.f32 %v1505_v33, 0.0 }
 0x1da   : > { %v1981_v17 = vpop.f32.mrf.mxu1 }
 0x1db   : > { %1164 = vst.msk [vmem:[%s2237_s13 + $0x8] sm:$0xff] %vm257_vm5, %v1160_v15  ;;  %v1508_v41 = vadd.f32 %v1981_v17, %v1444_v34  ;;  %v1511_v45 = vmax.f32 %v1497_v38, 0.0 }
 0x1dc   : > { %v1337_v21 = vld [vmem:[%s2237_s13 + $0x10] sm:$0xff]  ;;  %v1499_v27 = vpop.f32.mrf.mxu1 }
 0x1dd   : > { %v1341_v22 = vmax.f32 %v1337_v21, %v1333_v18  ;;  %v1500_v46 = vadd.f32 %v1499_v27, %v1434_v20  ;;  %v1514_v50 = vmax.f32 %v1508_v41, 0.0 }
 0x1de   : > { %v1335_v26 = vld [vmem:[%s2237_s13] sm:$0xff]  ;;  %v1992_v36 = vpop.f32.mrf.mxu1 }
 0x1df   : > { %1345 = vst.msk [vmem:[%s2237_s13 + $0x10] sm:$0xff] %vm257_vm5, %v1341_v22  ;;  %v1339_v28 = vmax.f32 %v1335_v26, %v1331_v23  ;;  %v1512_v55 = vmax.f32 %v1500_v46, 0.0  ;;  %v1685_v56 = vadd.f32 %v1992_v36, %v1619_v51 }
 0x1e0   : > { %v1338_v30 = vld [vmem:[%s2237_s13 + $0x18] sm:$0xff]  ;;  %v1676_v43 = vpop.f32.mrf.mxu1 }
 0x1e1   : > { %1343 = vst.msk [vmem:[%s2237_s13] sm:$0xff] %vm257_vm5, %v1339_v28  ;;  %v1342_v31 = vmax.f32 %v1338_v30, %v1334_v29  ;;  %v1677_v59 = vadd.f32 %v1676_v43, %v1609_v39  ;;  %v1693_v62 = vmax.f32 %v1685_v56, 0.0 }
 0x1e2   : > { %v1336_v35 = vld [vmem:[%s2237_s13 + $0x8] sm:$0xff]  ;;  %v1993_v53 = vpop.f32.mrf.mxu1 }
 0x1e3   : > { %1346 = vst.msk [vmem:[%s2237_s13 + $0x18] sm:$0xff] %vm257_vm5, %v1342_v31  ;;  %v1340_v37 = vmax.f32 %v1336_v35, %v1332_v32  ;;  %v1688_v63 = vadd.f32 %v1993_v53, %v1624_v60  ;;  %v1691_v2 = vmax.f32 %v1677_v59, 0.0 }
 0x1e4   : > { %v1679_v61 = vpop.f32.mrf.mxu1 }
 0x1e5   : > { %1344 = vst.msk [vmem:[%s2237_s13 + $0x8] sm:$0xff] %vm257_vm5, %v1340_v37  ;;  %v1680_v3 = vadd.f32 %v1679_v61, %v1614_v47  ;;  %v1694_v6 = vmax.f32 %v1688_v63, 0.0 }
 0x1e6   : > { %v1517_v42 = vld [vmem:[%s2237_s13 + $0x10] sm:$0xff] }
 0x1e7   : > { %v1521_v44 = vmax.f32 %v1517_v42, %v1513_v40  ;;  %v1692_v9 = vmax.f32 %v1680_v3, 0.0 }
 0x1e8   : > { %v1515_v48 = vld [vmem:[%s2237_s13] sm:$0xff] }
 0x1e9   : > { %1525 = vst.msk [vmem:[%s2237_s13 + $0x10] sm:$0xff] %vm257_vm5, %v1521_v44  ;;  %v1519_v49 = vmax.f32 %v1515_v48, %v1511_v45 }
 0x1ea   : > { %v1518_v52 = vld [vmem:[%s2237_s13 + $0x18] sm:$0xff] }
 0x1eb   : > { %1523 = vst.msk [vmem:[%s2237_s13] sm:$0xff] %vm257_vm5, %v1519_v49  ;;  %v1522_v54 = vmax.f32 %v1518_v52, %v1514_v50 }
 0x1ec   : > { %v1516_v57 = vld [vmem:[%s2237_s13 + $0x8] sm:$0xff] }
 0x1ed   : > { %1526 = vst.msk [vmem:[%s2237_s13 + $0x18] sm:$0xff] %vm257_vm5, %v1522_v54  ;;  %v1520_v58 = vmax.f32 %v1516_v57, %v1512_v55 }
 0x1ef   : > { %1524 = vst.msk [vmem:[%s2237_s13 + $0x8] sm:$0xff] %vm257_vm5, %v1520_v58 }
 0x1f0   : > { %v1697_v0 = vld [vmem:[%s2237_s13 + $0x10] sm:$0xff] }
 0x1f1   : > { %v1701_v1 = vmax.f32 %v1697_v0, %v1693_v62 }
 0x1f2   : > { %v1695_v4 = vld [vmem:[%s2237_s13] sm:$0xff] }
 0x1f3   : > { %1705 = vst.msk [vmem:[%s2237_s13 + $0x10] sm:$0xff] %vm257_vm5, %v1701_v1  ;;  %v1699_v5 = vmax.f32 %v1695_v4, %v1691_v2 }
 0x1f4   : > { %v1698_v7 = vld [vmem:[%s2237_s13 + $0x18] sm:$0xff] }
 0x1f5   : > { %1703 = vst.msk [vmem:[%s2237_s13] sm:$0xff] %vm257_vm5, %v1699_v5  ;;  %v1702_v8 = vmax.f32 %v1698_v7, %v1694_v6 }
 0x1f6   : > { %v1696_v10 = vld [vmem:[%s2237_s13 + $0x8] sm:$0xff] }
 0x1f7   : > { %1706 = vst.msk [vmem:[%s2237_s13 + $0x18] sm:$0xff] %vm257_vm5, %v1702_v8  ;;  %v1700_v11 = vmax.f32 %v1696_v10, %v1692_v9 }
 0x1f9   : > { %1704 = vst.msk [vmem:[%s2237_s13 + $0x8] sm:$0xff] %vm257_vm5, %v1700_v11 }
 0x1fa PF: > { %s15_s20 = sadd.s32 1, %s2071_s20   ;;  %s2418_s18 = smov %s2067_s19 }
 0x1fb   : > { %p12_p5 = scmp.ge.s32.totalorder %s15_s20, 4   ;;  %s2419_s19 = smov %s2421_s21 }
 0x1fd   :  { %14 = sbr.rel (!%p12_p5) target bundleno = 2 (0x2), region = 77 }

// kernel: _msg_forward.3
= control target key start
LH: loop header
LB: loop body
LE: loop exit
PB: predicated region body
PF: predicated region fallthrough
CT: control target
= control target key end

     0   :  { %s5812_s18 = smov 0   ;;  %s5814_s19 = smov 0   ;;  %s7247_s0 = inlined_call_operand.vmem [shape: bf16[2,16,7,8], index: 0, kind: input, shape index: {}]   ;;  %s7248_s1 = inlined_call_operand.vmem [shape: bf16[32,7], index: 1, kind: input, shape index: {}]   ;;  %s7249_s2 = inlined_call_operand.vmem [shape: f32[32,1], index: 2, kind: input, shape index: {}]   ;;  %s7250_s3 = inlined_call_operand.vmem [shape: bf16[64,32], index: 3, kind: input, shape index: {}]   ;;  %s7251_s4 = inlined_call_operand.vmem [shape: f32[64,1], index: 4, kind: input, shape index: {}]   ;;  %s7252_s5 = inlined_call_operand.vmem [shape: f32[2,64,8], index: 5, kind: output, shape index: {}]  }
   0x1   :  { %s5816_s20 = smov 0  }
   0x2 LB: > { %s27_s21 = sadd.s32 1, %s5773_s19  ;;  %p4982_p0 = scmp.ge.s32.totalorder %s5777_s20, 1  ;;  %s5777_s20 = sphi %s5816_s20, %s15_s20   ;;  %s5773_s19 = sphi %s5814_s19, %s7336_s19   ;;  %s5769_s18 = sphi %s5812_s18, %s7335_s18  }
   0x3   : > { %p29_p1 = scmp.ge.s32.totalorder %s27_s21, 2  ;;  %p206_p2 = scmp.lt.s32.totalorder %s5777_s20, 3 }
   0x5   : > { %s7338_s21 = smov (%p29_p1, %s27_s21), 0  ;;  %p207_p3 = pnand %p4982_p0, %p206_p2 }
   0x7   : > { %210 = sbr.rel (%p207_p3) target bundleno = 2048 (0x800), region = 40 }
   0xc   : > { %v5833_v0 = vld [vmem:[%s7249_s2 + $0x10] sm:$0xff]  ;;  %v5838_v1 = vld [vmem:[%s7249_s2] sm:$0xff]  ;;  %p240_p4 = scmp.lt.s32.totalorder %s5769_s18, 1  ;;  %vm312_vm0 = vcmask 1042432   ;;  %v5779_v2 = vmov 0   ;;  %v5843_v3 = vld [vmem:[%s7249_s2 + $0x18] sm:$0xff] }
   0xd   : > { %5658 = vset.pattern.permute.xlu1 %v5779_v2  ;;  %5657 = vset.pattern.permute.xlu0 %v5779_v2  ;;  %vm313_vm1 = vcmask 1043456   ;;  %v5659_v4 = vld [vmem:[%s7248_s1] sm:$0xff]   ;;  %v5780_v5 = vmov 65535   ;;  %vm305_vm2 = vcmask 56320   ;;  %v5858_v8 = vld [vmem:[%s7249_s2 + $0x8] sm:$0xff]  ;;  %vm450_vm3 = vcmask 261120  }
   0xe   : > { %287 = vperm.xlu0 %5657, %v5833_v0   ;;  %277 = vperm.xlu1 %5658, %v5838_v1   ;;  %s7340_s18 = smov (!%p240_p4, %s5769_s18), 1  ;;  %v314_v6 = vsel %vm312_vm0, 4294967295, %v5780_v5  ;;  %v5660_v7 = vld [vmem:[%s7248_s1] sm:$0xff]   ;;  %v5661_v14 = vld [vmem:[%s7248_s1 + $0x8] sm:$0xff]   ;;  %v5953_v20 = vld [vmem:[%s7251_s4 + $0x10] sm:$0xff]  ;;  %vm257_vm4 = vcmask 64512  }
   0xf   : > { %5344 = vmatprep.mubr.msk.bf16.mxu1 %vm305_vm2, %v5659_v4  ;;  %s5196_s9 = sshll.u32 %s7340_s18, 6  ;;  %v5862_v9 = vsel %vm313_vm1, %v314_v6, 0  ;;  %5362 = vmatprep.mubr.msk.bf16.mxu0 %vm305_vm2, %v5660_v7  ;;  %v5662_v15 = vld [vmem:[%s7248_s1 + $0x8] sm:$0xff]   ;;  %v5933_v16 = vld [vmem:[%s7251_s4] sm:$0xff]  ;;  %v5958_v21 = vld [vmem:[%s7251_s4 + $0x18] sm:$0xff] }
  0x10   : > { %s5870_s12 = scalar_lea.vmem %s7247_s0, %s5196_s9  ;;  %v5938_v17 = vld [vmem:[%s7251_s4 + $0x8] sm:$0xff]  ;;  %v5663_v18 = vld [vmem:[%s7250_s3] sm:$0xff]   ;;  %v5977_v24 = vld [vmem:[%s7251_s4 + $0x30] sm:$0xff]  ;;  %s6249_s25 = scalar_lea.vmem %s7252_s5, %s5196_s9 }
  0x11   : > { %v266_v10 = vld [vmem:[%s5870_s12] sm:$0xf]  ;;  %v4999_v11 = vld [vmem:[%s5870_s12 + $0x4] sm:$0xf]  ;;  %v5970_v23 = vld [vmem:[%s7251_s4 + $0x28] sm:$0xff] }
  0x12   : > { %292 = vperm.xlu0 %5657, %v5843_v3   ;;  %282 = vperm.xlu1 %5658, %v5858_v8   ;;  %v317_v12 = vand.u32 %v5862_v9, %v266_v10  ;;  %v607_v13 = vand.u32 %v4999_v11, %v5862_v9  ;;  %v5664_v19 = vld [vmem:[%s7250_s3] sm:$0xff]   ;;  %v5982_v25 = vld [vmem:[%s7251_s4 + $0x38] sm:$0xff] }
  0x13   : > { %v5965_v22 = vld [vmem:[%s7251_s4 + $0x20] sm:$0xff] }
  0x14   : > { %5342 = vmatprep.subr.bf16.mxu1 %v317_v12  ;;  %5360 = vmatprep.subr.bf16.mxu0 %v607_v13 }
  0x15   : > { %5343 = vmatpush3.bf16.msra.mxu1 %v317_v12  ;;  %5361 = vmatpush3.bf16.msra.mxu0 %v607_v13 }
  0x16   : > { %582 = vperm.xlu0 %5657, %v5833_v0   ;;  %587 = vperm.xlu1 %5658, %v5843_v3  }
  0x18   : > { %5345 = vmatmul.mubr.msk.bf16.vlgmr.msra.gmra.mxu1 %vm305_vm2, %v5661_v14  ;;  %5363 = vmatmul.mubr.msk.bf16.vlgmr.msra.gmra.mxu0 %vm305_vm2, %v5662_v15 }
  0x19   : > { %5352 = vmatprep.mubr.msk.bf16.mxu1 %vm450_vm3, %v5663_v18  ;;  %5370 = vmatprep.mubr.msk.bf16.mxu0 %vm450_vm3, %v5664_v19 }
  0x1a   : > { %572 = vperm.xlu0 %5657, %v5838_v1   ;;  %577 = vperm.xlu1 %5658, %v5858_v8  }
  0x1e   : > { %871 = vperm.xlu0 %5657, %v5833_v0   ;;  %876 = vperm.xlu1 %5658, %v5843_v3  }
  0x22   : > { %861 = vperm.xlu0 %5657, %v5838_v1   ;;  %866 = vperm.xlu1 %5658, %v5858_v8  }
  0x26   : > { %1160 = vperm.xlu0 %5657, %v5833_v0   ;;  %1165 = vperm.xlu1 %5658, %v5843_v3  }
  0x2a   : > { %1150 = vperm.xlu0 %5657, %v5838_v1   ;;  %1155 = vperm.xlu1 %5658, %v5858_v8  }
  0x2e   : > { %1449 = vperm.xlu0 %5657, %v5833_v0   ;;  %1454 = vperm.xlu1 %5658, %v5843_v3  }
  0x32   : > { %1439 = vperm.xlu0 %5657, %v5838_v1   ;;  %1444 = vperm.xlu1 %5658, %v5858_v8  }
  0x36   : > { %1738 = vperm.xlu0 %5657, %v5833_v0   ;;  %1743 = vperm.xlu1 %5658, %v5843_v3  }
  0x3a   : > { %1728 = vperm.xlu0 %5657, %v5838_v1   ;;  %1733 = vperm.xlu1 %5658, %v5858_v8  }
  0x3e   : > { %2027 = vperm.xlu0 %5657, %v5833_v0   ;;  %2032 = vperm.xlu1 %5658, %v5843_v3  }
  0x42   : > { %2017 = vperm.xlu0 %5657, %v5838_v1   ;;  %2022 = vperm.xlu1 %5658, %v5858_v8  }
  0x46   : > { %2316 = vperm.xlu0 %5657, %v5833_v0   ;;  %2321 = vperm.xlu1 %5658, %v5843_v3  }
  0x4a   : > { %2306 = vperm.xlu0 %5657, %v5838_v1   ;;  %2311 = vperm.xlu1 %5658, %v5858_v8  }
  0x4e   : > { %2605 = vperm.xlu0 %5657, %v5833_v0   ;;  %2610 = vperm.xlu1 %5658, %v5843_v3  }
  0x52   : > { %2595 = vperm.xlu0 %5657, %v5838_v1   ;;  %2600 = vperm.xlu1 %5658, %v5858_v8  }
  0x56   : > { %2894 = vperm.xlu0 %5657, %v5833_v0   ;;  %2899 = vperm.xlu1 %5658, %v5843_v3  }
  0x5a   : > { %2884 = vperm.xlu0 %5657, %v5838_v1   ;;  %2889 = vperm.xlu1 %5658, %v5858_v8  }
  0x5e   : > { %3183 = vperm.xlu0 %5657, %v5833_v0   ;;  %3188 = vperm.xlu1 %5658, %v5843_v3  }
  0x62   : > { %3173 = vperm.xlu0 %5657, %v5838_v1   ;;  %3178 = vperm.xlu1 %5658, %v5858_v8  }
  0x66   : > { %3472 = vperm.xlu0 %5657, %v5833_v0   ;;  %3477 = vperm.xlu1 %5658, %v5843_v3  }
  0x6a   : > { %3462 = vperm.xlu0 %5657, %v5838_v1   ;;  %3467 = vperm.xlu1 %5658, %v5858_v8  }
  0x6e   : > { %392 = vperm.xlu0 %5657, %v5933_v16   ;;  %397 = vperm.xlu1 %5658, %v5938_v17  }
  0x72   : > { %402 = vperm.xlu0 %5657, %v5953_v20   ;;  %407 = vperm.xlu1 %5658, %v5958_v21  }
  0x76   : > { %412 = vperm.xlu0 %5657, %v5965_v22   ;;  %417 = vperm.xlu1 %5658, %v5970_v23  }
  0x7a   : > { %422 = vperm.xlu0 %5657, %v5977_v24   ;;  %427 = vperm.xlu1 %5658, %v5982_v25  }
  0x7e   : > { %682 = vperm.xlu0 %5657, %v5933_v16   ;;  %687 = vperm.xlu1 %5658, %v5938_v17  }
  0x82   : > { %692 = vperm.xlu0 %5657, %v5953_v20   ;;  %697 = vperm.xlu1 %5658, %v5958_v21  }
  0x86   : > { %702 = vperm.xlu0 %5657, %v5965_v22   ;;  %3761 = vperm.xlu1 %5658, %v5833_v0  }
  0x89   : > { %v5992_v26 = vpop.permute.xlu0 %287  ;;  %v5994_v27 = vpop.permute.xlu1 %277 }
  0x8a   : > { %3766 = vperm.xlu0 %5657, %v5843_v3   ;;  %3751 = vperm.xlu1 %5658, %v5838_v1  }
  0x8d   : > { %v5998_v28 = vpop.permute.xlu0 %292  ;;  %v6000_v29 = vpop.permute.xlu1 %282 }
  0x8e   : > { %3756 = vperm.xlu0 %5657, %v5858_v8   ;;  %4050 = vperm.xlu1 %5658, %v5833_v0  }
  0x91   : > { %v6004_v30 = vpop.permute.xlu0 %582  ;;  %v6006_v31 = vpop.permute.xlu1 %587 }
  0x92   : > { %4055 = vperm.xlu0 %5657, %v5843_v3   ;;  %4040 = vperm.xlu1 %5658, %v5838_v1  }
  0x95   : > { %v6010_v32 = vpop.permute.xlu0 %572  ;;  %v6012_v33 = vpop.permute.xlu1 %577 }
  0x96   : > { %4045 = vperm.xlu0 %5657, %v5858_v8   ;;  %707 = vperm.xlu1 %5658, %v5970_v23  }
  0x99   : > { %v6016_v34 = vpop.permute.xlu0 %871  ;;  %v6018_v35 = vpop.permute.xlu1 %876 }
  0x9a   : > { %712 = vperm.xlu0 %5657, %v5977_v24   ;;  %717 = vperm.xlu1 %5658, %v5982_v25  }
  0x9d   : > { %v6022_v36 = vpop.permute.xlu0 %861  ;;  %v6024_v37 = vpop.permute.xlu1 %866 }
  0x9e   : > { %971 = vperm.xlu0 %5657, %v5933_v16   ;;  %976 = vperm.xlu1 %5658, %v5938_v17  }
  0xa1   : > { %v6028_v38 = vpop.permute.xlu0 %1160  ;;  %v6030_v39 = vpop.permute.xlu1 %1165 }
  0xa2   : > { %981 = vperm.xlu0 %5657, %v5953_v20   ;;  %986 = vperm.xlu1 %5658, %v5958_v21  }
  0xa5   : > { %v6034_v40 = vpop.permute.xlu0 %1150  ;;  %v6036_v41 = vpop.permute.xlu1 %1155 }
  0xa6   : > { %991 = vperm.xlu0 %5657, %v5965_v22   ;;  %996 = vperm.xlu1 %5658, %v5970_v23  }
  0xa9   : > { %v6040_v42 = vpop.permute.xlu0 %1449  ;;  %v6042_v43 = vpop.permute.xlu1 %1454 }
  0xaa   : > { %1001 = vperm.xlu0 %5657, %v5977_v24   ;;  %1006 = vperm.xlu1 %5658, %v5982_v25  }
  0xad   : > { %v6046_v44 = vpop.permute.xlu0 %1439  ;;  %v6048_v45 = vpop.permute.xlu1 %1444 }
  0xae   : > { %7253 = vst [vmem:[#allocation2_spill] sm:$0xff] %v6048_v45  ;;  %1260 = vperm.xlu0 %5657, %v5933_v16   ;;  %1265 = vperm.xlu1 %5658, %v5938_v17  }
  0xb1   : > { %v6054_v46 = vpop.permute.xlu0 %1738  ;;  %v6056_v47 = vpop.permute.xlu1 %1743 }
  0xb2   : > { %1270 = vperm.xlu0 %5657, %v5953_v20   ;;  %1275 = vperm.xlu1 %5658, %v5958_v21  }
  0xb5   : > { %v6060_v48 = vpop.permute.xlu0 %1728  ;;  %v6062_v49 = vpop.permute.xlu1 %1733 }
  0xb6   : > { %1280 = vperm.xlu0 %5657, %v5965_v22   ;;  %1285 = vperm.xlu1 %5658, %v5970_v23   ;;  %7254 = vst [vmem:[#allocation3_spill] sm:$0xff] %v6060_v48  ;;  %7255 = vst [vmem:[#allocation4_spill] sm:$0xff] %v6062_v49 }
  0xb9   : > { %v6068_v50 = vpop.permute.xlu0 %2027  ;;  %v6070_v51 = vpop.permute.xlu1 %2032 }
  0xba   : > { %1290 = vperm.xlu0 %5657, %v5977_v24   ;;  %1295 = vperm.xlu1 %5658, %v5982_v25   ;;  %7256 = vst [vmem:[#allocation5_spill] sm:$0xff] %v6068_v50  ;;  %7257 = vst [vmem:[#allocation6_spill] sm:$0xff] %v6070_v51 }
  0xbd   : > { %v6074_v52 = vpop.permute.xlu0 %2017  ;;  %v6076_v53 = vpop.permute.xlu1 %2022 }
  0xbe   : > { %1549 = vperm.xlu0 %5657, %v5933_v16   ;;  %1554 = vperm.xlu1 %5658, %v5938_v17   ;;  %7258 = vst [vmem:[#allocation7_spill] sm:$0xff] %v6074_v52  ;;  %7259 = vst [vmem:[#allocation8_spill] sm:$0xff] %v6076_v53 }
  0xc1   : > { %v6082_v54 = vpop.permute.xlu0 %2316  ;;  %v6084_v55 = vpop.permute.xlu1 %2321 }
  0xc2   : > { %1559 = vperm.xlu0 %5657, %v5953_v20   ;;  %1564 = vperm.xlu1 %5658, %v5958_v21   ;;  %7260 = vst [vmem:[#allocation9_spill] sm:$0xff] %v6082_v54  ;;  %7261 = vst [vmem:[#allocation10_spill] sm:$0xff] %v6084_v55 }
  0xc5   : > { %v6088_v56 = vpop.permute.xlu0 %2306  ;;  %v6090_v57 = vpop.permute.xlu1 %2311 }
  0xc6   : > { %1569 = vperm.xlu0 %5657, %v5965_v22   ;;  %1574 = vperm.xlu1 %5658, %v5970_v23   ;;  %7262 = vst [vmem:[#allocation11_spill] sm:$0xff] %v6088_v56  ;;  %7263 = vst [vmem:[#allocation12_spill] sm:$0xff] %v6090_v57 }
  0xc9   : > { %v6096_v58 = vpop.permute.xlu0 %2605  ;;  %v6098_v59 = vpop.permute.xlu1 %2610 }
  0xca   : > { %1579 = vperm.xlu0 %5657, %v5977_v24   ;;  %1584 = vperm.xlu1 %5658, %v5982_v25   ;;  %7264 = vst [vmem:[#allocation13_spill] sm:$0xff] %v6096_v58  ;;  %7265 = vst [vmem:[#allocation14_spill] sm:$0xff] %v6098_v59 }
  0xcd   : > { %v6104_v5 = vpop.permute.xlu0 %2595  ;;  %v6106_v6 = vpop.permute.xlu1 %2600 }
  0xce   : > { %1838 = vperm.xlu0 %5657, %v5933_v16   ;;  %1843 = vperm.xlu1 %5658, %v5938_v17   ;;  %7266 = vst [vmem:[#allocation15_spill] sm:$0xff] %v6104_v5  ;;  %7267 = vst [vmem:[#allocation16_spill] sm:$0xff] %v6106_v6 }
  0xd2   : > { %1848 = vperm.xlu0 %5657, %v5953_v20   ;;  %1853 = vperm.xlu1 %5658, %v5958_v21  }
  0xd6   : > { %1858 = vperm.xlu0 %5657, %v5965_v22   ;;  %1863 = vperm.xlu1 %5658, %v5970_v23  }
  0xd8   : > { %v5346_v60 = vpop.f32.mrf.mxu1  ;;  %v5364_v61 = vpop.f32.mrf.mxu0 }
  0xd9   : > { %v362_v62 = vadd.f32 %v5346_v60, %v5992_v26  ;;  %v652_v63 = vadd.f32 %v5364_v61, %v6004_v30 }
  0xda   : > { %1868 = vperm.xlu0 %5657, %v5977_v24   ;;  %1873 = vperm.xlu1 %5658, %v5982_v25   ;;  %v353_v2 = vpop.f32.mrf.mxu1  ;;  %v643_v4 = vpop.f32.mrf.mxu0 }
  0xdb   : > { %v354_v7 = vadd.f32 %v353_v2, %v5994_v27  ;;  %v644_v10 = vadd.f32 %v643_v4, %v6010_v32  ;;  %v370_v15 = vmax.f32 %v362_v62, 0.0  ;;  %v660_v18 = vmax.f32 %v652_v63, 0.0 }
  0xdc   : > { %v5347_v11 = vpop.f32.mrf.mxu1  ;;  %v5365_v12 = vpop.f32.mrf.mxu0 }
  0xdd   : > { %v365_v13 = vadd.f32 %v5347_v11, %v5998_v28  ;;  %v655_v14 = vadd.f32 %v5365_v12, %v6006_v31  ;;  %v368_v61 = vmax.f32 %v354_v7, 0.0  ;;  %v658_v2 = vmax.f32 %v644_v10, 0.0  ;;  %v6118_v28 = vpop.permute.xlu0 %2894  ;;  %v6120_v31 = vpop.permute.xlu1 %2899 }
  0xde   : > { %2127 = vperm.xlu0 %5657, %v5933_v16   ;;  %2132 = vperm.xlu1 %5658, %v5938_v17   ;;  %v356_v19 = vpop.f32.mrf.mxu1  ;;  %v646_v26 = vpop.f32.mrf.mxu0  ;;  %7268 = vst [vmem:[#allocation17_spill] sm:$0xff] %v6118_v28  ;;  %7269 = vst [vmem:[#allocation18_spill] sm:$0xff] %v6120_v31 }
  0xdf   : > { %v371_v30 = vmax.f32 %v365_v13, 0.0  ;;  %v661_v60 = vmax.f32 %v655_v14, 0.0  ;;  %v357_v27 = vadd.f32 %v356_v19, %v6000_v29  ;;  %v647_v32 = vadd.f32 %v646_v26, %v6012_v33  ;;  %v5012_v33 = vld [vmem:[%s5870_s12 + $0x8] sm:$0xf]  ;;  %v5025_v13 = vld [vmem:[%s5870_s12 + $0xc] sm:$0xf] }
  0xe0   : > { %v896_v7 = vand.u32 %v5012_v33, %v5862_v9  ;;  %v1185_v10 = vand.u32 %v5025_v13, %v5862_v9  ;;  %v5666_v19 = vld [vmem:[%s7250_s3 + $0x8] sm:$0xff]   ;;  %v5667_v26 = vld [vmem:[%s7250_s3 + $0x10] sm:$0xff]  }
  0xe1   : > { %v373_v62 = vpack.c.bf16 %v371_v30, %v370_v15  ;;  %v663_v63 = vpack.c.bf16 %v661_v60, %v660_v18  ;;  %v369_v4 = vmax.f32 %v357_v27, 0.0  ;;  %v659_v11 = vmax.f32 %v647_v32, 0.0  ;;  %v6128_v14 = vpop.permute.xlu0 %2884  ;;  %v6130_v15 = vpop.permute.xlu1 %2889  ;;  %v5665_v18 = vld [vmem:[%s7250_s3 + $0x8] sm:$0xff]   ;;  %v5668_v30 = vld [vmem:[%s7250_s3 + $0x10] sm:$0xff]   ;;  %v5669_v32 = vld [vmem:[%s7250_s3 + $0x18] sm:$0xff]  }
  0xe2   : > { %2137 = vperm.xlu0 %5657, %v5953_v20   ;;  %2142 = vperm.xlu1 %5658, %v5958_v21   ;;  %7270 = vst [vmem:[#allocation19_spill] sm:$0xff] %v6128_v14  ;;  %7271 = vst [vmem:[#allocation20_spill] sm:$0xff] %v6130_v15 }
  0xe3   : > { %v372_v12 = vpack.c.bf16 %v369_v4, %v368_v61  ;;  %v662_v29 = vpack.c.bf16 %v659_v11, %v658_v2  ;;  %5348 = vmatprep.subr.bf16.mxu1 %v373_v62  ;;  %5366 = vmatprep.subr.bf16.mxu0 %v663_v63  ;;  %v5670_v61 = vld [vmem:[%s7250_s3 + $0x18] sm:$0xff]   ;;  %v5671_v2 = vld [vmem:[%s7248_s1] sm:$0xff]   ;;  %v5673_v11 = vld [vmem:[%s7248_s1 + $0x8] sm:$0xff]  }
  0xe4   : > { %5349 = vmatpush3.bf16.msra.mxu1 %v373_v62  ;;  %5367 = vmatpush3.bf16.msra.mxu0 %v663_v63  ;;  %v5672_v62 = vld [vmem:[%s7248_s1] sm:$0xff]  }
  0xe5   : > { %5350 = vmatprep.subr.bf16.mxu1 %v372_v12  ;;  %5368 = vmatprep.subr.bf16.mxu0 %v662_v29  ;;  %v6149_v60 = vpop.permute.xlu0 %3183  ;;  %v6151_v27 = vpop.permute.xlu1 %3188 }
  0xe6   : > { %2147 = vperm.xlu0 %5657, %v5965_v22   ;;  %2152 = vperm.xlu1 %5658, %v5970_v23   ;;  %7272 = vst [vmem:[#allocation21_spill] sm:$0xff] %v6149_v60  ;;  %7273 = vst [vmem:[#allocation22_spill] sm:$0xff] %v6151_v27 }
  0xe8   : > { %5351 = vmatpush3.bf16.msra.mxu1 %v372_v12  ;;  %5369 = vmatpush3.bf16.msra.mxu0 %v662_v29  ;;  %v5674_v12 = vld [vmem:[%s7248_s1 + $0x8] sm:$0xff]  }
  0xe9   : > { %5378 = vmatprep.subr.bf16.mxu1 %v896_v7  ;;  %5396 = vmatprep.subr.bf16.mxu0 %v1185_v10  ;;  %v6170_v63 = vpop.permute.xlu0 %3173  ;;  %v6172_v4 = vpop.permute.xlu1 %3178 }
  0xea   : > { %2157 = vperm.xlu0 %5657, %v5977_v24   ;;  %2162 = vperm.xlu1 %5658, %v5982_v25   ;;  %7274 = vst [vmem:[#allocation23_spill] sm:$0xff] %v6170_v63  ;;  %7275 = vst [vmem:[#allocation24_spill] sm:$0xff] %v6172_v4 }
  0xeb   : > { %5353 = vmatmul.mubr.msk.bf16.vlgmr.msra.gmra.mxu1 %vm450_vm3, %v5665_v18  ;;  %5371 = vmatmul.mubr.msk.bf16.vlgmr.msra.gmra.mxu0 %vm450_vm3, %v5666_v19 }
  0xec   : > { %5379 = vmatpush3.bf16.msra.mxu1 %v896_v7  ;;  %5356 = vmatprep.mubr.msk.bf16.mxu1 %vm450_vm3, %v5667_v26 }
  0xed   : > { %5374 = vmatprep.mubr.msk.bf16.mxu0 %vm450_vm3, %v5668_v30  ;;  %5397 = vmatpush3.bf16.msra.mxu0 %v1185_v10  ;;  %v6186_v29 = vpop.permute.xlu0 %3472  ;;  %v6188_v33 = vpop.permute.xlu1 %3477 }
  0xee   : > { %2416 = vperm.xlu0 %5657, %v5933_v16   ;;  %2421 = vperm.xlu1 %5658, %v5938_v17   ;;  %7276 = vst [vmem:[#allocation25_spill] sm:$0xff] %v6186_v29  ;;  %7277 = vst [vmem:[#allocation26_spill] sm:$0xff] %v6188_v33 }
  0xf1   : > { %v6196_v13 = vpop.permute.xlu0 %3462  ;;  %v6198_v7 = vpop.permute.xlu1 %3467 }
  0xf2   : > { %2426 = vperm.xlu0 %5657, %v5953_v20   ;;  %2431 = vperm.xlu1 %5658, %v5958_v21   ;;  %7278 = vst [vmem:[#allocation27_spill] sm:$0xff] %v6196_v13  ;;  %7279 = vst [vmem:[#allocation28_spill] sm:$0xff] %v6198_v7 }
  0xf3   : > { %5357 = vmatmul.mubr.msk.bf16.gmra.mxu1 %vm450_vm3, %v5669_v32  ;;  %5375 = vmatmul.mubr.msk.bf16.gmra.mxu0 %vm450_vm3, %v5670_v61 }
  0xf4   : > { %5380 = vmatprep.mubr.msk.bf16.mxu1 %vm305_vm2, %v5671_v2  ;;  %5398 = vmatprep.mubr.msk.bf16.mxu0 %vm305_vm2, %v5672_v62 }
  0xf5   : > { %v6202_v10 = vpop.permute.xlu0 %392  ;;  %v6204_v18 = vpop.permute.xlu1 %397 }
  0xf6   : > { %2436 = vperm.xlu0 %5657, %v5965_v22   ;;  %4339 = vperm.xlu1 %5658, %v5833_v0  }
  0xf9   : > { %v6212_v19 = vpop.permute.xlu1 %407 }
  0xfa   : > { %4344 = vperm.xlu0 %5657, %v5843_v3   ;;  %4329 = vperm.xlu1 %5658, %v5838_v1  }
  0xfb   : > { %5381 = vmatmul.mubr.msk.bf16.vlgmr.msra.gmra.mxu1 %vm305_vm2, %v5673_v11  ;;  %5399 = vmatmul.mubr.msk.bf16.vlgmr.msra.gmra.mxu0 %vm305_vm2, %v5674_v12  ;;  %v5781_v12 = vmov -inf  }
  0xfc   : > { %260 = vst.msk [vmem:[%s6249_s25 + $0x10] sm:$0xff] %vm257_vm4, %v5781_v12  ;;  %258 = vst.msk [vmem:[%s6249_s25] sm:$0xff] %vm257_vm4, %v5781_v12 }
  0xfd   : > { %259 = vst.msk [vmem:[%s6249_s25 + $0x8] sm:$0xff] %vm257_vm4, %v5781_v12  ;;  %261 = vst.msk [vmem:[%s6249_s25 + $0x18] sm:$0xff] %vm257_vm4, %v5781_v12 }
  0xfe   : > { %4334 = vperm.xlu0 %5657, %v5858_v8   ;;  %4628 = vperm.xlu1 %5658, %v5833_v0   ;;  %v6210_v0 = vpop.permute.xlu0 %402  ;;  %262 = vst.msk [vmem:[%s6249_s25 + $0x20] sm:$0xff] %vm257_vm4, %v5781_v12  ;;  %263 = vst.msk [vmem:[%s6249_s25 + $0x28] sm:$0xff] %vm257_vm4, %v5781_v12 }
  0xff   : > { %264 = vst.msk [vmem:[%s6249_s25 + $0x30] sm:$0xff] %vm257_vm4, %v5781_v12  ;;  %265 = vst.msk [vmem:[%s6249_s25 + $0x38] sm:$0xff] %vm257_vm4, %v5781_v12 }
 0x102   : > { %4633 = vperm.xlu0 %5657, %v5843_v3   ;;  %4618 = vperm.xlu1 %5658, %v5838_v1   ;;  %v6216_v1 = vpop.permute.xlu0 %412  ;;  %v6218_v3 = vpop.permute.xlu1 %417 }
 0x106   : > { %4623 = vperm.xlu0 %5657, %v5858_v8   ;;  %2441 = vperm.xlu1 %5658, %v5970_v23   ;;  %v6224_v8 = vpop.permute.xlu0 %422  ;;  %v6226_v26 = vpop.permute.xlu1 %427 }
 0x10a   : > { %2446 = vperm.xlu0 %5657, %v5977_v24   ;;  %2451 = vperm.xlu1 %5658, %v5982_v25   ;;  %v6230_v30 = vpop.permute.xlu0 %682  ;;  %v6232_v32 = vpop.permute.xlu1 %687 }
 0x10e   : > { %2705 = vperm.xlu0 %5657, %v5933_v16   ;;  %2710 = vperm.xlu1 %5658, %v5938_v17   ;;  %v6238_v61 = vpop.permute.xlu0 %692  ;;  %v6240_v2 = vpop.permute.xlu1 %697 }
 0x112   : > { %2715 = vperm.xlu0 %5657, %v5953_v20   ;;  %2720 = vperm.xlu1 %5658, %v5958_v21   ;;  %v6251_v62 = vpop.permute.xlu0 %702  ;;  %v6253_v11 = vpop.permute.xlu1 %3761 }
 0x113   : > { %7280 = vst [vmem:[#allocation29_spill] sm:$0xff] %v6253_v11 }
 0x116   : > { %2725 = vperm.xlu0 %5657, %v5965_v22   ;;  %2730 = vperm.xlu1 %5658, %v5970_v23   ;;  %v6275_v11 = vpop.permute.xlu0 %3766  ;;  %v6277_v7 = vpop.permute.xlu1 %3751 }
 0x117   : > { %7281 = vst [vmem:[#allocation30_spill] sm:$0xff] %v6275_v11  ;;  %7282 = vst [vmem:[#allocation31_spill] sm:$0xff] %v6277_v7 }
 0x11a   : > { %2735 = vperm.xlu0 %5657, %v5977_v24   ;;  %2740 = vperm.xlu1 %5658, %v5982_v25   ;;  %v6281_v4 = vpop.permute.xlu0 %3756  ;;  %v6283_v13 = vpop.permute.xlu1 %4050 }
 0x11b   : > { %7283 = vst [vmem:[#allocation32_spill] sm:$0xff] %v6281_v4  ;;  %7284 = vst [vmem:[#allocation33_spill] sm:$0xff] %v6283_v13 }
 0x11e   : > { %2994 = vperm.xlu0 %5657, %v5933_v16   ;;  %2999 = vperm.xlu1 %5658, %v5938_v17   ;;  %v6289_v12 = vpop.permute.xlu0 %4055  ;;  %v6291_v11 = vpop.permute.xlu1 %4040 }
 0x11f   : > { %7285 = vst [vmem:[#allocation34_spill] sm:$0xff] %v6289_v12  ;;  %7286 = vst [vmem:[#allocation35_spill] sm:$0xff] %v6291_v11  ;;  %v5676_v11 = vld [vmem:[%s7250_s3] sm:$0xff]  }
 0x120   : > { %5406 = vmatprep.mubr.msk.bf16.mxu0 %vm450_vm3, %v5676_v11 }
 0x122   : > { %3004 = vperm.xlu0 %5657, %v5953_v20   ;;  %3009 = vperm.xlu1 %5658, %v5958_v21   ;;  %v6295_v7 = vpop.permute.xlu0 %4045  ;;  %v6297_v4 = vpop.permute.xlu1 %707 }
 0x123   : > { %7287 = vst [vmem:[#allocation36_spill] sm:$0xff] %v6295_v7  ;;  %v5675_v7 = vld [vmem:[%s7250_s3] sm:$0xff]  }
 0x124   : > { %5388 = vmatprep.mubr.msk.bf16.mxu1 %vm450_vm3, %v5675_v7 }
 0x126   : > { %3014 = vperm.xlu0 %5657, %v5965_v22   ;;  %3019 = vperm.xlu1 %5658, %v5970_v23   ;;  %v6303_v13 = vpop.permute.xlu0 %712  ;;  %v6305_v12 = vpop.permute.xlu1 %717 }
 0x12a   : > { %3024 = vperm.xlu0 %5657, %v5977_v24   ;;  %3029 = vperm.xlu1 %5658, %v5982_v25   ;;  %v6315_v33 = vpop.permute.xlu0 %971  ;;  %v6317_v27 = vpop.permute.xlu1 %976 }
 0x12e   : > { %3283 = vperm.xlu0 %5657, %v5933_v16   ;;  %3288 = vperm.xlu1 %5658, %v5938_v17   ;;  %v6325_v63 = vpop.permute.xlu0 %981  ;;  %v6327_v29 = vpop.permute.xlu1 %986 }
 0x132   : > { %3293 = vperm.xlu0 %5657, %v5953_v20   ;;  %3298 = vperm.xlu1 %5658, %v5958_v21   ;;  %v6331_v60 = vpop.permute.xlu0 %991  ;;  %v6333_v15 = vpop.permute.xlu1 %996 }
 0x136   : > { %3303 = vperm.xlu0 %5657, %v5965_v22   ;;  %3308 = vperm.xlu1 %5658, %v5970_v23   ;;  %v6339_v7 = vpop.permute.xlu0 %1001  ;;  %v6341_v11 = vpop.permute.xlu1 %1006 }
 0x13a   : > { %3313 = vperm.xlu0 %5657, %v5977_v24   ;;  %3318 = vperm.xlu1 %5658, %v5982_v25   ;;  %v6345_v6 = vpop.permute.xlu0 %1260  ;;  %v6347_v14 = vpop.permute.xlu1 %1265 }
 0x13e   : > { %3572 = vperm.xlu0 %5657, %v5933_v16   ;;  %3577 = vperm.xlu1 %5658, %v5938_v17   ;;  %v6353_v31 = vpop.permute.xlu0 %1270  ;;  %v6355_v59 = vpop.permute.xlu1 %1275 }
 0x142   : > { %3582 = vperm.xlu0 %5657, %v5953_v20   ;;  %3587 = vperm.xlu1 %5658, %v5958_v21   ;;  %v6359_v5 = vpop.permute.xlu0 %1280  ;;  %v6361_v28 = vpop.permute.xlu1 %1285 }
 0x146   : > { %3592 = vperm.xlu0 %5657, %v5965_v22   ;;  %3597 = vperm.xlu1 %5658, %v5970_v23   ;;  %v6367_v58 = vpop.permute.xlu0 %1290  ;;  %v6369_v57 = vpop.permute.xlu1 %1295 }
 0x14a   : > { %3602 = vperm.xlu0 %5657, %v5977_v24   ;;  %3607 = vperm.xlu1 %5658, %v5982_v25   ;;  %v6373_v53 = vpop.permute.xlu0 %1549  ;;  %v6375_v56 = vpop.permute.xlu1 %1554 }
 0x14b   : > { %7288 = vst [vmem:[#allocation37_spill] sm:$0xff] %v6373_v53  ;;  %7289 = vst [vmem:[#allocation38_spill] sm:$0xff] %v6375_v56 }
 0x14e   : > { %3861 = vperm.xlu0 %5657, %v5933_v16   ;;  %3866 = vperm.xlu1 %5658, %v5938_v17   ;;  %v6381_v55 = vpop.permute.xlu0 %1559  ;;  %v6383_v51 = vpop.permute.xlu1 %1564 }
 0x14f   : > { %7290 = vst [vmem:[#allocation39_spill] sm:$0xff] %v6381_v55  ;;  %7291 = vst [vmem:[#allocation40_spill] sm:$0xff] %v6383_v51  ;;  %v539_v55 = vld [vmem:[%s6249_s25 + $0x18] sm:$0xff] }
 0x152   : > { %3871 = vperm.xlu0 %5657, %v5953_v20   ;;  %3876 = vperm.xlu1 %5658, %v5958_v21   ;;  %v6387_v52 = vpop.permute.xlu0 %1569  ;;  %v6389_v54 = vpop.permute.xlu1 %1574 }
 0x153   : > { %7292 = vst [vmem:[#allocation41_spill] sm:$0xff] %v6387_v52  ;;  %7293 = vst [vmem:[#allocation42_spill] sm:$0xff] %v6389_v54  ;;  %v536_v52 = vld [vmem:[%s6249_s25] sm:$0xff] }
 0x156   : > { %3881 = vperm.xlu0 %5657, %v5965_v22   ;;  %3886 = vperm.xlu1 %5658, %v5970_v23  }
 0x15a   : > { %3891 = vperm.xlu0 %5657, %v5977_v24   ;;  %3896 = vperm.xlu1 %5658, %v5982_v25  }
 0x15e   : > { %4150 = vperm.xlu0 %5657, %v5933_v16   ;;  %4155 = vperm.xlu1 %5658, %v5938_v17  }
 0x162   : > { %4160 = vperm.xlu0 %5657, %v5953_v20   ;;  %4165 = vperm.xlu1 %5658, %v5958_v21  }
 0x166   : > { %4170 = vperm.xlu0 %5657, %v5965_v22   ;;  %4175 = vperm.xlu1 %5658, %v5970_v23  }
 0x16a   : > { %4180 = vperm.xlu0 %5657, %v5977_v24   ;;  %4185 = vperm.xlu1 %5658, %v5982_v25  }
 0x16e   : > { %4439 = vperm.xlu0 %5657, %v5933_v16   ;;  %4444 = vperm.xlu1 %5658, %v5938_v17  }
 0x172   : > { %4449 = vperm.xlu0 %5657, %v5953_v20   ;;  %4454 = vperm.xlu1 %5658, %v5958_v21  }
 0x176   : > { %4459 = vperm.xlu0 %5657, %v5965_v22   ;;  %4464 = vperm.xlu1 %5658, %v5970_v23  }
 0x17a   : > { %4469 = vperm.xlu0 %5657, %v5977_v24   ;;  %4474 = vperm.xlu1 %5658, %v5982_v25  }
 0x17e   : > { %4728 = vperm.xlu0 %5657, %v5933_v16   ;;  %4733 = vperm.xlu1 %5658, %v5938_v17  }
 0x182   : > { %4738 = vperm.xlu0 %5657, %v5953_v20   ;;  %4743 = vperm.xlu1 %5658, %v5958_v21   ;;  %v538_v21 = vld [vmem:[%s6249_s25 + $0x10] sm:$0xff] }
 0x186   : > { %4748 = vperm.xlu0 %5657, %v5965_v22   ;;  %4753 = vperm.xlu1 %5658, %v5970_v23  }
 0x18a   : > { %4758 = vperm.xlu0 %5657, %v5977_v24   ;;  %4763 = vperm.xlu1 %5658, %v5982_v25  }
 0x1ab   : > { %v5354_v16 = vpop.f32.mrf.mxu1  ;;  %v5372_v17 = vpop.f32.mrf.mxu0 }
 0x1ac   : > { %v506_v20 = vadd.f32 %v5354_v16, %v6210_v0 }
 0x1ad   : > { %v497_v50 = vpop.f32.mrf.mxu1  ;;  %v786_v56 = vpop.f32.mrf.mxu0 }
 0x1ae   : > { %v530_v22 = vmax.f32 %v506_v20, 0.0  ;;  %v498_v23 = vadd.f32 %v497_v50, %v6202_v10  ;;  %v537_v50 = vld [vmem:[%s6249_s25 + $0x8] sm:$0xff] }
 0x1af   : > { %v5355_v51 = vpop.f32.mrf.mxu1  ;;  %v5373_v54 = vpop.f32.mrf.mxu0 }
 0x1b0   : > { %v546_v24 = vmax.f32 %v538_v21, %v530_v22  ;;  %v528_v53 = vmax.f32 %v498_v23, 0.0  ;;  %v509_v25 = vadd.f32 %v5355_v51, %v6212_v19  ;;  %v795_v21 = vadd.f32 %v5372_v17, %v6238_v61 }
 0x1b1   : > { %v500_v49 = vpop.f32.mrf.mxu1  ;;  %v789_v45 = vpop.f32.mrf.mxu0  ;;  %v787_v23 = vadd.f32 %v786_v56, %v6230_v30  ;;  %v798_v17 = vadd.f32 %v5373_v54, %v6240_v2 }
 0x1b2   : > { %554 = vst.msk [vmem:[%s6249_s25 + $0x10] sm:$0xff] %vm257_vm4, %v546_v24  ;;  %v544_v0 = vmax.f32 %v536_v52, %v528_v53  ;;  %v531_v16 = vmax.f32 %v509_v25, 0.0  ;;  %v501_v20 = vadd.f32 %v500_v49, %v6204_v18  ;;  %v542_v24 = vld [vmem:[%s6249_s25 + $0x30] sm:$0xff] }
 0x1b3   : > { %v5358_v10 = vpop.f32.mrf.mxu1  ;;  %v5376_v48 = vpop.f32.mrf.mxu0 }
 0x1b4   : > { %552 = vst.msk [vmem:[%s6249_s25] sm:$0xff] %vm257_vm4, %v544_v0  ;;  %v547_v51 = vmax.f32 %v539_v55, %v531_v16  ;;  %v529_v19 = vmax.f32 %v501_v20, 0.0  ;;  %v522_v22 = vadd.f32 %v5358_v10, %v6224_v8  ;;  %v540_v55 = vld [vmem:[%s6249_s25 + $0x20] sm:$0xff]  ;;  %v819_v8 = vmax.f32 %v795_v21, 0.0  ;;  %v543_v10 = vld [vmem:[%s6249_s25 + $0x38] sm:$0xff] }
 0x1b5   : > { %v513_v52 = vpop.f32.mrf.mxu1  ;;  %v802_v53 = vpop.f32.mrf.mxu0 }
 0x1b6   : > { %555 = vst.msk [vmem:[%s6249_s25 + $0x18] sm:$0xff] %vm257_vm4, %v547_v51  ;;  %v545_v49 = vmax.f32 %v537_v50, %v529_v19  ;;  %v534_v18 = vmax.f32 %v522_v22, 0.0  ;;  %v514_v61 = vadd.f32 %v513_v52, %v6216_v1  ;;  %v817_v50 = vmax.f32 %v787_v23, 0.0  ;;  %v541_v23 = vld [vmem:[%s6249_s25 + $0x28] sm:$0xff] }
 0x1b7   : > { %v5359_v25 = vpop.f32.mrf.mxu1  ;;  %v5377_v0 = vpop.f32.mrf.mxu0  ;;  %v790_v1 = vadd.f32 %v789_v45, %v6232_v32  ;;  %v820_v52 = vmax.f32 %v798_v17, 0.0 }
 0x1b8   : > { %553 = vst.msk [vmem:[%s6249_s25 + $0x8] sm:$0xff] %vm257_vm4, %v545_v49  ;;  %v550_v56 = vmax.f32 %v542_v24, %v534_v18  ;;  %v532_v30 = vmax.f32 %v514_v61, 0.0  ;;  %v525_v16 = vadd.f32 %v5359_v25, %v6226_v26  ;;  %v811_v26 = vadd.f32 %v5376_v48, %v6303_v13 }
 0x1b9   : > { %v827_v20 = vld [vmem:[%s6249_s25 + $0x10] sm:$0xff]  ;;  %v516_v54 = vpop.f32.mrf.mxu1  ;;  %v805_v2 = vpop.f32.mrf.mxu0  ;;  %v803_v18 = vadd.f32 %v802_v53, %v6251_v62 }
 0x1ba   : > { %v835_v51 = vmax.f32 %v827_v20, %v819_v8  ;;  %558 = vst.msk [vmem:[%s6249_s25 + $0x30] sm:$0xff] %vm257_vm4, %v550_v56  ;;  %v548_v21 = vmax.f32 %v540_v55, %v532_v30  ;;  %v535_v19 = vmax.f32 %v525_v16, 0.0  ;;  %v517_v22 = vadd.f32 %v516_v54, %v6218_v3 }
 0x1bb   : > { %v825_v24 = vld [vmem:[%s6249_s25] sm:$0xff]  ;;  %v5382_v49 = vpop.f32.mrf.mxu1  ;;  %v5400_v45 = vpop.f32.mrf.mxu0  ;;  %v818_v56 = vmax.f32 %v790_v1, 0.0  ;;  %v823_v53 = vmax.f32 %v811_v26, 0.0  ;;  %v814_v16 = vadd.f32 %v5377_v0, %v6305_v12  ;;  %v806_v12 = vadd.f32 %v805_v2, %v6297_v4 }
 0x1bc   : > { %843 = vst.msk [vmem:[%s6249_s25 + $0x10] sm:$0xff] %vm257_vm4, %v835_v51  ;;  %v833_v32 = vmax.f32 %v825_v24, %v817_v50  ;;  %556 = vst.msk [vmem:[%s6249_s25 + $0x20] sm:$0xff] %vm257_vm4, %v548_v21  ;;  %v551_v61 = vmax.f32 %v543_v10, %v535_v19  ;;  %v533_v55 = vmax.f32 %v517_v22, 0.0  ;;  %v941_v17 = vadd.f32 %v5382_v49, %v6016_v34 }
 0x1bd   : > { %v828_v3 = vld [vmem:[%s6249_s25 + $0x18] sm:$0xff]  ;;  %v1230_v48 = vadd.f32 %v5400_v45, %v6028_v38  ;;  %v932_v13 = vpop.f32.mrf.mxu1  ;;  %v1221_v25 = vpop.f32.mrf.mxu0  ;;  %v821_v10 = vmax.f32 %v803_v18, 0.0  ;;  %v5038_v18 = vld [vmem:[%s5870_s12 + $0x10] sm:$0xf] }
 0x1be   : > { %841 = vst.msk [vmem:[%s6249_s25] sm:$0xff] %vm257_vm4, %v833_v32  ;;  %v836_v8 = vmax.f32 %v828_v3, %v820_v52  ;;  %559 = vst.msk [vmem:[%s6249_s25 + $0x38] sm:$0xff] %vm257_vm4, %v551_v61  ;;  %v549_v30 = vmax.f32 %v541_v23, %v533_v55  ;;  %v933_v20 = vadd.f32 %v932_v13, %v6022_v36  ;;  %v949_v0 = vmax.f32 %v941_v17, 0.0  ;;  %v5051_v17 = vld [vmem:[%s5870_s12 + $0x14] sm:$0xf] }
 0x1bf   : > { %v826_v62 = vld [vmem:[%s6249_s25 + $0x8] sm:$0xff]  ;;  %v5383_v34 = vpop.f32.mrf.mxu1  ;;  %v5401_v38 = vpop.f32.mrf.mxu0  ;;  %v1238_v36 = vmax.f32 %v1230_v48, 0.0  ;;  %v1222_v21 = vadd.f32 %v1221_v25, %v6034_v40  ;;  %v824_v23 = vmax.f32 %v814_v16, 0.0  ;;  %v822_v48 = vmax.f32 %v806_v12, 0.0  ;;  %v5679_v16 = vld [vmem:[%s7250_s3 + $0x10] sm:$0xff]   ;;  %v5688_v12 = vld [vmem:[%s7250_s3] sm:$0xff]  }
 0x1c0   : > { %844 = vst.msk [vmem:[%s6249_s25 + $0x18] sm:$0xff] %vm257_vm4, %v836_v8  ;;  %v834_v50 = vmax.f32 %v826_v62, %v818_v56  ;;  %557 = vst.msk [vmem:[%s6249_s25 + $0x28] sm:$0xff] %vm257_vm4, %v549_v30  ;;  %v944_v1 = vadd.f32 %v5383_v34, %v6018_v35  ;;  %v1233_v54 = vadd.f32 %v5401_v38, %v6030_v39  ;;  %v947_v4 = vmax.f32 %v933_v20, 0.0  ;;  %v5677_v62 = vld [vmem:[%s7250_s3 + $0x8] sm:$0xff]   ;;  %v5680_v20 = vld [vmem:[%s7250_s3 + $0x10] sm:$0xff]  }
 0x1c1   : > { %v831_v51 = vld [vmem:[%s6249_s25 + $0x30] sm:$0xff]  ;;  %v935_v19 = vpop.f32.mrf.mxu1  ;;  %v1224_v22 = vpop.f32.mrf.mxu0  ;;  %v1236_v55 = vmax.f32 %v1222_v21, 0.0  ;;  %v1474_v56 = vand.u32 %v5038_v18, %v5862_v9  ;;  %v1763_v30 = vand.u32 %v5051_v17, %v5862_v9  ;;  %v5681_v34 = vld [vmem:[%s7250_s3 + $0x18] sm:$0xff]  }
 0x1c2   : > { %842 = vst.msk [vmem:[%s6249_s25 + $0x8] sm:$0xff] %vm257_vm4, %v834_v50  ;;  %v839_v24 = vmax.f32 %v831_v51, %v823_v53  ;;  %v950_v52 = vmax.f32 %v944_v1, 0.0  ;;  %v1239_v35 = vmax.f32 %v1233_v54, 0.0  ;;  %v936_v39 = vadd.f32 %v935_v19, %v6024_v37  ;;  %v5678_v53 = vld [vmem:[%s7250_s3 + $0x8] sm:$0xff]   ;;  %v5682_v38 = vld [vmem:[%s7250_s3 + $0x18] sm:$0xff]   ;;  %v5683_v50 = vld [vmem:[%s7248_s1] sm:$0xff]  }
 0x1c3   : > { %v829_v26 = vld [vmem:[%s6249_s25 + $0x20] sm:$0xff]  ;;  %v1225_v2 = vadd.f32 %v1224_v22, %v6036_v41  ;;  %v5685_v1 = vld [vmem:[%s7248_s1 + $0x8] sm:$0xff]  }
 0x1c4   : > { %847 = vst.msk [vmem:[%s6249_s25 + $0x30] sm:$0xff] %vm257_vm4, %v839_v24  ;;  %v837_v40 = vmax.f32 %v829_v26, %v821_v10  ;;  %v952_v49 = vpack.c.bf16 %v950_v52, %v949_v0  ;;  %v1241_v45 = vpack.c.bf16 %v1239_v35, %v1238_v36  ;;  %v948_v32 = vmax.f32 %v936_v39, 0.0  ;;  %v5684_v10 = vld [vmem:[%s7248_s1] sm:$0xff]   ;;  %v5686_v54 = vld [vmem:[%s7248_s1 + $0x8] sm:$0xff]   ;;  %v1116_v35 = vld [vmem:[%s6249_s25 + $0x10] sm:$0xff] }
 0x1c5   : > { %v832_v61 = vld [vmem:[%s6249_s25 + $0x38] sm:$0xff]  ;;  %v1237_v3 = vmax.f32 %v1225_v2, 0.0  ;;  %v5687_v51 = vld [vmem:[%s7250_s3] sm:$0xff]  }
 0x1c6   : > { %845 = vst.msk [vmem:[%s6249_s25 + $0x20] sm:$0xff] %vm257_vm4, %v837_v40  ;;  %v840_v37 = vmax.f32 %v832_v61, %v824_v23  ;;  %v951_v13 = vpack.c.bf16 %v948_v32, %v947_v4  ;;  %5384 = vmatprep.subr.bf16.mxu1 %v952_v49  ;;  %5402 = vmatprep.subr.bf16.mxu0 %v1241_v45  ;;  %v1114_v40 = vld [vmem:[%s6249_s25] sm:$0xff] }
 0x1c7   : > { %v830_v41 = vld [vmem:[%s6249_s25 + $0x28] sm:$0xff]  ;;  %v1240_v25 = vpack.c.bf16 %v1237_v3, %v1236_v55  ;;  %5385 = vmatpush3.bf16.msra.mxu1 %v952_v49  ;;  %5403 = vmatpush3.bf16.msra.mxu0 %v1241_v45 }
 0x1c8   : > { %848 = vst.msk [vmem:[%s6249_s25 + $0x38] sm:$0xff] %vm257_vm4, %v840_v37  ;;  %v838_v8 = vmax.f32 %v830_v41, %v822_v48  ;;  %5386 = vmatprep.subr.bf16.mxu1 %v951_v13 }
 0x1c9   : > { %5404 = vmatprep.subr.bf16.mxu0 %v1240_v25 }
 0x1ca   : > { %846 = vst.msk [vmem:[%s6249_s25 + $0x28] sm:$0xff] %vm257_vm4, %v838_v8 }
 0x1cb   : > { %5387 = vmatpush3.bf16.msra.mxu1 %v951_v13  ;;  %5405 = vmatpush3.bf16.msra.mxu0 %v1240_v25  ;;  %v1115_v13 = vld [vmem:[%s6249_s25 + $0x8] sm:$0xff] }
 0x1cc   : > { %5414 = vmatprep.subr.bf16.mxu1 %v1474_v56  ;;  %5432 = vmatprep.subr.bf16.mxu0 %v1763_v30 }
 0x1ce   : > { %5389 = vmatmul.mubr.msk.bf16.vlgmr.msra.gmra.mxu1 %vm450_vm3, %v5677_v62  ;;  %5407 = vmatmul.mubr.msk.bf16.vlgmr.msra.gmra.mxu0 %vm450_vm3, %v5678_v53 }
 0x1cf   : > { %5415 = vmatpush3.bf16.msra.mxu1 %v1474_v56  ;;  %5392 = vmatprep.mubr.msk.bf16.mxu1 %vm450_vm3, %v5679_v16 }
 0x1d0   : > { %5410 = vmatprep.mubr.msk.bf16.mxu0 %vm450_vm3, %v5680_v20  ;;  %5433 = vmatpush3.bf16.msra.mxu0 %v1763_v30  ;;  %v1120_v30 = vld [vmem:[%s6249_s25 + $0x30] sm:$0xff] }
 0x1d6   : > { %5393 = vmatmul.mubr.msk.bf16.gmra.mxu1 %vm450_vm3, %v5681_v34  ;;  %5411 = vmatmul.mubr.msk.bf16.gmra.mxu0 %vm450_vm3, %v5682_v38 }
 0x1d7   : > { %5416 = vmatprep.mubr.msk.bf16.mxu1 %vm305_vm2, %v5683_v50  ;;  %5434 = vmatprep.mubr.msk.bf16.mxu0 %vm305_vm2, %v5684_v10  ;;  %v1118_v50 = vld [vmem:[%s6249_s25 + $0x20] sm:$0xff] }
 0x1de   : > { %5417 = vmatmul.mubr.msk.bf16.vlgmr.msra.gmra.mxu1 %vm305_vm2, %v5685_v1  ;;  %5435 = vmatmul.mubr.msk.bf16.vlgmr.msra.gmra.mxu0 %vm305_vm2, %v5686_v54 }
 0x1df   : > { %5424 = vmatprep.mubr.msk.bf16.mxu1 %vm450_vm3, %v5687_v51  ;;  %5442 = vmatprep.mubr.msk.bf16.mxu0 %vm450_vm3, %v5688_v12 }
 0x28e   : > { %v5390_v0 = vpop.f32.mrf.mxu1  ;;  %v5408_v36 = vpop.f32.mrf.mxu0 }
 0x28f   : > { %v1084_v21 = vadd.f32 %v5390_v0, %v6325_v63  ;;  %v1373_v3 = vadd.f32 %v5408_v36, %v6353_v31 }
 0x290   : > { %v1075_v19 = vpop.f32.mrf.mxu1  ;;  %v1364_v22 = vpop.f32.mrf.mxu0 }
 0x291   : > { %v1108_v24 = vmax.f32 %v1084_v21, 0.0  ;;  %v1076_v52 = vadd.f32 %v1075_v19, %v6315_v33  ;;  %v1117_v33 = vld [vmem:[%s6249_s25 + $0x18] sm:$0xff]  ;;  %v1365_v48 = vadd.f32 %v1364_v22, %v6345_v6 }
 0x292   : > { %v5391_v39 = vpop.f32.mrf.mxu1  ;;  %v5409_v26 = vpop.f32.mrf.mxu0  ;;  %v1121_v21 = vld [vmem:[%s6249_s25 + $0x38] sm:$0xff] }
 0x293   : > { %v1124_v23 = vmax.f32 %v1116_v35, %v1108_v24  ;;  %v1106_v4 = vmax.f32 %v1076_v52, 0.0  ;;  %v1087_v2 = vadd.f32 %v5391_v39, %v6327_v29  ;;  %v1376_v56 = vadd.f32 %v5409_v26, %v6355_v59  ;;  %v1119_v39 = vld [vmem:[%s6249_s25 + $0x28] sm:$0xff] }
 0x294   : > { %v1078_v49 = vpop.f32.mrf.mxu1  ;;  %v1367_v45 = vpop.f32.mrf.mxu0  ;;  %v1395_v38 = vmax.f32 %v1365_v48, 0.0 }
 0x295   : > { %1132 = vst.msk [vmem:[%s6249_s25 + $0x10] sm:$0xff] %vm257_vm4, %v1124_v23  ;;  %v1122_v63 = vmax.f32 %v1114_v40, %v1106_v4  ;;  %v1109_v32 = vmax.f32 %v1087_v2, 0.0  ;;  %v1079_v18 = vadd.f32 %v1078_v49, %v6317_v27 }
 0x296   : > { %v5394_v61 = vpop.f32.mrf.mxu1  ;;  %v5412_v55 = vpop.f32.mrf.mxu0 }
 0x297   : > { %1130 = vst.msk [vmem:[%s6249_s25] sm:$0xff] %vm257_vm4, %v1122_v63  ;;  %v1125_v29 = vmax.f32 %v1117_v33, %v1109_v32  ;;  %v1107_v17 = vmax.f32 %v1079_v18, 0.0  ;;  %v1100_v37 = vadd.f32 %v5394_v61, %v6339_v7  ;;  %v1397_v7 = vmax.f32 %v1373_v3, 0.0 }
 0x298   : > { %v1091_v41 = vpop.f32.mrf.mxu1  ;;  %v1380_v25 = vpop.f32.mrf.mxu0  ;;  %v1389_v36 = vadd.f32 %v5412_v55, %v6367_v58 }
 0x299   : > { %1133 = vst.msk [vmem:[%s6249_s25 + $0x18] sm:$0xff] %vm257_vm4, %v1125_v29  ;;  %v1123_v27 = vmax.f32 %v1115_v13, %v1107_v17  ;;  %v1112_v8 = vmax.f32 %v1100_v37, 0.0  ;;  %v1092_v31 = vadd.f32 %v1091_v41, %v6331_v60  ;;  %v1368_v60 = vadd.f32 %v1367_v45, %v6347_v14  ;;  %v7294_v17 = vld [vmem:[#allocation3_spill] sm:$0xff] }
 0x29a   : > { %v5395_v62 = vpop.f32.mrf.mxu1  ;;  %v5413_v53 = vpop.f32.mrf.mxu0  ;;  %v1381_v24 = vadd.f32 %v1380_v25, %v6359_v5  ;;  %v1401_v45 = vmax.f32 %v1389_v36, 0.0  ;;  %v5690_v36 = vld [vmem:[%s7250_s3 + $0x8] sm:$0xff]  }
 0x29b   : > { %1131 = vst.msk [vmem:[%s6249_s25 + $0x8] sm:$0xff] %vm257_vm4, %v1123_v27  ;;  %v1128_v6 = vmax.f32 %v1120_v30, %v1112_v8  ;;  %v1110_v16 = vmax.f32 %v1092_v31, 0.0  ;;  %v1103_v20 = vadd.f32 %v5395_v62, %v6341_v11  ;;  %v1398_v11 = vmax.f32 %v1376_v56, 0.0  ;;  %v7295_v27 = vld [vmem:[#allocation2_spill] sm:$0xff]  ;;  %v7296_v56 = vld [vmem:[#allocation4_spill] sm:$0xff] }
 0x29c   : > { %v1405_v34 = vld [vmem:[%s6249_s25 + $0x10] sm:$0xff]  ;;  %v1094_v59 = vpop.f32.mrf.mxu1  ;;  %v1383_v10 = vpop.f32.mrf.mxu0  ;;  %v1396_v40 = vmax.f32 %v1368_v60, 0.0  ;;  %v1392_v63 = vadd.f32 %v5413_v53, %v6369_v57  ;;  %v1399_v33 = vmax.f32 %v1381_v24, 0.0  ;;  %v5077_v60 = vld [vmem:[%s5870_s12 + $0x1c] sm:$0xf]  ;;  %v5695_v24 = vld [vmem:[%s7248_s1] sm:$0xff]  }
 0x29d   : > { %v1413_v1 = vmax.f32 %v1405_v34, %v1397_v7  ;;  %1136 = vst.msk [vmem:[%s6249_s25 + $0x30] sm:$0xff] %vm257_vm4, %v1128_v6  ;;  %v1126_v54 = vmax.f32 %v1118_v50, %v1110_v16  ;;  %v1113_v51 = vmax.f32 %v1103_v20, 0.0  ;;  %v1095_v12 = vadd.f32 %v1094_v59, %v6333_v15  ;;  %v5064_v16 = vld [vmem:[%s5870_s12 + $0x18] sm:$0xf] }
 0x29e   : > { %v1403_v0 = vld [vmem:[%s6249_s25] sm:$0xff]  ;;  %v5418_v14 = vpop.f32.mrf.mxu1  ;;  %v5436_v19 = vpop.f32.mrf.mxu0  ;;  %v1384_v57 = vadd.f32 %v1383_v10, %v6361_v28  ;;  %v1402_v31 = vmax.f32 %v1392_v63, 0.0 }
 0x29f   : > { %1421 = vst.msk [vmem:[%s6249_s25 + $0x10] sm:$0xff] %vm257_vm4, %v1413_v1  ;;  %v1411_v22 = vmax.f32 %v1403_v0, %v1395_v38  ;;  %1134 = vst.msk [vmem:[%s6249_s25 + $0x20] sm:$0xff] %vm257_vm4, %v1126_v54  ;;  %v1129_v52 = vmax.f32 %v1121_v21, %v1113_v51  ;;  %v1111_v35 = vmax.f32 %v1095_v12, 0.0  ;;  %v1519_v58 = vadd.f32 %v5418_v14, %v6040_v42  ;;  %v5691_v21 = vld [vmem:[%s7250_s3 + $0x10] sm:$0xff]  }
 0x2a0   : > { %v1406_v15 = vld [vmem:[%s6249_s25 + $0x18] sm:$0xff]  ;;  %v1808_v26 = vadd.f32 %v5436_v19, %v6054_v46  ;;  %v1510_v23 = vpop.f32.mrf.mxu1  ;;  %v1799_v4 = vpop.f32.mrf.mxu0  ;;  %v1400_v59 = vmax.f32 %v1384_v57, 0.0  ;;  %v2052_v12 = vand.u32 %v5064_v16, %v5862_v9  ;;  %v2341_v0 = vand.u32 %v5077_v60, %v5862_v9  ;;  %v5692_v14 = vld [vmem:[%s7250_s3 + $0x10] sm:$0xff]  }
 0x2a1   : > { %1419 = vst.msk [vmem:[%s6249_s25] sm:$0xff] %vm257_vm4, %v1411_v22  ;;  %v1414_v2 = vmax.f32 %v1406_v15, %v1398_v11  ;;  %1137 = vst.msk [vmem:[%s6249_s25 + $0x38] sm:$0xff] %vm257_vm4, %v1129_v52  ;;  %v1127_v5 = vmax.f32 %v1119_v39, %v1111_v35  ;;  %v1511_v32 = vadd.f32 %v1510_v23, %v6046_v44  ;;  %v1527_v29 = vmax.f32 %v1519_v58, 0.0  ;;  %v5689_v11 = vld [vmem:[%s7250_s3 + $0x8] sm:$0xff]   ;;  %v5693_v19 = vld [vmem:[%s7250_s3 + $0x18] sm:$0xff]   ;;  %v1585_v23 = vpop.permute.xlu1 %1584 }
 0x2a2   : > { %v1404_v49 = vld [vmem:[%s6249_s25 + $0x8] sm:$0xff]  ;;  %v5419_v42 = vpop.f32.mrf.mxu1  ;;  %v5437_v46 = vpop.f32.mrf.mxu0  ;;  %v1816_v44 = vmax.f32 %v1808_v26, 0.0  ;;  %v1800_v37 = vadd.f32 %v1799_v4, %v7294_v17  ;;  %v5694_v22 = vld [vmem:[%s7250_s3 + $0x18] sm:$0xff]   ;;  %v5696_v52 = vld [vmem:[%s7248_s1] sm:$0xff]  }
 0x2a3   : > { %1422 = vst.msk [vmem:[%s6249_s25 + $0x18] sm:$0xff] %vm257_vm4, %v1414_v2  ;;  %v1412_v18 = vmax.f32 %v1404_v49, %v1396_v40  ;;  %1135 = vst.msk [vmem:[%s6249_s25 + $0x28] sm:$0xff] %vm257_vm4, %v1127_v5  ;;  %v1522_v61 = vadd.f32 %v5419_v42, %v6042_v43  ;;  %v1811_v55 = vadd.f32 %v5437_v46, %v6056_v47  ;;  %v1525_v28 = vmax.f32 %v1511_v32, 0.0  ;;  %v5697_v35 = vld [vmem:[%s7248_s1 + $0x8] sm:$0xff]   ;;  %v5699_v39 = vld [vmem:[%s7250_s3] sm:$0xff]   ;;  %v1580_v26 = vpop.permute.xlu0 %1579 }
 0x2a4   : > { %v1409_v3 = vld [vmem:[%s6249_s25 + $0x30] sm:$0xff]  ;;  %v1513_v48 = vpop.f32.mrf.mxu1  ;;  %v1802_v13 = vpop.f32.mrf.mxu0  ;;  %v1814_v34 = vmax.f32 %v1800_v37, 0.0  ;;  %v5698_v15 = vld [vmem:[%s7248_s1 + $0x8] sm:$0xff]   ;;  %v5700_v58 = vld [vmem:[%s7250_s3] sm:$0xff]  }
 0x2a5   : > { %1420 = vst.msk [vmem:[%s6249_s25 + $0x8] sm:$0xff] %vm257_vm4, %v1412_v18  ;;  %v1417_v41 = vmax.f32 %v1409_v3, %v1401_v45  ;;  %v1528_v25 = vmax.f32 %v1522_v61, 0.0  ;;  %v1817_v43 = vmax.f32 %v1811_v55, 0.0  ;;  %v1514_v47 = vadd.f32 %v1513_v48, %v7295_v27  ;;  %v1844_v5 = vpop.permute.xlu1 %1843  ;;  %v7297_v49 = vld [vmem:[#allocation39_spill] sm:$0xff]  ;;  %v7298_v18 = vld [vmem:[#allocation37_spill] sm:$0xff]  ;;  %v7300_v27 = vld [vmem:[#allocation38_spill] sm:$0xff] }
 0x2a6   : > { %v1407_v8 = vld [vmem:[%s6249_s25 + $0x20] sm:$0xff]  ;;  %v1803_v30 = vadd.f32 %v1802_v13, %v7296_v56  ;;  %v1694_v61 = vld [vmem:[%s6249_s25 + $0x10] sm:$0xff] }
 0x2a7   : > { %1425 = vst.msk [vmem:[%s6249_s25 + $0x30] sm:$0xff] %vm257_vm4, %v1417_v41  ;;  %v1415_v62 = vmax.f32 %v1407_v8, %v1399_v33  ;;  %v1530_v53 = vpack.c.bf16 %v1528_v25, %v1527_v29  ;;  %v1819_v7 = vpack.c.bf16 %v1817_v43, %v1816_v44  ;;  %v1526_v6 = vmax.f32 %v1514_v47, 0.0  ;;  %v1839_v4 = vpop.permute.xlu0 %1838  ;;  %v7299_v44 = vld [vmem:[#allocation40_spill] sm:$0xff] }
 0x2a8   : > { %v1410_v20 = vld [vmem:[%s6249_s25 + $0x38] sm:$0xff]  ;;  %v1815_v38 = vmax.f32 %v1803_v30, 0.0  ;;  %v1692_v37 = vld [vmem:[%s6249_s25] sm:$0xff] }
 0x2a9   : > { %1423 = vst.msk [vmem:[%s6249_s25 + $0x20] sm:$0xff] %vm257_vm4, %v1415_v62  ;;  %v1418_v50 = vmax.f32 %v1410_v20, %v1402_v31  ;;  %v1529_v10 = vpack.c.bf16 %v1526_v6, %v1525_v28  ;;  %5420 = vmatprep.subr.bf16.mxu1 %v1530_v53  ;;  %5438 = vmatprep.subr.bf16.mxu0 %v1819_v7  ;;  %v1854_v41 = vpop.permute.xlu1 %1853 }
 0x2aa   : > { %v1408_v1 = vld [vmem:[%s6249_s25 + $0x28] sm:$0xff]  ;;  %v1818_v54 = vpack.c.bf16 %v1815_v38, %v1814_v34  ;;  %5421 = vmatpush3.bf16.msra.mxu1 %v1530_v53  ;;  %5439 = vmatpush3.bf16.msra.mxu0 %v1819_v7  ;;  %v1695_v8 = vld [vmem:[%s6249_s25 + $0x18] sm:$0xff] }
 0x2ab   : > { %1426 = vst.msk [vmem:[%s6249_s25 + $0x38] sm:$0xff] %vm257_vm4, %v1418_v50  ;;  %v1416_v51 = vmax.f32 %v1408_v1, %v1400_v59  ;;  %5422 = vmatprep.subr.bf16.mxu1 %v1529_v10  ;;  %v1849_v42 = vpop.permute.xlu0 %1848  ;;  %v7301_v50 = vld [vmem:[#allocation41_spill] sm:$0xff] }
 0x2ac   : > { %5440 = vmatprep.subr.bf16.mxu0 %v1818_v54  ;;  %v1693_v16 = vld [vmem:[%s6249_s25 + $0x8] sm:$0xff] }
 0x2ad   : > { %1424 = vst.msk [vmem:[%s6249_s25 + $0x28] sm:$0xff] %vm257_vm4, %v1416_v51 }
 0x2ae   : > { %5423 = vmatpush3.bf16.msra.mxu1 %v1529_v10  ;;  %5441 = vmatpush3.bf16.msra.mxu0 %v1818_v54  ;;  %v1698_v1 = vld [vmem:[%s6249_s25 + $0x30] sm:$0xff] }
 0x2af   : > { %5450 = vmatprep.subr.bf16.mxu1 %v2052_v12  ;;  %5468 = vmatprep.subr.bf16.mxu0 %v2341_v0  ;;  %v1859_v56 = vpop.permute.xlu0 %1858 }
 0x2b1   : > { %5425 = vmatmul.mubr.msk.bf16.vlgmr.msra.gmra.mxu1 %vm450_vm3, %v5689_v11  ;;  %5443 = vmatmul.mubr.msk.bf16.vlgmr.msra.gmra.mxu0 %vm450_vm3, %v5690_v36 }
 0x2b2   : > { %5451 = vmatpush3.bf16.msra.mxu1 %v2052_v12  ;;  %5428 = vmatprep.mubr.msk.bf16.mxu1 %vm450_vm3, %v5691_v21  ;;  %v1864_v12 = vpop.permute.xlu1 %1863 }
 0x2b3   : > { %5446 = vmatprep.mubr.msk.bf16.mxu0 %vm450_vm3, %v5692_v14  ;;  %5469 = vmatpush3.bf16.msra.mxu0 %v2341_v0 }
 0x2b9   : > { %5429 = vmatmul.mubr.msk.bf16.gmra.mxu1 %vm450_vm3, %v5693_v19  ;;  %5447 = vmatmul.mubr.msk.bf16.gmra.mxu0 %vm450_vm3, %v5694_v22 }
 0x2ba   : > { %5452 = vmatprep.mubr.msk.bf16.mxu1 %vm305_vm2, %v5695_v24  ;;  %5470 = vmatprep.mubr.msk.bf16.mxu0 %vm305_vm2, %v5696_v52  ;;  %v1696_v24 = vld [vmem:[%s6249_s25 + $0x20] sm:$0xff] }
 0x2c1   : > { %5453 = vmatmul.mubr.msk.bf16.vlgmr.msra.gmra.mxu1 %vm305_vm2, %v5697_v35  ;;  %5471 = vmatmul.mubr.msk.bf16.vlgmr.msra.gmra.mxu0 %vm305_vm2, %v5698_v15  ;;  %v1869_v15 = vpop.permute.xlu0 %1868 }
 0x2c2   : > { %5460 = vmatprep.mubr.msk.bf16.mxu1 %vm450_vm3, %v5699_v39  ;;  %5478 = vmatprep.mubr.msk.bf16.mxu0 %vm450_vm3, %v5700_v58 }
 0x371   : > { %v5426_v2 = vpop.f32.mrf.mxu1  ;;  %v5444_v40 = vpop.f32.mrf.mxu0 }
 0x372   : > { %v1662_v45 = vadd.f32 %v5426_v2, %v7297_v49  ;;  %v1951_v30 = vadd.f32 %v5444_v40, %v1849_v42 }
 0x373   : > { %v1653_v63 = vpop.f32.mrf.mxu1  ;;  %v1942_v32 = vpop.f32.mrf.mxu0 }
 0x374   : > { %v1686_v46 = vmax.f32 %v1662_v45, 0.0  ;;  %v1654_v33 = vadd.f32 %v1653_v63, %v7298_v18  ;;  %v1943_v6 = vadd.f32 %v1942_v32, %v1839_v4  ;;  %v1975_v0 = vmax.f32 %v1951_v30, 0.0  ;;  %v7302_v4 = vld [vmem:[#allocation42_spill] sm:$0xff]  ;;  %v1699_v45 = vld [vmem:[%s6249_s25 + $0x38] sm:$0xff] }
 0x375   : > { %v5427_v55 = vpop.f32.mrf.mxu1  ;;  %v5445_v3 = vpop.f32.mrf.mxu0 }
 0x376   : > { %v1702_v57 = vmax.f32 %v1694_v61, %v1686_v46  ;;  %v1684_v29 = vmax.f32 %v1654_v33, 0.0  ;;  %v1665_v17 = vadd.f32 %v5427_v55, %v7299_v44  ;;  %v1954_v10 = vadd.f32 %v5445_v3, %v1854_v41  ;;  %v1697_v61 = vld [vmem:[%s6249_s25 + $0x28] sm:$0xff]  ;;  %v7303_v55 = vld [vmem:[#allocation5_spill] sm:$0xff] }
 0x377   : > { %v1656_v48 = vpop.f32.mrf.mxu1  ;;  %v1945_v13 = vpop.f32.mrf.mxu0  ;;  %v1973_v19 = vmax.f32 %v1943_v6, 0.0 }
 0x378   : > { %1710 = vst.msk [vmem:[%s6249_s25 + $0x10] sm:$0xff] %vm257_vm4, %v1702_v57  ;;  %v1700_v25 = vmax.f32 %v1692_v37, %v1684_v29  ;;  %v1687_v43 = vmax.f32 %v1665_v17, 0.0  ;;  %v1657_v47 = vadd.f32 %v1656_v48, %v7300_v27  ;;  %v1946_v22 = vadd.f32 %v1945_v13, %v1844_v5  ;;  %v7304_v57 = vld [vmem:[#allocation9_spill] sm:$0xff]  ;;  %v1874_v37 = vpop.permute.xlu1 %1873 }
 0x379   : > { %v5430_v31 = vpop.f32.mrf.mxu1  ;;  %v5448_v28 = vpop.f32.mrf.mxu0  ;;  %v1976_v40 = vmax.f32 %v1954_v10, 0.0 }
 0x37a   : > { %1708 = vst.msk [vmem:[%s6249_s25] sm:$0xff] %vm257_vm4, %v1700_v25  ;;  %v1703_v62 = vmax.f32 %v1695_v8, %v1687_v43  ;;  %v1685_v53 = vmax.f32 %v1657_v47, 0.0  ;;  %v1678_v7 = vadd.f32 %v5430_v31, %v1580_v26  ;;  %v1967_v49 = vadd.f32 %v5448_v28, %v1869_v15  ;;  %v7305_v47 = vld [vmem:[#allocation7_spill] sm:$0xff]  ;;  %v5090_v15 = vld [vmem:[%s5870_s12 + $0x20] sm:$0xf] }
 0x37b   : > { %v1669_v20 = vpop.f32.mrf.mxu1  ;;  %v1958_v34 = vpop.f32.mrf.mxu0  ;;  %v1974_v13 = vmax.f32 %v1946_v22, 0.0 }
 0x37c   : > { %1711 = vst.msk [vmem:[%s6249_s25 + $0x18] sm:$0xff] %vm257_vm4, %v1703_v62  ;;  %v1701_v38 = vmax.f32 %v1693_v16, %v1685_v53  ;;  %v1690_v60 = vmax.f32 %v1678_v7, 0.0  ;;  %v1670_v59 = vadd.f32 %v1669_v20, %v7301_v50  ;;  %v1959_v42 = vadd.f32 %v1958_v34, %v1859_v56  ;;  %v7306_v62 = vld [vmem:[#allocation6_spill] sm:$0xff] }
 0x37d   : > { %v5431_v54 = vpop.f32.mrf.mxu1  ;;  %v5449_v51 = vpop.f32.mrf.mxu0  ;;  %v1979_v43 = vmax.f32 %v1967_v49, 0.0  ;;  %v7307_v7 = vld [vmem:[#allocation10_spill] sm:$0xff] }
 0x37e   : > { %1709 = vst.msk [vmem:[%s6249_s25 + $0x8] sm:$0xff] %vm257_vm4, %v1701_v38  ;;  %v1706_v11 = vmax.f32 %v1698_v1, %v1690_v60  ;;  %v1688_v36 = vmax.f32 %v1670_v59, 0.0  ;;  %v1681_v21 = vadd.f32 %v5431_v54, %v1585_v23  ;;  %v1970_v27 = vadd.f32 %v5449_v51, %v1874_v37  ;;  %v7308_v60 = vld [vmem:[#allocation11_spill] sm:$0xff]  ;;  %v5712_v37 = vld [vmem:[%s7250_s3] sm:$0xff]  }
 0x37f   : > { %v1983_v14 = vld [vmem:[%s6249_s25 + $0x10] sm:$0xff]  ;;  %v1672_v52 = vpop.f32.mrf.mxu1  ;;  %v1961_v35 = vpop.f32.mrf.mxu0  ;;  %v1977_v30 = vmax.f32 %v1959_v42, 0.0  ;;  %v5701_v42 = vld [vmem:[%s7250_s3 + $0x8] sm:$0xff]  }
 0x380   : > { %v1991_v39 = vmax.f32 %v1983_v14, %v1975_v0  ;;  %1714 = vst.msk [vmem:[%s6249_s25 + $0x30] sm:$0xff] %vm257_vm4, %v1706_v11  ;;  %v1704_v58 = vmax.f32 %v1696_v24, %v1688_v36  ;;  %v1691_v26 = vmax.f32 %v1681_v21, 0.0  ;;  %v1673_v2 = vadd.f32 %v1672_v52, %v7302_v4  ;;  %v7309_v0 = vld [vmem:[#allocation8_spill] sm:$0xff]  ;;  %v5103_v4 = vld [vmem:[%s5870_s12 + $0x24] sm:$0xf] }
 0x381   : > { %v1981_v23 = vld [vmem:[%s6249_s25] sm:$0xff]  ;;  %v5454_v5 = vpop.f32.mrf.mxu1  ;;  %v5472_v63 = vpop.f32.mrf.mxu0  ;;  %v1962_v20 = vadd.f32 %v1961_v35, %v1864_v12  ;;  %v1980_v21 = vmax.f32 %v1970_v27, 0.0  ;;  %v7310_v14 = vld [vmem:[#allocation12_spill] sm:$0xff] }
 0x382   : > { %1999 = vst.msk [vmem:[%s6249_s25 + $0x10] sm:$0xff] %vm257_vm4, %v1991_v39  ;;  %v1989_v32 = vmax.f32 %v1981_v23, %v1973_v19  ;;  %1712 = vst.msk [vmem:[%s6249_s25 + $0x20] sm:$0xff] %vm257_vm4, %v1704_v58  ;;  %v1707_v46 = vmax.f32 %v1699_v45, %v1691_v26  ;;  %v1689_v18 = vmax.f32 %v1673_v2, 0.0  ;;  %v2097_v3 = vadd.f32 %v5454_v5, %v7303_v55  ;;  %v5706_v55 = vld [vmem:[%s7250_s3 + $0x18] sm:$0xff]  }
 0x383   : > { %v1984_v33 = vld [vmem:[%s6249_s25 + $0x18] sm:$0xff]  ;;  %v2386_v29 = vadd.f32 %v5472_v63, %v7304_v57  ;;  %v2088_v44 = vpop.f32.mrf.mxu1  ;;  %v2377_v17 = vpop.f32.mrf.mxu0  ;;  %v1978_v23 = vmax.f32 %v1962_v20, 0.0  ;;  %v2630_v63 = vand.u32 %v5090_v15, %v5862_v9  ;;  %v5708_v57 = vld [vmem:[%s7248_s1] sm:$0xff]  }
 0x384   : > { %1997 = vst.msk [vmem:[%s6249_s25] sm:$0xff] %vm257_vm4, %v1989_v32  ;;  %v1992_v48 = vmax.f32 %v1984_v33, %v1976_v40  ;;  %1715 = vst.msk [vmem:[%s6249_s25 + $0x38] sm:$0xff] %vm257_vm4, %v1707_v46  ;;  %v1705_v41 = vmax.f32 %v1697_v61, %v1689_v18  ;;  %v2089_v8 = vadd.f32 %v2088_v44, %v7305_v47  ;;  %v2105_v34 = vmax.f32 %v2097_v3, 0.0  ;;  %v5702_v46 = vld [vmem:[%s7250_s3 + $0x8] sm:$0xff]   ;;  %v5703_v18 = vld [vmem:[%s7250_s3 + $0x10] sm:$0xff]  }
 0x385   : > { %v1982_v25 = vld [vmem:[%s6249_s25 + $0x8] sm:$0xff]  ;;  %v5455_v31 = vpop.f32.mrf.mxu1  ;;  %v5473_v28 = vpop.f32.mrf.mxu0  ;;  %v2394_v38 = vmax.f32 %v2386_v29, 0.0  ;;  %v2378_v50 = vadd.f32 %v2377_v17, %v7308_v60  ;;  %v2919_v32 = vand.u32 %v5103_v4, %v5862_v9  ;;  %v5704_v33 = vld [vmem:[%s7250_s3 + $0x10] sm:$0xff]   ;;  %v5705_v61 = vld [vmem:[%s7250_s3 + $0x18] sm:$0xff]  }
 0x386   : > { %2000 = vst.msk [vmem:[%s6249_s25 + $0x18] sm:$0xff] %vm257_vm4, %v1992_v48  ;;  %v1990_v56 = vmax.f32 %v1982_v25, %v1974_v13  ;;  %1713 = vst.msk [vmem:[%s6249_s25 + $0x28] sm:$0xff] %vm257_vm4, %v1705_v41  ;;  %v2100_v53 = vadd.f32 %v5455_v31, %v7306_v62  ;;  %v2389_v6 = vadd.f32 %v5473_v28, %v7307_v7  ;;  %v2103_v12 = vmax.f32 %v2089_v8, 0.0  ;;  %v5707_v3 = vld [vmem:[%s7248_s1] sm:$0xff]   ;;  %v5709_v29 = vld [vmem:[%s7248_s1 + $0x8] sm:$0xff]   ;;  %v2128_v48 = vpop.permute.xlu0 %2127  ;;  %v2133_v13 = vpop.permute.xlu1 %2132 }
 0x387   : > { %v1987_v16 = vld [vmem:[%s6249_s25 + $0x30] sm:$0xff]  ;;  %v2091_v59 = vpop.f32.mrf.mxu1  ;;  %v2380_v10 = vpop.f32.mrf.mxu0  ;;  %v2392_v58 = vmax.f32 %v2378_v50, 0.0  ;;  %v5710_v44 = vld [vmem:[%s7248_s1 + $0x8] sm:$0xff]   ;;  %v5711_v17 = vld [vmem:[%s7250_s3] sm:$0xff]  }
 0x388   : > { %1998 = vst.msk [vmem:[%s6249_s25 + $0x8] sm:$0xff] %vm257_vm4, %v1990_v56  ;;  %v1995_v1 = vmax.f32 %v1987_v16, %v1979_v43  ;;  %v2106_v54 = vmax.f32 %v2100_v53, 0.0  ;;  %v2395_v51 = vmax.f32 %v2389_v6, 0.0  ;;  %v2092_v11 = vadd.f32 %v2091_v59, %v7309_v0 }
 0x389   : > { %v1985_v36 = vld [vmem:[%s6249_s25 + $0x20] sm:$0xff]  ;;  %v2381_v19 = vadd.f32 %v2380_v10, %v7310_v14 }
 0x38a   : > { %2003 = vst.msk [vmem:[%s6249_s25 + $0x30] sm:$0xff] %vm257_vm4, %v1995_v1  ;;  %v1993_v22 = vmax.f32 %v1985_v36, %v1977_v30  ;;  %v2108_v24 = vpack.c.bf16 %v2106_v54, %v2105_v34  ;;  %v2397_v52 = vpack.c.bf16 %v2395_v51, %v2394_v38  ;;  %v2104_v35 = vmax.f32 %v2092_v11, 0.0  ;;  %v2138_v41 = vpop.permute.xlu0 %2137  ;;  %v2143_v25 = vpop.permute.xlu1 %2142  ;;  %v2272_v51 = vld [vmem:[%s6249_s25 + $0x10] sm:$0xff] }
 0x38b   : > { %v1988_v39 = vld [vmem:[%s6249_s25 + $0x38] sm:$0xff]  ;;  %v2393_v26 = vmax.f32 %v2381_v19, 0.0  ;;  %v2270_v14 = vld [vmem:[%s6249_s25] sm:$0xff] }
 0x38c   : > { %2001 = vst.msk [vmem:[%s6249_s25 + $0x20] sm:$0xff] %vm257_vm4, %v1993_v22  ;;  %v1996_v2 = vmax.f32 %v1988_v39, %v1980_v21  ;;  %v2107_v40 = vpack.c.bf16 %v2104_v35, %v2103_v12  ;;  %5456 = vmatprep.subr.bf16.mxu1 %v2108_v24  ;;  %5474 = vmatprep.subr.bf16.mxu0 %v2397_v52 }
 0x38d   : > { %v1986_v49 = vld [vmem:[%s6249_s25 + $0x28] sm:$0xff]  ;;  %v2396_v45 = vpack.c.bf16 %v2393_v26, %v2392_v58  ;;  %5457 = vmatpush3.bf16.msra.mxu1 %v2108_v24  ;;  %5475 = vmatpush3.bf16.msra.mxu0 %v2397_v52  ;;  %v2273_v39 = vld [vmem:[%s6249_s25 + $0x18] sm:$0xff] }
 0x38e   : > { %2004 = vst.msk [vmem:[%s6249_s25 + $0x38] sm:$0xff] %vm257_vm4, %v1996_v2  ;;  %v1994_v5 = vmax.f32 %v1986_v49, %v1978_v23  ;;  %5458 = vmatprep.subr.bf16.mxu1 %v2107_v40  ;;  %v2148_v43 = vpop.permute.xlu0 %2147  ;;  %v6755_v27 = vpop.permute.xlu1 %2152 }
 0x38f   : > { %5476 = vmatprep.subr.bf16.mxu0 %v2396_v45 }
 0x390   : > { %2002 = vst.msk [vmem:[%s6249_s25 + $0x28] sm:$0xff] %vm257_vm4, %v1994_v5  ;;  %v2271_v5 = vld [vmem:[%s6249_s25 + $0x8] sm:$0xff] }
 0x391   : > { %5459 = vmatpush3.bf16.msra.mxu1 %v2107_v40  ;;  %5477 = vmatpush3.bf16.msra.mxu0 %v2396_v45 }
 0x392   : > { %5486 = vmatprep.subr.bf16.mxu1 %v2630_v63  ;;  %5504 = vmatprep.subr.bf16.mxu0 %v2919_v32  ;;  %v2158_v47 = vpop.permute.xlu0 %2157  ;;  %v2163_v8 = vpop.permute.xlu1 %2162 }
 0x394   : > { %5461 = vmatmul.mubr.msk.bf16.vlgmr.msra.gmra.mxu1 %vm450_vm3, %v5701_v42  ;;  %5479 = vmatmul.mubr.msk.bf16.vlgmr.msra.gmra.mxu0 %vm450_vm3, %v5702_v46 }
 0x395   : > { %5487 = vmatpush3.bf16.msra.mxu1 %v2630_v63  ;;  %5464 = vmatprep.mubr.msk.bf16.mxu1 %vm450_vm3, %v5703_v18 }
 0x396   : > { %5482 = vmatprep.mubr.msk.bf16.mxu0 %vm450_vm3, %v5704_v33  ;;  %5505 = vmatpush3.bf16.msra.mxu0 %v2919_v32  ;;  %v2417_v31 = vpop.permute.xlu0 %2416  ;;  %v2422_v28 = vpop.permute.xlu1 %2421 }
 0x39a   : > { %v2427_v56 = vpop.permute.xlu0 %2426  ;;  %v2432_v30 = vpop.permute.xlu1 %2431 }
 0x39c   : > { %5465 = vmatmul.mubr.msk.bf16.gmra.mxu1 %vm450_vm3, %v5705_v61  ;;  %5483 = vmatmul.mubr.msk.bf16.gmra.mxu0 %vm450_vm3, %v5706_v55  ;;  %v2276_v61 = vld [vmem:[%s6249_s25 + $0x30] sm:$0xff] }
 0x39d   : > { %5488 = vmatprep.mubr.msk.bf16.mxu1 %vm305_vm2, %v5707_v3  ;;  %5506 = vmatprep.mubr.msk.bf16.mxu0 %vm305_vm2, %v5708_v57 }
 0x39e   : > { %v6757_v62 = vpop.permute.xlu0 %2436  ;;  %v6759_v53 = vpop.permute.xlu1 %4339 }
 0x3a2   : > { %v6761_v7 = vpop.permute.xlu0 %4344  ;;  %v6763_v6 = vpop.permute.xlu1 %4329 }
 0x3a4   : > { %5489 = vmatmul.mubr.msk.bf16.vlgmr.msra.gmra.mxu1 %vm305_vm2, %v5709_v29  ;;  %5507 = vmatmul.mubr.msk.bf16.vlgmr.msra.gmra.mxu0 %vm305_vm2, %v5710_v44 }
 0x3a5   : > { %5496 = vmatprep.mubr.msk.bf16.mxu1 %vm450_vm3, %v5711_v17  ;;  %5514 = vmatprep.mubr.msk.bf16.mxu0 %vm450_vm3, %v5712_v37 }
 0x3a6   : > { %v6765_v16 = vpop.permute.xlu0 %4334  ;;  %v6767_v38 = vpop.permute.xlu1 %4628 }
 0x3aa   : > { %v6769_v10 = vpop.permute.xlu0 %4633  ;;  %v6773_v24 = vpop.permute.xlu1 %4618 }
 0x3ae   : > { %v6778_v4 = vpop.permute.xlu0 %4623  ;;  %v2442_v57 = vpop.permute.xlu1 %2441 }
 0x454   : > { %v5462_v20 = vpop.f32.mrf.mxu1  ;;  %v5480_v34 = vpop.f32.mrf.mxu0 }
 0x455   : > { %v2240_v60 = vadd.f32 %v5462_v20, %v2138_v41  ;;  %v2529_v2 = vadd.f32 %v5480_v34, %v2427_v56 }
 0x456   : > { %v2231_v50 = vpop.f32.mrf.mxu1  ;;  %v2520_v59 = vpop.f32.mrf.mxu0 }
 0x457   : > { %v2264_v1 = vmax.f32 %v2240_v60, 0.0  ;;  %v2232_v54 = vadd.f32 %v2231_v50, %v2128_v48  ;;  %v2521_v45 = vadd.f32 %v2520_v59, %v2417_v31  ;;  %v2553_v29 = vmax.f32 %v2529_v2, 0.0  ;;  %v2447_v31 = vpop.permute.xlu0 %2446  ;;  %v2277_v59 = vld [vmem:[%s6249_s25 + $0x38] sm:$0xff] }
 0x458   : > { %v5463_v0 = vpop.f32.mrf.mxu1  ;;  %v5481_v11 = vpop.f32.mrf.mxu0 }
 0x459   : > { %v2280_v36 = vmax.f32 %v2272_v51, %v2264_v1  ;;  %v2262_v21 = vmax.f32 %v2232_v54, 0.0  ;;  %v2243_v12 = vadd.f32 %v5463_v0, %v2143_v25  ;;  %v2532_v33 = vadd.f32 %v5481_v11, %v2432_v30  ;;  %v2274_v25 = vld [vmem:[%s6249_s25 + $0x20] sm:$0xff] }
 0x45a   : > { %v2234_v19 = vpop.f32.mrf.mxu1  ;;  %v2523_v22 = vpop.f32.mrf.mxu0 }
 0x45b   : > { %2288 = vst.msk [vmem:[%s6249_s25 + $0x10] sm:$0xff] %vm257_vm4, %v2280_v36  ;;  %v2278_v52 = vmax.f32 %v2270_v14, %v2262_v21  ;;  %v2265_v35 = vmax.f32 %v2243_v12, 0.0  ;;  %v2235_v15 = vadd.f32 %v2234_v19, %v2133_v13  ;;  %v2551_v13 = vmax.f32 %v2521_v45, 0.0  ;;  %v7311_v21 = vld [vmem:[#allocation13_spill] sm:$0xff] }
 0x45c   : > { %v5466_v58 = vpop.f32.mrf.mxu1  ;;  %v5484_v26 = vpop.f32.mrf.mxu0  ;;  %v2524_v41 = vadd.f32 %v2523_v22, %v2422_v28  ;;  %v2554_v60 = vmax.f32 %v2532_v33, 0.0  ;;  %v7312_v14 = vld [vmem:[#allocation17_spill] sm:$0xff] }
 0x45d   : > { %2286 = vst.msk [vmem:[%s6249_s25] sm:$0xff] %vm257_vm4, %v2278_v52  ;;  %v2281_v23 = vmax.f32 %v2273_v39, %v2265_v35  ;;  %v2263_v40 = vmax.f32 %v2235_v15, 0.0  ;;  %v2256_v49 = vadd.f32 %v5466_v58, %v2158_v47  ;;  %v2545_v50 = vadd.f32 %v5484_v26, %v2447_v31  ;;  %v2452_v35 = vpop.permute.xlu1 %2451 }
 0x45e   : > { %v2247_v63 = vpop.f32.mrf.mxu1  ;;  %v2536_v32 = vpop.f32.mrf.mxu0  ;;  %v2552_v39 = vmax.f32 %v2524_v41, 0.0 }
 0x45f   : > { %2289 = vst.msk [vmem:[%s6249_s25 + $0x18] sm:$0xff] %vm257_vm4, %v2281_v23  ;;  %v2279_v42 = vmax.f32 %v2271_v5, %v2263_v40  ;;  %v2268_v46 = vmax.f32 %v2256_v49, 0.0  ;;  %v2248_v18 = vadd.f32 %v2247_v63, %v2148_v43  ;;  %v2537_v51 = vadd.f32 %v2536_v32, %v6757_v62  ;;  %v7313_v23 = vld [vmem:[#allocation15_spill] sm:$0xff]  ;;  %v7314_v32 = vld [vmem:[#allocation14_spill] sm:$0xff] }
 0x460   : > { %v5467_v55 = vpop.f32.mrf.mxu1  ;;  %v5485_v3 = vpop.f32.mrf.mxu0  ;;  %v2557_v26 = vmax.f32 %v2545_v50, 0.0  ;;  %v5116_v50 = vld [vmem:[%s5870_s12 + $0x28] sm:$0xf] }
 0x461   : > { %2287 = vst.msk [vmem:[%s6249_s25 + $0x8] sm:$0xff] %vm257_vm4, %v2279_v42  ;;  %v2284_v44 = vmax.f32 %v2276_v61, %v2268_v46  ;;  %v2266_v17 = vmax.f32 %v2248_v18, 0.0  ;;  %v2259_v37 = vadd.f32 %v5467_v55, %v2163_v8  ;;  %v2548_v2 = vadd.f32 %v5485_v3, %v2452_v35  ;;  %v7315_v46 = vld [vmem:[#allocation18_spill] sm:$0xff]  ;;  %v5716_v35 = vld [vmem:[%s7250_s3 + $0x10] sm:$0xff]  }
 0x462   : > { %v2561_v48 = vld [vmem:[%s6249_s25 + $0x10] sm:$0xff]  ;;  %v2250_v43 = vpop.f32.mrf.mxu1  ;;  %v2539_v47 = vpop.f32.mrf.mxu0  ;;  %v2555_v63 = vmax.f32 %v2537_v51, 0.0 }
 0x463   : > { %v2569_v56 = vmax.f32 %v2561_v48, %v2553_v29  ;;  %2292 = vst.msk [vmem:[%s6249_s25 + $0x30] sm:$0xff] %vm257_vm4, %v2284_v44  ;;  %v2282_v30 = vmax.f32 %v2274_v25, %v2266_v17  ;;  %v2269_v20 = vmax.f32 %v2259_v37, 0.0  ;;  %v2251_v34 = vadd.f32 %v2250_v43, %v6755_v27  ;;  %v2275_v27 = vld [vmem:[%s6249_s25 + $0x28] sm:$0xff]  ;;  %v7317_v25 = vld [vmem:[#allocation16_spill] sm:$0xff] }
 0x464   : > { %v2559_v8 = vld [vmem:[%s6249_s25] sm:$0xff]  ;;  %v5490_v28 = vpop.f32.mrf.mxu1  ;;  %v5508_v1 = vpop.f32.mrf.mxu0  ;;  %v2540_v61 = vadd.f32 %v2539_v47, %v2442_v57  ;;  %v7316_v29 = vld [vmem:[#allocation19_spill] sm:$0xff]  ;;  %v7318_v47 = vld [vmem:[#allocation20_spill] sm:$0xff] }
 0x465   : > { %2577 = vst.msk [vmem:[%s6249_s25 + $0x10] sm:$0xff] %vm257_vm4, %v2569_v56  ;;  %v2567_v54 = vmax.f32 %v2559_v8, %v2551_v13  ;;  %2290 = vst.msk [vmem:[%s6249_s25 + $0x20] sm:$0xff] %vm257_vm4, %v2282_v30  ;;  %v2285_v0 = vmax.f32 %v2277_v59, %v2269_v20  ;;  %v2267_v11 = vmax.f32 %v2251_v34, 0.0  ;;  %v2675_v12 = vadd.f32 %v5490_v28, %v7311_v21 }
 0x466   : > { %v2562_v36 = vld [vmem:[%s6249_s25 + $0x18] sm:$0xff]  ;;  %v2964_v19 = vadd.f32 %v5508_v1, %v7312_v14  ;;  %v2666_v22 = vpop.f32.mrf.mxu1  ;;  %v2955_v52 = vpop.f32.mrf.mxu0  ;;  %v2558_v56 = vmax.f32 %v2548_v2, 0.0  ;;  %v5722_v2 = vld [vmem:[%s7248_s1 + $0x8] sm:$0xff]  }
 0x467   : > { %2575 = vst.msk [vmem:[%s6249_s25] sm:$0xff] %vm257_vm4, %v2567_v54  ;;  %v2570_v15 = vmax.f32 %v2562_v36, %v2554_v60  ;;  %2293 = vst.msk [vmem:[%s6249_s25 + $0x38] sm:$0xff] %vm257_vm4, %v2285_v0  ;;  %v2283_v62 = vmax.f32 %v2275_v27, %v2267_v11  ;;  %v2667_v40 = vadd.f32 %v2666_v22, %v7313_v23  ;;  %v2683_v55 = vmax.f32 %v2675_v12, 0.0  ;;  %v5129_v54 = vld [vmem:[%s5870_s12 + $0x2c] sm:$0xf]  ;;  %v5723_v23 = vld [vmem:[%s7250_s3] sm:$0xff]  }
 0x468   : > { %v2560_v58 = vld [vmem:[%s6249_s25 + $0x8] sm:$0xff]  ;;  %v5491_v49 = vpop.f32.mrf.mxu1  ;;  %v5509_v45 = vpop.f32.mrf.mxu0  ;;  %v2972_v3 = vmax.f32 %v2964_v19, 0.0  ;;  %v2956_v44 = vadd.f32 %v2955_v52, %v7316_v29  ;;  %v2556_v0 = vmax.f32 %v2540_v61, 0.0  ;;  %v3208_v12 = vand.u32 %v5116_v50, %v5862_v9  ;;  %v5715_v52 = vld [vmem:[%s7250_s3 + $0x10] sm:$0xff]  }
 0x469   : > { %2578 = vst.msk [vmem:[%s6249_s25 + $0x18] sm:$0xff] %vm257_vm4, %v2570_v15  ;;  %v2568_v5 = vmax.f32 %v2560_v58, %v2552_v39  ;;  %2291 = vst.msk [vmem:[%s6249_s25 + $0x28] sm:$0xff] %vm257_vm4, %v2283_v62  ;;  %v2678_v42 = vadd.f32 %v5491_v49, %v7314_v32  ;;  %v2967_v18 = vadd.f32 %v5509_v45, %v7315_v46  ;;  %v2681_v57 = vmax.f32 %v2667_v40, 0.0  ;;  %v5713_v19 = vld [vmem:[%s7250_s3 + $0x8] sm:$0xff]   ;;  %v5717_v15 = vld [vmem:[%s7250_s3 + $0x18] sm:$0xff]   ;;  %v2706_v49 = vpop.permute.xlu0 %2705  ;;  %v2711_v45 = vpop.permute.xlu1 %2710 }
 0x46a   : > { %v2565_v33 = vld [vmem:[%s6249_s25 + $0x30] sm:$0xff]  ;;  %v2669_v17 = vpop.f32.mrf.mxu1  ;;  %v2958_v37 = vpop.f32.mrf.mxu0  ;;  %v2970_v28 = vmax.f32 %v2956_v44, 0.0  ;;  %v3497_v14 = vand.u32 %v5129_v54, %v5862_v9  ;;  %v5714_v22 = vld [vmem:[%s7250_s3 + $0x8] sm:$0xff]   ;;  %v5718_v39 = vld [vmem:[%s7250_s3 + $0x18] sm:$0xff]  }
 0x46b   : > { %2576 = vst.msk [vmem:[%s6249_s25 + $0x8] sm:$0xff] %vm257_vm4, %v2568_v5  ;;  %v2573_v48 = vmax.f32 %v2565_v33, %v2557_v26  ;;  %v2684_v13 = vmax.f32 %v2678_v42, 0.0  ;;  %v2973_v41 = vmax.f32 %v2967_v18, 0.0  ;;  %v2670_v43 = vadd.f32 %v2669_v17, %v7317_v25  ;;  %v5719_v62 = vld [vmem:[%s7248_s1] sm:$0xff]   ;;  %v5721_v26 = vld [vmem:[%s7248_s1 + $0x8] sm:$0xff]  }
 0x46c   : > { %v2563_v31 = vld [vmem:[%s6249_s25 + $0x20] sm:$0xff]  ;;  %v2959_v30 = vadd.f32 %v2958_v37, %v7318_v47 }
 0x46d   : > { %2581 = vst.msk [vmem:[%s6249_s25 + $0x30] sm:$0xff] %vm257_vm4, %v2573_v48  ;;  %v2571_v20 = vmax.f32 %v2563_v31, %v2555_v63  ;;  %v2686_v34 = vpack.c.bf16 %v2684_v13, %v2683_v55  ;;  %v2975_v8 = vpack.c.bf16 %v2973_v41, %v2972_v3  ;;  %v2682_v60 = vmax.f32 %v2670_v43, 0.0  ;;  %v5720_v58 = vld [vmem:[%s7248_s1] sm:$0xff]   ;;  %v2716_v5 = vpop.permute.xlu0 %2715  ;;  %v2721_v63 = vpop.permute.xlu1 %2720  ;;  %v2850_v41 = vld [vmem:[%s6249_s25 + $0x10] sm:$0xff] }
 0x46e   : > { %v2566_v59 = vld [vmem:[%s6249_s25 + $0x38] sm:$0xff]  ;;  %v2971_v1 = vmax.f32 %v2959_v30, 0.0  ;;  %v5724_v40 = vld [vmem:[%s7250_s3] sm:$0xff]  }
 0x46f   : > { %2579 = vst.msk [vmem:[%s6249_s25 + $0x20] sm:$0xff] %vm257_vm4, %v2571_v20  ;;  %v2574_v51 = vmax.f32 %v2566_v59, %v2558_v56  ;;  %v2685_v11 = vpack.c.bf16 %v2682_v60, %v2681_v57  ;;  %5492 = vmatprep.subr.bf16.mxu1 %v2686_v34  ;;  %5510 = vmatprep.subr.bf16.mxu0 %v2975_v8  ;;  %v2848_v47 = vld [vmem:[%s6249_s25] sm:$0xff] }
 0x470   : > { %v2564_v36 = vld [vmem:[%s6249_s25 + $0x28] sm:$0xff]  ;;  %v2974_v27 = vpack.c.bf16 %v2971_v1, %v2970_v28  ;;  %5493 = vmatpush3.bf16.msra.mxu1 %v2686_v34  ;;  %5511 = vmatpush3.bf16.msra.mxu0 %v2975_v8  ;;  %v2851_v59 = vld [vmem:[%s6249_s25 + $0x18] sm:$0xff] }
 0x471   : > { %2582 = vst.msk [vmem:[%s6249_s25 + $0x38] sm:$0xff] %vm257_vm4, %v2574_v51  ;;  %v2572_v21 = vmax.f32 %v2564_v36, %v2556_v0  ;;  %5494 = vmatprep.subr.bf16.mxu1 %v2685_v11  ;;  %v2726_v32 = vpop.permute.xlu0 %2725  ;;  %v6885_v42 = vpop.permute.xlu1 %2730 }
 0x472   : > { %5512 = vmatprep.subr.bf16.mxu0 %v2974_v27 }
 0x473   : > { %2580 = vst.msk [vmem:[%s6249_s25 + $0x28] sm:$0xff] %vm257_vm4, %v2572_v21  ;;  %v2849_v21 = vld [vmem:[%s6249_s25 + $0x8] sm:$0xff] }
 0x474   : > { %5495 = vmatpush3.bf16.msra.mxu1 %v2685_v11  ;;  %5513 = vmatpush3.bf16.msra.mxu0 %v2974_v27 }
 0x475   : > { %5522 = vmatprep.subr.bf16.mxu1 %v3208_v12  ;;  %5540 = vmatprep.subr.bf16.mxu0 %v3497_v14  ;;  %v2736_v46 = vpop.permute.xlu0 %2735  ;;  %v2741_v18 = vpop.permute.xlu1 %2740 }
 0x477   : > { %5497 = vmatmul.mubr.msk.bf16.vlgmr.msra.gmra.mxu1 %vm450_vm3, %v5713_v19  ;;  %5515 = vmatmul.mubr.msk.bf16.vlgmr.msra.gmra.mxu0 %vm450_vm3, %v5714_v22 }
 0x478   : > { %5523 = vmatpush3.bf16.msra.mxu1 %v3208_v12  ;;  %5500 = vmatprep.mubr.msk.bf16.mxu1 %vm450_vm3, %v5715_v52 }
 0x479   : > { %5518 = vmatprep.mubr.msk.bf16.mxu0 %vm450_vm3, %v5716_v35  ;;  %5541 = vmatpush3.bf16.msra.mxu0 %v3497_v14  ;;  %v2995_v33 = vpop.permute.xlu0 %2994  ;;  %v3000_v3 = vpop.permute.xlu1 %2999 }
 0x47d   : > { %v3005_v37 = vpop.permute.xlu0 %3004  ;;  %v3010_v34 = vpop.permute.xlu1 %3009 }
 0x47f   : > { %5501 = vmatmul.mubr.msk.bf16.gmra.mxu1 %vm450_vm3, %v5717_v15  ;;  %5519 = vmatmul.mubr.msk.bf16.gmra.mxu0 %vm450_vm3, %v5718_v39  ;;  %v2854_v15 = vld [vmem:[%s6249_s25 + $0x30] sm:$0xff] }
 0x480   : > { %5524 = vmatprep.mubr.msk.bf16.mxu1 %vm305_vm2, %v5719_v62  ;;  %5542 = vmatprep.mubr.msk.bf16.mxu0 %vm305_vm2, %v5720_v58 }
 0x481   : > { %v3015_v54 = vpop.permute.xlu0 %3014  ;;  %v3020_v58 = vpop.permute.xlu1 %3019 }
 0x487   : > { %5525 = vmatmul.mubr.msk.bf16.vlgmr.msra.gmra.mxu1 %vm305_vm2, %v5721_v26  ;;  %5543 = vmatmul.mubr.msk.bf16.vlgmr.msra.gmra.mxu0 %vm305_vm2, %v5722_v2 }
 0x488   : > { %5532 = vmatprep.mubr.msk.bf16.mxu1 %vm450_vm3, %v5723_v23  ;;  %5550 = vmatprep.mubr.msk.bf16.mxu0 %vm450_vm3, %v5724_v40 }
 0x537   : > { %v5498_v61 = vpop.f32.mrf.mxu1  ;;  %v5516_v55 = vpop.f32.mrf.mxu0 }
 0x538   : > { %v2818_v29 = vadd.f32 %v5498_v61, %v2716_v5  ;;  %v3107_v51 = vadd.f32 %v5516_v55, %v3005_v37 }
 0x539   : > { %v2809_v44 = vpop.f32.mrf.mxu1  ;;  %v3098_v17 = vpop.f32.mrf.mxu0 }
 0x53a   : > { %v2842_v48 = vmax.f32 %v2818_v29, 0.0  ;;  %v2810_v13 = vadd.f32 %v2809_v44, %v2706_v49  ;;  %v3099_v27 = vadd.f32 %v3098_v17, %v2995_v33  ;;  %v3131_v26 = vmax.f32 %v3107_v51, 0.0  ;;  %v3025_v33 = vpop.permute.xlu0 %3024 }
 0x53b   : > { %v5499_v25 = vpop.f32.mrf.mxu1  ;;  %v5517_v43 = vpop.f32.mrf.mxu0 }
 0x53c   : > { %v2858_v31 = vmax.f32 %v2850_v41, %v2842_v48  ;;  %v2840_v56 = vmax.f32 %v2810_v13, 0.0  ;;  %v2821_v57 = vadd.f32 %v5499_v25, %v2721_v63  ;;  %v3110_v35 = vadd.f32 %v5517_v43, %v3010_v34  ;;  %v2852_v63 = vld [vmem:[%s6249_s25 + $0x20] sm:$0xff]  ;;  %v2855_v48 = vld [vmem:[%s6249_s25 + $0x38] sm:$0xff] }
 0x53d   : > { %v2812_v30 = vpop.f32.mrf.mxu1  ;;  %v3101_v20 = vpop.f32.mrf.mxu0 }
 0x53e   : > { %2866 = vst.msk [vmem:[%s6249_s25 + $0x10] sm:$0xff] %vm257_vm4, %v2858_v31  ;;  %v2856_v8 = vmax.f32 %v2848_v47, %v2840_v56  ;;  %v2843_v60 = vmax.f32 %v2821_v57, 0.0  ;;  %v2813_v50 = vadd.f32 %v2812_v30, %v2711_v45  ;;  %v3129_v45 = vmax.f32 %v3099_v27, 0.0  ;;  %v2853_v57 = vld [vmem:[%s6249_s25 + $0x28] sm:$0xff]  ;;  %v7320_v30 = vld [vmem:[#allocation25_spill] sm:$0xff] }
 0x53f   : > { %v5502_v28 = vpop.f32.mrf.mxu1  ;;  %v5520_v1 = vpop.f32.mrf.mxu0  ;;  %v3102_v5 = vadd.f32 %v3101_v20, %v3000_v3  ;;  %v3132_v17 = vmax.f32 %v3110_v35, 0.0 }
 0x540   : > { %2864 = vst.msk [vmem:[%s6249_s25] sm:$0xff] %vm257_vm4, %v2856_v8  ;;  %v2859_v0 = vmax.f32 %v2851_v59, %v2843_v60  ;;  %v2841_v11 = vmax.f32 %v2813_v50, 0.0  ;;  %v2834_v36 = vadd.f32 %v5502_v28, %v2736_v46  ;;  %v3123_v37 = vadd.f32 %v5520_v1, %v3025_v33  ;;  %v3030_v60 = vpop.permute.xlu1 %3029 }
 0x541   : > { %v2825_v12 = vpop.f32.mrf.mxu1  ;;  %v3114_v14 = vpop.f32.mrf.mxu0  ;;  %v3130_v59 = vmax.f32 %v3102_v5, 0.0 }
 0x542   : > { %2867 = vst.msk [vmem:[%s6249_s25 + $0x18] sm:$0xff] %vm257_vm4, %v2859_v0  ;;  %v2857_v19 = vmax.f32 %v2849_v21, %v2841_v11  ;;  %v2846_v22 = vmax.f32 %v2834_v36, 0.0  ;;  %v2826_v52 = vadd.f32 %v2825_v12, %v2726_v32  ;;  %v3115_v25 = vadd.f32 %v3114_v14, %v3015_v54  ;;  %v7321_v0 = vld [vmem:[#allocation23_spill] sm:$0xff]  ;;  %v7322_v14 = vld [vmem:[#allocation22_spill] sm:$0xff] }
 0x543   : > { %v5503_v39 = vpop.f32.mrf.mxu1  ;;  %v5521_v62 = vpop.f32.mrf.mxu0  ;;  %v3135_v54 = vmax.f32 %v3123_v37, 0.0  ;;  %v5142_v37 = vld [vmem:[%s5870_s12 + $0x30] sm:$0xf] }
 0x544   : > { %2865 = vst.msk [vmem:[%s6249_s25 + $0x8] sm:$0xff] %vm257_vm4, %v2857_v19  ;;  %v2862_v2 = vmax.f32 %v2854_v15, %v2846_v22  ;;  %v2844_v23 = vmax.f32 %v2826_v52, 0.0  ;;  %v2837_v40 = vadd.f32 %v5503_v39, %v2741_v18  ;;  %v3126_v51 = vadd.f32 %v5521_v62, %v3030_v60  ;;  %v7323_v22 = vld [vmem:[#allocation26_spill] sm:$0xff]  ;;  %v5728_v60 = vld [vmem:[%s7250_s3 + $0x10] sm:$0xff]  }
 0x545   : > { %v3139_v49 = vld [vmem:[%s6249_s25 + $0x10] sm:$0xff]  ;;  %v2828_v32 = vpop.f32.mrf.mxu1  ;;  %v3117_v46 = vpop.f32.mrf.mxu0  ;;  %v3133_v12 = vmax.f32 %v3115_v25, 0.0 }
 0x546   : > { %v3147_v61 = vmax.f32 %v3139_v49, %v3131_v26  ;;  %2870 = vst.msk [vmem:[%s6249_s25 + $0x30] sm:$0xff] %vm257_vm4, %v2862_v2  ;;  %v2860_v55 = vmax.f32 %v2852_v63, %v2844_v23  ;;  %v2847_v29 = vmax.f32 %v2837_v40, 0.0  ;;  %v2829_v44 = vadd.f32 %v2828_v32, %v6885_v42  ;;  %v7319_v42 = vld [vmem:[#allocation21_spill] sm:$0xff]  ;;  %v7324_v26 = vld [vmem:[#allocation27_spill] sm:$0xff]  ;;  %v7325_v63 = vld [vmem:[#allocation24_spill] sm:$0xff] }
 0x547   : > { %v3137_v18 = vld [vmem:[%s6249_s25] sm:$0xff]  ;;  %v5526_v3 = vpop.f32.mrf.mxu1  ;;  %v5544_v13 = vpop.f32.mrf.mxu0  ;;  %v3118_v15 = vadd.f32 %v3117_v46, %v3020_v58  ;;  %v7326_v46 = vld [vmem:[#allocation28_spill] sm:$0xff] }
 0x548   : > { %3155 = vst.msk [vmem:[%s6249_s25 + $0x10] sm:$0xff] %vm257_vm4, %v3147_v61  ;;  %v3145_v41 = vmax.f32 %v3137_v18, %v3129_v45  ;;  %2868 = vst.msk [vmem:[%s6249_s25 + $0x20] sm:$0xff] %vm257_vm4, %v2860_v55  ;;  %v2863_v43 = vmax.f32 %v2855_v48, %v2847_v29  ;;  %v2845_v31 = vmax.f32 %v2829_v44, 0.0  ;;  %v3253_v47 = vadd.f32 %v5526_v3, %v7319_v42 }
 0x549   : > { %v3140_v56 = vld [vmem:[%s6249_s25 + $0x18] sm:$0xff]  ;;  %v3542_v20 = vadd.f32 %v5544_v13, %v7320_v30  ;;  %v3244_v34 = vpop.f32.mrf.mxu1  ;;  %v3533_v8 = vpop.f32.mrf.mxu0  ;;  %v3136_v61 = vmax.f32 %v3126_v51, 0.0  ;;  %v5734_v51 = vld [vmem:[%s7248_s1 + $0x8] sm:$0xff]  }
 0x54a   : > { %3153 = vst.msk [vmem:[%s6249_s25] sm:$0xff] %vm257_vm4, %v3145_v41  ;;  %v3148_v50 = vmax.f32 %v3140_v56, %v3132_v17  ;;  %2871 = vst.msk [vmem:[%s6249_s25 + $0x38] sm:$0xff] %vm257_vm4, %v2863_v43  ;;  %v2861_v28 = vmax.f32 %v2853_v57, %v2845_v31  ;;  %v3245_v11 = vadd.f32 %v3244_v34, %v7321_v0  ;;  %v3261_v39 = vmax.f32 %v3253_v47, 0.0  ;;  %v5155_v41 = vld [vmem:[%s5870_s12 + $0x34] sm:$0xf]  ;;  %v5726_v34 = vld [vmem:[%s7250_s3 + $0x8] sm:$0xff]  }
 0x54b   : > { %v3138_v1 = vld [vmem:[%s6249_s25 + $0x8] sm:$0xff]  ;;  %v5527_v36 = vpop.f32.mrf.mxu1  ;;  %v5545_v27 = vpop.f32.mrf.mxu0  ;;  %v3550_v62 = vmax.f32 %v3542_v20, 0.0  ;;  %v3534_v2 = vadd.f32 %v3533_v8, %v7324_v26  ;;  %v3134_v43 = vmax.f32 %v3118_v15, 0.0  ;;  %v3786_v47 = vand.u32 %v5142_v37, %v5862_v9  ;;  %v5727_v8 = vld [vmem:[%s7250_s3 + $0x10] sm:$0xff]   ;;  %v5735_v0 = vld [vmem:[%s7250_s3] sm:$0xff]  }
 0x54c   : > { %3156 = vst.msk [vmem:[%s6249_s25 + $0x18] sm:$0xff] %vm257_vm4, %v3148_v50  ;;  %v3146_v21 = vmax.f32 %v3138_v1, %v3130_v59  ;;  %2869 = vst.msk [vmem:[%s6249_s25 + $0x28] sm:$0xff] %vm257_vm4, %v2861_v28  ;;  %v3256_v19 = vadd.f32 %v5527_v36, %v7322_v14  ;;  %v3545_v52 = vadd.f32 %v5545_v27, %v7323_v22  ;;  %v3259_v58 = vmax.f32 %v3245_v11, 0.0  ;;  %v5725_v20 = vld [vmem:[%s7250_s3 + $0x8] sm:$0xff]   ;;  %v5729_v50 = vld [vmem:[%s7250_s3 + $0x18] sm:$0xff]   ;;  %v3284_v36 = vpop.permute.xlu0 %3283  ;;  %v3289_v27 = vpop.permute.xlu1 %3288 }
 0x54d   : > { %v3143_v35 = vld [vmem:[%s6249_s25 + $0x30] sm:$0xff]  ;;  %v3247_v23 = vpop.f32.mrf.mxu1  ;;  %v3536_v40 = vpop.f32.mrf.mxu0  ;;  %v3548_v3 = vmax.f32 %v3534_v2, 0.0  ;;  %v4075_v30 = vand.u32 %v5155_v41, %v5862_v9  ;;  %v5730_v59 = vld [vmem:[%s7250_s3 + $0x18] sm:$0xff]   ;;  %v5731_v28 = vld [vmem:[%s7248_s1] sm:$0xff]  }
 0x54e   : > { %3154 = vst.msk [vmem:[%s6249_s25 + $0x8] sm:$0xff] %vm257_vm4, %v3146_v21  ;;  %v3151_v49 = vmax.f32 %v3143_v35, %v3135_v54  ;;  %v3262_v45 = vmax.f32 %v3256_v19, 0.0  ;;  %v3551_v5 = vmax.f32 %v3545_v52, 0.0  ;;  %v3248_v32 = vadd.f32 %v3247_v23, %v7325_v63  ;;  %v5732_v1 = vld [vmem:[%s7248_s1] sm:$0xff]   ;;  %v5733_v54 = vld [vmem:[%s7248_s1 + $0x8] sm:$0xff]  }
 0x54f   : > { %v3141_v33 = vld [vmem:[%s6249_s25 + $0x20] sm:$0xff]  ;;  %v3537_v55 = vadd.f32 %v3536_v40, %v7326_v46 }
 0x550   : > { %3159 = vst.msk [vmem:[%s6249_s25 + $0x30] sm:$0xff] %vm257_vm4, %v3151_v49  ;;  %v3149_v29 = vmax.f32 %v3141_v33, %v3133_v12  ;;  %v3264_v44 = vpack.c.bf16 %v3262_v45, %v3261_v39  ;;  %v3553_v18 = vpack.c.bf16 %v3551_v5, %v3550_v62  ;;  %v3260_v17 = vmax.f32 %v3248_v32, 0.0  ;;  %v5736_v11 = vld [vmem:[%s7250_s3] sm:$0xff]   ;;  %v3294_v21 = vpop.permute.xlu0 %3293  ;;  %v3299_v12 = vpop.permute.xlu1 %3298  ;;  %v3428_v5 = vld [vmem:[%s6249_s25 + $0x10] sm:$0xff] }
 0x551   : > { %v3144_v48 = vld [vmem:[%s6249_s25 + $0x38] sm:$0xff]  ;;  %v3549_v13 = vmax.f32 %v3537_v55, 0.0  ;;  %v3426_v46 = vld [vmem:[%s6249_s25] sm:$0xff] }
 0x552   : > { %3157 = vst.msk [vmem:[%s6249_s25 + $0x20] sm:$0xff] %vm257_vm4, %v3149_v29  ;;  %v3152_v25 = vmax.f32 %v3144_v48, %v3136_v61  ;;  %v3263_v31 = vpack.c.bf16 %v3260_v17, %v3259_v58  ;;  %5528 = vmatprep.subr.bf16.mxu1 %v3264_v44  ;;  %5546 = vmatprep.subr.bf16.mxu0 %v3553_v18 }
 0x553   : > { %v3142_v56 = vld [vmem:[%s6249_s25 + $0x28] sm:$0xff]  ;;  %v3552_v57 = vpack.c.bf16 %v3549_v13, %v3548_v3  ;;  %5529 = vmatpush3.bf16.msra.mxu1 %v3264_v44  ;;  %5547 = vmatpush3.bf16.msra.mxu0 %v3553_v18  ;;  %v3429_v48 = vld [vmem:[%s6249_s25 + $0x18] sm:$0xff] }
 0x554   : > { %3160 = vst.msk [vmem:[%s6249_s25 + $0x38] sm:$0xff] %vm257_vm4, %v3152_v25  ;;  %v3150_v42 = vmax.f32 %v3142_v56, %v3134_v43  ;;  %5530 = vmatprep.subr.bf16.mxu1 %v3263_v31  ;;  %v3304_v14 = vpop.permute.xlu0 %3303  ;;  %v6996_v19 = vpop.permute.xlu1 %3308 }
 0x555   : > { %5548 = vmatprep.subr.bf16.mxu0 %v3552_v57 }
 0x556   : > { %3158 = vst.msk [vmem:[%s6249_s25 + $0x28] sm:$0xff] %vm257_vm4, %v3150_v42  ;;  %v3427_v42 = vld [vmem:[%s6249_s25 + $0x8] sm:$0xff] }
 0x557   : > { %5531 = vmatpush3.bf16.msra.mxu1 %v3263_v31  ;;  %5549 = vmatpush3.bf16.msra.mxu0 %v3552_v57 }
 0x558   : > { %5558 = vmatprep.subr.bf16.mxu1 %v3786_v47  ;;  %5576 = vmatprep.subr.bf16.mxu0 %v4075_v30  ;;  %v3314_v22 = vpop.permute.xlu0 %3313  ;;  %v3319_v52 = vpop.permute.xlu1 %3318 }
 0x55a   : > { %5533 = vmatmul.mubr.msk.bf16.vlgmr.msra.gmra.mxu1 %vm450_vm3, %v5725_v20  ;;  %5551 = vmatmul.mubr.msk.bf16.vlgmr.msra.gmra.mxu0 %vm450_vm3, %v5726_v34 }
 0x55b   : > { %5559 = vmatpush3.bf16.msra.mxu1 %v3786_v47  ;;  %5536 = vmatprep.mubr.msk.bf16.mxu1 %vm450_vm3, %v5727_v8 }
 0x55c   : > { %5554 = vmatprep.mubr.msk.bf16.mxu0 %vm450_vm3, %v5728_v60  ;;  %5577 = vmatpush3.bf16.msra.mxu0 %v4075_v30  ;;  %v3573_v35 = vpop.permute.xlu0 %3572  ;;  %v3578_v62 = vpop.permute.xlu1 %3577 }
 0x560   : > { %v3583_v40 = vpop.permute.xlu0 %3582  ;;  %v3588_v44 = vpop.permute.xlu1 %3587 }
 0x562   : > { %5537 = vmatmul.mubr.msk.bf16.gmra.mxu1 %vm450_vm3, %v5729_v50  ;;  %5555 = vmatmul.mubr.msk.bf16.gmra.mxu0 %vm450_vm3, %v5730_v59  ;;  %v3432_v50 = vld [vmem:[%s6249_s25 + $0x30] sm:$0xff] }
 0x563   : > { %5560 = vmatprep.mubr.msk.bf16.mxu1 %vm305_vm2, %v5731_v28  ;;  %5578 = vmatprep.mubr.msk.bf16.mxu0 %vm305_vm2, %v5732_v1 }
 0x564   : > { %v3593_v41 = vpop.permute.xlu0 %3592  ;;  %v3598_v1 = vpop.permute.xlu1 %3597 }
 0x56a   : > { %5561 = vmatmul.mubr.msk.bf16.vlgmr.msra.gmra.mxu1 %vm305_vm2, %v5733_v54  ;;  %5579 = vmatmul.mubr.msk.bf16.vlgmr.msra.gmra.mxu0 %vm305_vm2, %v5734_v51 }
 0x56b   : > { %5568 = vmatprep.mubr.msk.bf16.mxu1 %vm450_vm3, %v5735_v0  ;;  %5586 = vmatprep.mubr.msk.bf16.mxu0 %vm450_vm3, %v5736_v11 }
 0x61a   : > { %v5534_v15 = vpop.f32.mrf.mxu1  ;;  %v5552_v39 = vpop.f32.mrf.mxu0 }
 0x61b   : > { %v3396_v26 = vadd.f32 %v5534_v15, %v3294_v21  ;;  %v3685_v25 = vadd.f32 %v5552_v39, %v3583_v40 }
 0x61c   : > { %v3387_v2 = vpop.f32.mrf.mxu1  ;;  %v3676_v23 = vpop.f32.mrf.mxu0 }
 0x61d   : > { %v3420_v49 = vmax.f32 %v3396_v26, 0.0  ;;  %v3388_v45 = vadd.f32 %v3387_v2, %v3284_v36  ;;  %v3677_v57 = vadd.f32 %v3676_v23, %v3573_v35  ;;  %v3709_v54 = vmax.f32 %v3685_v25, 0.0  ;;  %v3603_v35 = vpop.permute.xlu0 %3602 }
 0x61e   : > { %v5535_v63 = vpop.f32.mrf.mxu1  ;;  %v5553_v32 = vpop.f32.mrf.mxu0 }
 0x61f   : > { %v3436_v33 = vmax.f32 %v3428_v5, %v3420_v49  ;;  %v3418_v61 = vmax.f32 %v3388_v45, 0.0  ;;  %v3399_v58 = vadd.f32 %v5535_v63, %v3299_v12  ;;  %v3688_v60 = vadd.f32 %v5553_v32, %v3588_v44  ;;  %v3430_v12 = vld [vmem:[%s6249_s25 + $0x20] sm:$0xff]  ;;  %v3433_v49 = vld [vmem:[%s6249_s25 + $0x38] sm:$0xff] }
 0x620   : > { %v3390_v55 = vpop.f32.mrf.mxu1  ;;  %v3679_v29 = vpop.f32.mrf.mxu0 }
 0x621   : > { %3444 = vst.msk [vmem:[%s6249_s25 + $0x10] sm:$0xff] %vm257_vm4, %v3436_v33  ;;  %v3434_v18 = vmax.f32 %v3426_v46, %v3418_v61  ;;  %v3421_v17 = vmax.f32 %v3399_v58, 0.0  ;;  %v3391_v37 = vadd.f32 %v3390_v55, %v3289_v27  ;;  %v3707_v27 = vmax.f32 %v3677_v57, 0.0  ;;  %v3431_v58 = vld [vmem:[%s6249_s25 + $0x28] sm:$0xff]  ;;  %v7328_v55 = vld [vmem:[#allocation33_spill] sm:$0xff] }
 0x622   : > { %v5538_v3 = vpop.f32.mrf.mxu1  ;;  %v5556_v13 = vpop.f32.mrf.mxu0  ;;  %v3680_v21 = vadd.f32 %v3679_v29, %v3578_v62  ;;  %v3710_v23 = vmax.f32 %v3688_v60, 0.0 }
 0x623   : > { %3442 = vst.msk [vmem:[%s6249_s25] sm:$0xff] %vm257_vm4, %v3434_v18  ;;  %v3437_v43 = vmax.f32 %v3429_v48, %v3421_v17  ;;  %v3419_v31 = vmax.f32 %v3391_v37, 0.0  ;;  %v3412_v56 = vadd.f32 %v5538_v3, %v3314_v22  ;;  %v3701_v40 = vadd.f32 %v5556_v13, %v3603_v35  ;;  %v3608_v17 = vpop.permute.xlu1 %3607 }
 0x624   : > { %v3403_v47 = vpop.f32.mrf.mxu1  ;;  %v3692_v30 = vpop.f32.mrf.mxu0  ;;  %v3708_v48 = vmax.f32 %v3680_v21, 0.0 }
 0x625   : > { %3445 = vst.msk [vmem:[%s6249_s25 + $0x18] sm:$0xff] %vm257_vm4, %v3437_v43  ;;  %v3435_v20 = vmax.f32 %v3427_v42, %v3419_v31  ;;  %v3424_v34 = vmax.f32 %v3412_v56, 0.0  ;;  %v3404_v8 = vadd.f32 %v3403_v47, %v3304_v14  ;;  %v3693_v63 = vadd.f32 %v3692_v30, %v3593_v41  ;;  %v7329_v43 = vld [vmem:[#allocation31_spill] sm:$0xff]  ;;  %v7330_v30 = vld [vmem:[#allocation30_spill] sm:$0xff] }
 0x626   : > { %v5539_v59 = vpop.f32.mrf.mxu1  ;;  %v5557_v28 = vpop.f32.mrf.mxu0  ;;  %v3713_v41 = vmax.f32 %v3701_v40, 0.0  ;;  %v5168_v40 = vld [vmem:[%s5870_s12 + $0x38] sm:$0xf] }
 0x627   : > { %3443 = vst.msk [vmem:[%s6249_s25 + $0x8] sm:$0xff] %vm257_vm4, %v3435_v20  ;;  %v3440_v51 = vmax.f32 %v3432_v50, %v3424_v34  ;;  %v3422_v0 = vmax.f32 %v3404_v8, 0.0  ;;  %v3415_v11 = vadd.f32 %v5539_v59, %v3319_v52  ;;  %v3704_v25 = vadd.f32 %v5557_v28, %v3608_v17  ;;  %v7331_v34 = vld [vmem:[#allocation34_spill] sm:$0xff]  ;;  %v5741_v17 = vld [vmem:[%s7250_s3 + $0x18] sm:$0xff]  }
 0x628   : > { %v3717_v36 = vld [vmem:[%s6249_s25 + $0x10] sm:$0xff]  ;;  %v3406_v14 = vpop.f32.mrf.mxu1  ;;  %v3695_v22 = vpop.f32.mrf.mxu0  ;;  %v3711_v47 = vmax.f32 %v3693_v63, 0.0 }
 0x629   : > { %v3725_v15 = vmax.f32 %v3717_v36, %v3709_v54  ;;  %3448 = vst.msk [vmem:[%s6249_s25 + $0x30] sm:$0xff] %vm257_vm4, %v3440_v51  ;;  %v3438_v39 = vmax.f32 %v3430_v12, %v3422_v0  ;;  %v3425_v26 = vmax.f32 %v3415_v11, 0.0  ;;  %v3407_v2 = vadd.f32 %v3406_v14, %v6996_v19  ;;  %v7327_v19 = vld [vmem:[#allocation29_spill] sm:$0xff]  ;;  %v7332_v54 = vld [vmem:[#allocation35_spill] sm:$0xff]  ;;  %v7333_v12 = vld [vmem:[#allocation32_spill] sm:$0xff] }
 0x62a   : > { %v3715_v52 = vld [vmem:[%s6249_s25] sm:$0xff]  ;;  %v5562_v62 = vpop.f32.mrf.mxu1  ;;  %v5580_v45 = vpop.f32.mrf.mxu0  ;;  %v3696_v50 = vadd.f32 %v3695_v22, %v3598_v1  ;;  %v7334_v22 = vld [vmem:[#allocation36_spill] sm:$0xff] }
 0x62b   : > { %3733 = vst.msk [vmem:[%s6249_s25 + $0x10] sm:$0xff] %vm257_vm4, %v3725_v15  ;;  %v3723_v5 = vmax.f32 %v3715_v52, %v3707_v27  ;;  %3446 = vst.msk [vmem:[%s6249_s25 + $0x20] sm:$0xff] %vm257_vm4, %v3438_v39  ;;  %v3441_v32 = vmax.f32 %v3433_v49, %v3425_v26  ;;  %v3423_v33 = vmax.f32 %v3407_v2, 0.0  ;;  %v3831_v46 = vadd.f32 %v5562_v62, %v7327_v19 }
 0x62c   : > { %v3718_v61 = vld [vmem:[%s6249_s25 + $0x18] sm:$0xff]  ;;  %v4120_v29 = vadd.f32 %v5580_v45, %v7328_v55  ;;  %v3822_v44 = vpop.f32.mrf.mxu1  ;;  %v4111_v18 = vpop.f32.mrf.mxu0  ;;  %v3714_v15 = vmax.f32 %v3704_v25, 0.0  ;;  %v5747_v25 = vld [vmem:[%s7250_s3] sm:$0xff]  }
 0x62d   : > { %3731 = vst.msk [vmem:[%s6249_s25] sm:$0xff] %vm257_vm4, %v3723_v5  ;;  %v3726_v37 = vmax.f32 %v3718_v61, %v3710_v23  ;;  %3449 = vst.msk [vmem:[%s6249_s25 + $0x38] sm:$0xff] %vm257_vm4, %v3441_v32  ;;  %v3439_v3 = vmax.f32 %v3431_v58, %v3423_v33  ;;  %v3823_v31 = vadd.f32 %v3822_v44, %v7329_v43  ;;  %v3839_v59 = vmax.f32 %v3831_v46, 0.0  ;;  %v5181_v5 = vld [vmem:[%s5870_s12 + $0x3c] sm:$0xf]  ;;  %v5738_v44 = vld [vmem:[%s7250_s3 + $0x8] sm:$0xff]  }
 0x62e   : > { %v3716_v13 = vld [vmem:[%s6249_s25 + $0x8] sm:$0xff]  ;;  %v5563_v56 = vpop.f32.mrf.mxu1  ;;  %v5581_v57 = vpop.f32.mrf.mxu0  ;;  %v4128_v28 = vmax.f32 %v4120_v29, 0.0  ;;  %v4112_v51 = vadd.f32 %v4111_v18, %v7332_v54  ;;  %v3712_v32 = vmax.f32 %v3696_v50, 0.0  ;;  %v4364_v46 = vand.u32 %v5168_v40, %v5862_v9  ;;  %v5739_v18 = vld [vmem:[%s7250_s3 + $0x10] sm:$0xff]   ;;  %v5748_v43 = vld [vmem:[%s7250_s3] sm:$0xff]  }
 0x62f   : > { %3734 = vst.msk [vmem:[%s6249_s25 + $0x18] sm:$0xff] %vm257_vm4, %v3726_v37  ;;  %v3724_v42 = vmax.f32 %v3716_v13, %v3708_v48  ;;  %3447 = vst.msk [vmem:[%s6249_s25 + $0x28] sm:$0xff] %vm257_vm4, %v3439_v3  ;;  %v3834_v20 = vadd.f32 %v5563_v56, %v7330_v30  ;;  %v4123_v8 = vadd.f32 %v5581_v57, %v7331_v34  ;;  %v3837_v1 = vmax.f32 %v3823_v31, 0.0  ;;  %v5737_v29 = vld [vmem:[%s7250_s3 + $0x8] sm:$0xff]   ;;  %v5742_v37 = vld [vmem:[%s7250_s3 + $0x18] sm:$0xff]   ;;  %v3862_v31 = vpop.permute.xlu0 %3861  ;;  %v3867_v56 = vpop.permute.xlu1 %3866 }
 0x630   : > { %v3721_v60 = vld [vmem:[%s6249_s25 + $0x30] sm:$0xff]  ;;  %v3825_v0 = vpop.f32.mrf.mxu1  ;;  %v4114_v11 = vpop.f32.mrf.mxu0  ;;  %v4126_v62 = vmax.f32 %v4112_v51, 0.0  ;;  %v4653_v55 = vand.u32 %v5181_v5, %v5862_v9  ;;  %v5743_v48 = vld [vmem:[%s7248_s1] sm:$0xff]   ;;  %v5745_v13 = vld [vmem:[%s7248_s1 + $0x8] sm:$0xff]  }
 0x631   : > { %3732 = vst.msk [vmem:[%s6249_s25 + $0x8] sm:$0xff] %vm257_vm4, %v3724_v42  ;;  %v3729_v36 = vmax.f32 %v3721_v60, %v3713_v41  ;;  %v3840_v27 = vmax.f32 %v3834_v20, 0.0  ;;  %v4129_v21 = vmax.f32 %v4123_v8, 0.0  ;;  %v3826_v14 = vadd.f32 %v3825_v0, %v7333_v12  ;;  %v5740_v9 = vld [vmem:[%s7250_s3 + $0x10] sm:$0xff]   ;;  %v5744_v3 = vld [vmem:[%s7248_s1] sm:$0xff]   ;;  %v5746_v41 = vld [vmem:[%s7248_s1 + $0x8] sm:$0xff]  }
 0x632   : > { %v3719_v35 = vld [vmem:[%s6249_s25 + $0x20] sm:$0xff]  ;;  %v4115_v39 = vadd.f32 %v4114_v11, %v7334_v22 }
 0x633   : > { %3737 = vst.msk [vmem:[%s6249_s25 + $0x30] sm:$0xff] %vm257_vm4, %v3729_v36  ;;  %v3727_v26 = vmax.f32 %v3719_v35, %v3711_v47  ;;  %v3842_v2 = vpack.c.bf16 %v3840_v27, %v3839_v59  ;;  %v4131_v52 = vpack.c.bf16 %v4129_v21, %v4128_v28  ;;  %v3838_v23 = vmax.f32 %v3826_v14, 0.0  ;;  %v3872_v57 = vpop.permute.xlu0 %3871  ;;  %v3877_v42 = vpop.permute.xlu1 %3876  ;;  %v4006_v27 = vld [vmem:[%s6249_s25 + $0x10] sm:$0xff] }
 0x634   : > { %v3722_v49 = vld [vmem:[%s6249_s25 + $0x38] sm:$0xff]  ;;  %v4127_v45 = vmax.f32 %v4115_v39, 0.0 }
 0x635   : > { %3735 = vst.msk [vmem:[%s6249_s25 + $0x20] sm:$0xff] %vm257_vm4, %v3727_v26  ;;  %v3730_v63 = vmax.f32 %v3722_v49, %v3714_v15  ;;  %v3841_v33 = vpack.c.bf16 %v3838_v23, %v3837_v1  ;;  %5564 = vmatprep.subr.bf16.mxu1 %v3842_v2  ;;  %5582 = vmatprep.subr.bf16.mxu0 %v4131_v52  ;;  %v4004_v1 = vld [vmem:[%s6249_s25] sm:$0xff] }
 0x636   : > { %v3720_v61 = vld [vmem:[%s6249_s25 + $0x28] sm:$0xff]  ;;  %v4130_v58 = vpack.c.bf16 %v4127_v45, %v4126_v62  ;;  %5565 = vmatpush3.bf16.msra.mxu1 %v3842_v2  ;;  %5583 = vmatpush3.bf16.msra.mxu0 %v4131_v52  ;;  %v4007_v40 = vld [vmem:[%s6249_s25 + $0x18] sm:$0xff] }
 0x637   : > { %3738 = vst.msk [vmem:[%s6249_s25 + $0x38] sm:$0xff] %vm257_vm4, %v3730_v63  ;;  %v3728_v19 = vmax.f32 %v3720_v61, %v3712_v32  ;;  %5566 = vmatprep.subr.bf16.mxu1 %v3841_v33  ;;  %v3882_v47 = vpop.permute.xlu0 %3881  ;;  %v7107_v30 = vpop.permute.xlu1 %3886 }
 0x638   : > { %5584 = vmatprep.subr.bf16.mxu0 %v4130_v58 }
 0x639   : > { %3736 = vst.msk [vmem:[%s6249_s25 + $0x28] sm:$0xff] %vm257_vm4, %v3728_v19 }
 0x63a   : > { %5567 = vmatpush3.bf16.msra.mxu1 %v3841_v33  ;;  %5585 = vmatpush3.bf16.msra.mxu0 %v4130_v58  ;;  %v4005_v58 = vld [vmem:[%s6249_s25 + $0x8] sm:$0xff] }
 0x63b   : > { %5594 = vmatprep.subr.bf16.mxu1 %v4364_v46  ;;  %5612 = vmatprep.subr.bf16.mxu0 %v4653_v55  ;;  %v3892_v20 = vpop.permute.xlu0 %3891  ;;  %v3897_v34 = vpop.permute.xlu1 %3896 }
 0x63d   : > { %5569 = vmatmul.mubr.msk.bf16.vlgmr.msra.gmra.mxu1 %vm450_vm3, %v5737_v29  ;;  %5587 = vmatmul.mubr.msk.bf16.vlgmr.msra.gmra.mxu0 %vm450_vm3, %v5738_v44 }
 0x63e   : > { %5595 = vmatpush3.bf16.msra.mxu1 %v4364_v46  ;;  %5572 = vmatprep.mubr.msk.bf16.mxu1 %vm450_vm3, %v5739_v18 }
 0x63f   : > { %5590 = vmatprep.mubr.msk.bf16.mxu0 %vm450_vm3, %v5740_v9  ;;  %5613 = vmatpush3.bf16.msra.mxu0 %v4653_v55  ;;  %v4151_v8 = vpop.permute.xlu0 %4150  ;;  %v4156_v59 = vpop.permute.xlu1 %4155  ;;  %v4010_v9 = vld [vmem:[%s6249_s25 + $0x30] sm:$0xff] }
 0x643   : > { %v4161_v0 = vpop.permute.xlu0 %4160  ;;  %v4166_v26 = vpop.permute.xlu1 %4165 }
 0x645   : > { %5573 = vmatmul.mubr.msk.bf16.gmra.mxu1 %vm450_vm3, %v5741_v17  ;;  %5591 = vmatmul.mubr.msk.bf16.gmra.mxu0 %vm450_vm3, %v5742_v37 }
 0x646   : > { %5596 = vmatprep.mubr.msk.bf16.mxu1 %vm305_vm2, %v5743_v48  ;;  %5614 = vmatprep.mubr.msk.bf16.mxu0 %vm305_vm2, %v5744_v3 }
 0x647   : > { %v4171_v45 = vpop.permute.xlu0 %4170  ;;  %v4176_v48 = vpop.permute.xlu1 %4175 }
 0x64d   : > { %5597 = vmatmul.mubr.msk.bf16.vlgmr.msra.gmra.mxu1 %vm305_vm2, %v5745_v13  ;;  %5615 = vmatmul.mubr.msk.bf16.vlgmr.msra.gmra.mxu0 %vm305_vm2, %v5746_v41 }
 0x64e   : > { %5604 = vmatprep.mubr.msk.bf16.mxu1 %vm450_vm3, %v5747_v25  ;;  %5622 = vmatprep.mubr.msk.bf16.mxu0 %vm450_vm3, %v5748_v43 }
 0x6fd   : > { %v5570_v60 = vpop.f32.mrf.mxu1  ;;  %v5588_v50 = vpop.f32.mrf.mxu0 }
 0x6fe   : > { %v3974_v28 = vadd.f32 %v5570_v60, %v3872_v57  ;;  %v4263_v5 = vadd.f32 %v5588_v50, %v4161_v0  ;;  %v4008_v57 = vld [vmem:[%s6249_s25 + $0x20] sm:$0xff]  ;;  %v4011_v0 = vld [vmem:[%s6249_s25 + $0x38] sm:$0xff] }
 0x6ff   : > { %v3965_v54 = vpop.f32.mrf.mxu1  ;;  %v4254_v51 = vpop.f32.mrf.mxu0 }
 0x700   : > { %v3998_v11 = vmax.f32 %v3974_v28, 0.0  ;;  %v3966_v36 = vadd.f32 %v3965_v54, %v3862_v31  ;;  %v4255_v61 = vadd.f32 %v4254_v51, %v4151_v8  ;;  %v4287_v3 = vmax.f32 %v4263_v5, 0.0 }
 0x701   : > { %v5571_v21 = vpop.f32.mrf.mxu1  ;;  %v5589_v12 = vpop.f32.mrf.mxu0 }
 0x702   : > { %v4014_v14 = vmax.f32 %v4006_v27, %v3998_v11  ;;  %v3996_v35 = vmax.f32 %v3966_v36, 0.0  ;;  %v3977_v15 = vadd.f32 %v5571_v21, %v3877_v42  ;;  %v4266_v18 = vadd.f32 %v5589_v12, %v4166_v26 }
 0x703   : > { %v3968_v22 = vpop.f32.mrf.mxu1  ;;  %v4257_v39 = vpop.f32.mrf.mxu0  ;;  %v4285_v31 = vmax.f32 %v4255_v61, 0.0 }
 0x704   : > { %4022 = vst.msk [vmem:[%s6249_s25 + $0x10] sm:$0xff] %vm257_vm4, %v4014_v14  ;;  %v4012_v2 = vmax.f32 %v4004_v1, %v3996_v35  ;;  %v3999_v52 = vmax.f32 %v3977_v15, 0.0  ;;  %v3969_v23 = vadd.f32 %v3968_v22, %v3867_v56  ;;  %v4258_v56 = vadd.f32 %v4257_v39, %v4156_v59  ;;  %v4009_v35 = vld [vmem:[%s6249_s25 + $0x28] sm:$0xff]  ;;  %v4186_v39 = vpop.permute.xlu1 %4185 }
 0x705   : > { %v5574_v49 = vpop.f32.mrf.mxu1  ;;  %v5592_v62 = vpop.f32.mrf.mxu0  ;;  %v4288_v54 = vmax.f32 %v4266_v18, 0.0 }
 0x706   : > { %4020 = vst.msk [vmem:[%s6249_s25] sm:$0xff] %vm257_vm4, %v4012_v2  ;;  %v4015_v63 = vmax.f32 %v4007_v40, %v3999_v52  ;;  %v3997_v32 = vmax.f32 %v3969_v23, 0.0  ;;  %v3990_v33 = vadd.f32 %v5574_v49, %v3892_v20  ;;  %v4181_v20 = vpop.permute.xlu0 %4180  ;;  %v4286_v2 = vmax.f32 %v4258_v56, 0.0 }
 0x707   : > { %v3981_v19 = vpop.f32.mrf.mxu1  ;;  %v4270_v46 = vpop.f32.mrf.mxu0  ;;  %v4279_v51 = vadd.f32 %v5592_v62, %v4181_v20  ;;  %v5750_v20 = vld [vmem:[%s7250_s3 + $0x8] sm:$0xff]  }
 0x708   : > { %4023 = vst.msk [vmem:[%s6249_s25 + $0x18] sm:$0xff] %vm257_vm4, %v4015_v63  ;;  %v4013_v55 = vmax.f32 %v4005_v58, %v3997_v32  ;;  %v4002_v29 = vmax.f32 %v3990_v33, 0.0  ;;  %v3982_v44 = vadd.f32 %v3981_v19, %v3882_v47  ;;  %v4271_v27 = vadd.f32 %v4270_v46, %v4171_v45 }
 0x709   : > { %v5575_v17 = vpop.f32.mrf.mxu1  ;;  %v5593_v37 = vpop.f32.mrf.mxu0  ;;  %v4291_v40 = vmax.f32 %v4279_v51, 0.0 }
 0x70a   : > { %4021 = vst.msk [vmem:[%s6249_s25 + $0x8] sm:$0xff] %vm257_vm4, %v4013_v55  ;;  %v4018_v13 = vmax.f32 %v4010_v9, %v4002_v29  ;;  %v4000_v41 = vmax.f32 %v3982_v44, 0.0  ;;  %v3993_v25 = vadd.f32 %v5575_v17, %v3897_v34  ;;  %v4282_v49 = vadd.f32 %v5593_v37, %v4186_v39 }
 0x70b   : > { %v4295_v43 = vld [vmem:[%s6249_s25 + $0x10] sm:$0xff]  ;;  %v3984_v42 = vpop.f32.mrf.mxu1  ;;  %v4273_v47 = vpop.f32.mrf.mxu0  ;;  %v4289_v5 = vmax.f32 %v4271_v27, 0.0 }
 0x70c   : > { %v4303_v8 = vmax.f32 %v4295_v43, %v4287_v3  ;;  %4026 = vst.msk [vmem:[%s6249_s25 + $0x30] sm:$0xff] %vm257_vm4, %v4018_v13  ;;  %v4016_v60 = vmax.f32 %v4008_v57, %v4000_v41  ;;  %v4003_v50 = vmax.f32 %v3993_v25, 0.0  ;;  %v3985_v28 = vadd.f32 %v3984_v42, %v7107_v30 }
 0x70d   : > { %v4293_v34 = vld [vmem:[%s6249_s25] sm:$0xff]  ;;  %v5598_v59 = vpop.f32.mrf.mxu1  ;;  %v5616_v11 = vpop.f32.mrf.mxu0  ;;  %v4274_v61 = vadd.f32 %v4273_v47, %v4176_v48  ;;  %v5749_v47 = vld [vmem:[%s7250_s3 + $0x8] sm:$0xff]  }
 0x70e   : > { %4311 = vst.msk [vmem:[%s6249_s25 + $0x10] sm:$0xff] %vm257_vm4, %v4303_v8  ;;  %v4301_v36 = vmax.f32 %v4293_v34, %v4285_v31  ;;  %4024 = vst.msk [vmem:[%s6249_s25 + $0x20] sm:$0xff] %vm257_vm4, %v4016_v60  ;;  %v4019_v21 = vmax.f32 %v4011_v0, %v4003_v50  ;;  %v4001_v12 = vmax.f32 %v3985_v28, 0.0  ;;  %v4409_v30 = vadd.f32 %v5598_v59, %v6759_v53  ;;  %v5751_v8 = vld [vmem:[%s7250_s3 + $0x10] sm:$0xff]   ;;  %v5753_v50 = vld [vmem:[%s7250_s3 + $0x18] sm:$0xff]   ;;  %v4440_v34 = vpop.permute.xlu0 %4439 }
 0x70f   : > { %v4296_v14 = vld [vmem:[%s6249_s25 + $0x18] sm:$0xff]  ;;  %v4698_v15 = vadd.f32 %v5616_v11, %v6767_v38  ;;  %v4400_v1 = vpop.f32.mrf.mxu1  ;;  %v4689_v22 = vpop.f32.mrf.mxu0  ;;  %v4290_v31 = vmax.f32 %v4274_v61, 0.0  ;;  %v5752_v60 = vld [vmem:[%s7250_s3 + $0x10] sm:$0xff]  }
 0x710   : > { %4309 = vst.msk [vmem:[%s6249_s25] sm:$0xff] %vm257_vm4, %v4301_v36  ;;  %v4304_v26 = vmax.f32 %v4296_v14, %v4288_v54  ;;  %4027 = vst.msk [vmem:[%s6249_s25 + $0x38] sm:$0xff] %vm257_vm4, %v4019_v21  ;;  %v4017_v52 = vmax.f32 %v4009_v35, %v4001_v12  ;;  %v4401_v53 = vadd.f32 %v4400_v1, %v6763_v6  ;;  %v4417_v58 = vmax.f32 %v4409_v30, 0.0  ;;  %v5754_v28 = vld [vmem:[%s7250_s3 + $0x18] sm:$0xff]   ;;  %v4445_v54 = vpop.permute.xlu1 %4444 }
 0x711   : > { %v4294_v23 = vld [vmem:[%s6249_s25 + $0x8] sm:$0xff]  ;;  %v5599_v62 = vpop.f32.mrf.mxu1  ;;  %v5617_v38 = vpop.f32.mrf.mxu0  ;;  %v4706_v19 = vmax.f32 %v4698_v15, 0.0  ;;  %v4690_v6 = vadd.f32 %v4689_v22, %v6773_v24 }
 0x712   : > { %4312 = vst.msk [vmem:[%s6249_s25 + $0x18] sm:$0xff] %vm257_vm4, %v4304_v26  ;;  %v4302_v45 = vmax.f32 %v4294_v23, %v4286_v2  ;;  %4025 = vst.msk [vmem:[%s6249_s25 + $0x28] sm:$0xff] %vm257_vm4, %v4017_v52  ;;  %v4412_v63 = vadd.f32 %v5599_v62, %v6761_v7  ;;  %v4701_v32 = vadd.f32 %v5617_v38, %v6769_v10  ;;  %v4292_v10 = vmax.f32 %v4282_v49, 0.0  ;;  %v4450_v51 = vpop.permute.xlu0 %4449 }
 0x713   : > { %v4299_v33 = vld [vmem:[%s6249_s25 + $0x30] sm:$0xff]  ;;  %v4403_v46 = vpop.f32.mrf.mxu1  ;;  %v4692_v55 = vpop.f32.mrf.mxu0  ;;  %v4415_v17 = vmax.f32 %v4401_v53, 0.0  ;;  %v4704_v25 = vmax.f32 %v4690_v6, 0.0 }
 0x714   : > { %4310 = vst.msk [vmem:[%s6249_s25 + $0x8] sm:$0xff] %vm257_vm4, %v4302_v45  ;;  %v4307_v29 = vmax.f32 %v4299_v33, %v4291_v40  ;;  %v4418_v44 = vmax.f32 %v4412_v63, 0.0  ;;  %v4707_v18 = vmax.f32 %v4701_v32, 0.0  ;;  %v4404_v7 = vadd.f32 %v4403_v46, %v6765_v16  ;;  %v4455_v0 = vpop.permute.xlu1 %4454 }
 0x715   : > { %v4297_v9 = vld [vmem:[%s6249_s25 + $0x20] sm:$0xff]  ;;  %v4693_v37 = vadd.f32 %v4692_v55, %v6778_v4  ;;  %v4584_v2 = vld [vmem:[%s6249_s25 + $0x10] sm:$0xff] }
 0x716   : > { %4315 = vst.msk [vmem:[%s6249_s25 + $0x30] sm:$0xff] %vm257_vm4, %v4307_v29  ;;  %v4305_v24 = vmax.f32 %v4297_v9, %v4289_v5  ;;  %v4420_v48 = vpack.c.bf16 %v4418_v44, %v4417_v58  ;;  %v4709_v3 = vpack.c.bf16 %v4707_v18, %v4706_v19  ;;  %v4416_v13 = vmax.f32 %v4404_v7, 0.0  ;;  %v4460_v59 = vpop.permute.xlu0 %4459 }
 0x717   : > { %v4300_v41 = vld [vmem:[%s6249_s25 + $0x38] sm:$0xff]  ;;  %v4705_v43 = vmax.f32 %v4693_v37, 0.0  ;;  %v4582_v62 = vld [vmem:[%s6249_s25] sm:$0xff] }
 0x718   : > { %4313 = vst.msk [vmem:[%s6249_s25 + $0x20] sm:$0xff] %vm257_vm4, %v4305_v24  ;;  %v4308_v16 = vmax.f32 %v4300_v41, %v4292_v10  ;;  %v4419_v56 = vpack.c.bf16 %v4416_v13, %v4415_v17  ;;  %5600 = vmatprep.subr.bf16.mxu1 %v4420_v48  ;;  %5618 = vmatprep.subr.bf16.mxu0 %v4709_v3  ;;  %v4465_v11 = vpop.permute.xlu1 %4464 }
 0x719   : > { %v4298_v57 = vld [vmem:[%s6249_s25 + $0x28] sm:$0xff]  ;;  %v4708_v4 = vpack.c.bf16 %v4705_v43, %v4704_v25  ;;  %5601 = vmatpush3.bf16.msra.mxu1 %v4420_v48  ;;  %5619 = vmatpush3.bf16.msra.mxu0 %v4709_v3  ;;  %v4585_v61 = vld [vmem:[%s6249_s25 + $0x18] sm:$0xff] }
 0x71a   : > { %4316 = vst.msk [vmem:[%s6249_s25 + $0x38] sm:$0xff] %vm257_vm4, %v4308_v16  ;;  %v4306_v42 = vmax.f32 %v4298_v57, %v4290_v31  ;;  %5602 = vmatprep.subr.bf16.mxu1 %v4419_v56  ;;  %v4470_v36 = vpop.permute.xlu0 %4469 }
 0x71b   : > { %5620 = vmatprep.subr.bf16.mxu0 %v4708_v4  ;;  %v4583_v7 = vld [vmem:[%s6249_s25 + $0x8] sm:$0xff] }
 0x71c   : > { %4314 = vst.msk [vmem:[%s6249_s25 + $0x28] sm:$0xff] %vm257_vm4, %v4306_v42  ;;  %v4475_v27 = vpop.permute.xlu1 %4474 }
 0x71d   : > { %5603 = vmatpush3.bf16.msra.mxu1 %v4419_v56  ;;  %5621 = vmatpush3.bf16.msra.mxu0 %v4708_v4  ;;  %v4588_v48 = vld [vmem:[%s6249_s25 + $0x30] sm:$0xff] }
 0x71e   : > { %v4729_v21 = vpop.permute.xlu0 %4728 }
 0x71f   : > { %v4586_v42 = vld [vmem:[%s6249_s25 + $0x20] sm:$0xff] }
 0x720   : > { %5605 = vmatmul.mubr.msk.bf16.vlgmr.msra.gmra.mxu1 %vm450_vm3, %v5749_v47  ;;  %5623 = vmatmul.mubr.msk.bf16.vlgmr.msra.gmra.mxu0 %vm450_vm3, %v5750_v20  ;;  %v4734_v35 = vpop.permute.xlu1 %4733 }
 0x721   : > { %5608 = vmatprep.mubr.msk.bf16.mxu1 %vm450_vm3, %v5751_v8  ;;  %5626 = vmatprep.mubr.msk.bf16.mxu0 %vm450_vm3, %v5752_v60 }
 0x722   : > { %v4739_v22 = vpop.permute.xlu0 %4738 }
 0x724   : > { %v4744_v5 = vpop.permute.xlu1 %4743 }
 0x726   : > { %v4749_v44 = vpop.permute.xlu0 %4748 }
 0x728   : > { %5609 = vmatmul.mubr.msk.bf16.gmra.mxu1 %vm450_vm3, %v5753_v50  ;;  %5627 = vmatmul.mubr.msk.bf16.gmra.mxu0 %vm450_vm3, %v5754_v28  ;;  %v4754_v31 = vpop.permute.xlu1 %4753 }
 0x72a   : > { %v4759_v28 = vpop.permute.xlu0 %4758 }
 0x7e0   : > { %v5606_v12 = vpop.f32.mrf.mxu1  ;;  %v5624_v14 = vpop.f32.mrf.mxu0 }
 0x7e1   : > { %v4552_v30 = vadd.f32 %v5606_v12, %v4450_v51  ;;  %v4841_v6 = vadd.f32 %v5624_v14, %v4739_v22  ;;  %v4589_v51 = vld [vmem:[%s6249_s25 + $0x38] sm:$0xff] }
 0x7e2   : > { %v4543_v15 = vpop.f32.mrf.mxu1  ;;  %v4832_v1 = vpop.f32.mrf.mxu0 }
 0x7e3   : > { %v4576_v39 = vmax.f32 %v4552_v30, 0.0  ;;  %v4544_v26 = vadd.f32 %v4543_v15, %v4440_v34  ;;  %v4833_v18 = vadd.f32 %v4832_v1, %v4729_v21  ;;  %v4865_v41 = vmax.f32 %v4841_v6, 0.0  ;;  %v4764_v1 = vpop.permute.xlu1 %4763 }
 0x7e4   : > { %v5607_v52 = vpop.f32.mrf.mxu1  ;;  %v5625_v23 = vpop.f32.mrf.mxu0 }
 0x7e5   : > { %v4592_v40 = vmax.f32 %v4584_v2, %v4576_v39  ;;  %v4574_v49 = vmax.f32 %v4544_v26, 0.0  ;;  %v4555_v53 = vadd.f32 %v5607_v52, %v4455_v0  ;;  %v4844_v24 = vadd.f32 %v5625_v23, %v4744_v5 }
 0x7e6   : > { %v4546_v38 = vpop.f32.mrf.mxu1  ;;  %v4835_v45 = vpop.f32.mrf.mxu0  ;;  %v4863_v57 = vmax.f32 %v4833_v18, 0.0 }
 0x7e7   : > { %4600 = vst.msk [vmem:[%s6249_s25 + $0x10] sm:$0xff] %vm257_vm4, %v4592_v40  ;;  %v4590_v63 = vmax.f32 %v4582_v62, %v4574_v49  ;;  %v4577_v32 = vmax.f32 %v4555_v53, 0.0  ;;  %v4547_v33 = vadd.f32 %v4546_v38, %v4445_v54  ;;  %v4836_v4 = vadd.f32 %v4835_v45, %v4734_v35 }
 0x7e8   : > { %v5610_v58 = vpop.f32.mrf.mxu1  ;;  %v5628_v19 = vpop.f32.mrf.mxu0  ;;  %v4866_v54 = vmax.f32 %v4844_v24, 0.0 }
 0x7e9   : > { %4598 = vst.msk [vmem:[%s6249_s25] sm:$0xff] %vm257_vm4, %v4590_v63  ;;  %v4593_v46 = vmax.f32 %v4585_v61, %v4577_v32  ;;  %v4575_v55 = vmax.f32 %v4547_v33, 0.0  ;;  %v4568_v29 = vadd.f32 %v5610_v58, %v4470_v36  ;;  %v4857_v36 = vadd.f32 %v5628_v19, %v4759_v28 }
 0x7ea   : > { %v4559_v9 = vpop.f32.mrf.mxu1  ;;  %v4848_v3 = vpop.f32.mrf.mxu0  ;;  %v4864_v35 = vmax.f32 %v4836_v4, 0.0 }
 0x7eb   : > { %4601 = vst.msk [vmem:[%s6249_s25 + $0x18] sm:$0xff] %vm257_vm4, %v4593_v46  ;;  %v4591_v10 = vmax.f32 %v4583_v7, %v4575_v55  ;;  %v4580_v17 = vmax.f32 %v4568_v29, 0.0  ;;  %v4560_v37 = vadd.f32 %v4559_v9, %v4460_v59  ;;  %v4849_v30 = vadd.f32 %v4848_v3, %v4749_v44 }
 0x7ec   : > { %v5611_v13 = vpop.f32.mrf.mxu1  ;;  %v5629_v0 = vpop.f32.mrf.mxu0  ;;  %v4869_v2 = vmax.f32 %v4857_v36, 0.0 }
 0x7ed   : > { %4599 = vst.msk [vmem:[%s6249_s25 + $0x8] sm:$0xff] %vm257_vm4, %v4591_v10  ;;  %v4596_v25 = vmax.f32 %v4588_v48, %v4580_v17  ;;  %v4578_v43 = vmax.f32 %v4560_v37, 0.0  ;;  %v4571_v16 = vadd.f32 %v5611_v13, %v4475_v27  ;;  %v4860_v52 = vadd.f32 %v5629_v0, %v4764_v1 }
 0x7ee   : > { %v4873_v56 = vld [vmem:[%s6249_s25 + $0x10] sm:$0xff]  ;;  %v4562_v47 = vpop.f32.mrf.mxu1  ;;  %v4851_v39 = vpop.f32.mrf.mxu0  ;;  %v4867_v49 = vmax.f32 %v4849_v30, 0.0 }
 0x7ef   : > { %v4881_v20 = vmax.f32 %v4873_v56, %v4865_v41  ;;  %4604 = vst.msk [vmem:[%s6249_s25 + $0x30] sm:$0xff] %vm257_vm4, %v4596_v25  ;;  %v4594_v8 = vmax.f32 %v4586_v42, %v4578_v43  ;;  %v4581_v60 = vmax.f32 %v4571_v16, 0.0  ;;  %v4563_v50 = vadd.f32 %v4562_v47, %v4465_v11  ;;  %v4587_v11 = vld [vmem:[%s6249_s25 + $0x28] sm:$0xff] }
 0x7f0   : > { %v4871_v34 = vld [vmem:[%s6249_s25] sm:$0xff]  ;;  %v4852_v53 = vadd.f32 %v4851_v39, %v4754_v31  ;;  %v4870_v45 = vmax.f32 %v4860_v52, 0.0 }
 0x7f1   : > { %4889 = vst.msk [vmem:[%s6249_s25 + $0x10] sm:$0xff] %vm257_vm4, %v4881_v20  ;;  %v4879_v59 = vmax.f32 %v4871_v34, %v4863_v57  ;;  %4602 = vst.msk [vmem:[%s6249_s25 + $0x20] sm:$0xff] %vm257_vm4, %v4594_v8  ;;  %v4597_v27 = vmax.f32 %v4589_v51, %v4581_v60  ;;  %v4579_v21 = vmax.f32 %v4563_v50, 0.0 }
 0x7f2   : > { %v4874_v12 = vld [vmem:[%s6249_s25 + $0x18] sm:$0xff]  ;;  %v4868_v32 = vmax.f32 %v4852_v53, 0.0 }
 0x7f3   : > { %4887 = vst.msk [vmem:[%s6249_s25] sm:$0xff] %vm257_vm4, %v4879_v59  ;;  %v4882_v14 = vmax.f32 %v4874_v12, %v4866_v54  ;;  %4605 = vst.msk [vmem:[%s6249_s25 + $0x38] sm:$0xff] %vm257_vm4, %v4597_v27  ;;  %v4595_v15 = vmax.f32 %v4587_v11, %v4579_v21 }
 0x7f4   : > { %v4872_v22 = vld [vmem:[%s6249_s25 + $0x8] sm:$0xff] }
 0x7f5   : > { %4890 = vst.msk [vmem:[%s6249_s25 + $0x18] sm:$0xff] %vm257_vm4, %v4882_v14  ;;  %v4880_v26 = vmax.f32 %v4872_v22, %v4864_v35  ;;  %4603 = vst.msk [vmem:[%s6249_s25 + $0x28] sm:$0xff] %vm257_vm4, %v4595_v15 }
 0x7f6   : > { %v4877_v23 = vld [vmem:[%s6249_s25 + $0x30] sm:$0xff] }
 0x7f7   : > { %4888 = vst.msk [vmem:[%s6249_s25 + $0x8] sm:$0xff] %vm257_vm4, %v4880_v26  ;;  %v4885_v40 = vmax.f32 %v4877_v23, %v4869_v2 }
 0x7f8   : > { %v4875_v62 = vld [vmem:[%s6249_s25 + $0x20] sm:$0xff] }
 0x7f9   : > { %4893 = vst.msk [vmem:[%s6249_s25 + $0x30] sm:$0xff] %vm257_vm4, %v4885_v40  ;;  %v4883_v38 = vmax.f32 %v4875_v62, %v4867_v49 }
 0x7fa   : > { %v4878_v5 = vld [vmem:[%s6249_s25 + $0x38] sm:$0xff] }
 0x7fb   : > { %4891 = vst.msk [vmem:[%s6249_s25 + $0x20] sm:$0xff] %vm257_vm4, %v4883_v38  ;;  %v4886_v63 = vmax.f32 %v4878_v5, %v4870_v45 }
 0x7fc   : > { %v4876_v33 = vld [vmem:[%s6249_s25 + $0x28] sm:$0xff] }
 0x7fd   : > { %4894 = vst.msk [vmem:[%s6249_s25 + $0x38] sm:$0xff] %vm257_vm4, %v4886_v63  ;;  %v4884_v61 = vmax.f32 %v4876_v33, %v4868_v32 }
 0x7ff   : > { %4892 = vst.msk [vmem:[%s6249_s25 + $0x28] sm:$0xff] %vm257_vm4, %v4884_v61 }
 0x800 PF: > { %s15_s20 = sadd.s32 1, %s5777_s20   ;;  %s7335_s18 = smov %s5773_s19 }
 0x801   : > { %p12_p5 = scmp.ge.s32.totalorder %s15_s20, 4   ;;  %s7336_s19 = smov %s7338_s21 }
 0x803   :  { %14 = sbr.rel (!%p12_p5) target bundleno = 2 (0x2), region = 85 }

</bundles_post_ra>
